<compile_context>
chip_gen: v5e
topology: v5e:2x2
jax: 0.10.0
libtpu: 0.0.40
codegen_flags: <defaults>
</compile_context>

<pallas_src>
import functools

import jax
import jax.numpy as jnp
from jax import lax
from jax.experimental import pallas as pl
from jax.experimental.pallas import tpu as pltpu

# ----------------------------- config (small synthetic shapes) -----------------------
N_BATCH = 2
C_IN = 4
IMG = 16                      # H = W = 16, feat_stride = 1 (synthetic backbone)
F_EXT = 16                    # extractor channels
ANCHOR_SIZES = (2.0, 4.0, 8.0)
N_ANCHOR = len(ANCHOR_SIZES)
NUM_ROIS = 32                 # proposals kept per image (fixed top-k, no NMS)
POOL = 2                      # ROI pool output is POOL x POOL
HIDDEN = 32
N_FG = 3
N_CLASS = N_FG + 1
RPN_SIGMA = 1.0
ROI_SIGMA = 1.0
LOC_NORMALIZE_STD = (0.1, 0.1, 0.2, 0.2)

_VMEM = pl.BlockSpec(memory_space=pltpu.MemorySpace.VMEM)


def _rup(x, m):
    return ((x + m - 1) // m) * m


# ------------------------------- Pallas matmul kernels -------------------------------
def _mm_bias_kernel(a_ref, b_ref, bias_ref, o_ref, *, relu):
    # Single K pass (K fits one block): no accumulator scratch / zero-init / copy.
    acc = jnp.dot(a_ref[...], b_ref[...], preferred_element_type=jnp.float32)
    acc = acc + bias_ref[...]
    if relu:
        acc = jnp.maximum(acc, 0.0)
    o_ref[...] = acc.astype(o_ref.dtype)


def pallas_matmul_bias(a, b, bias=None, relu=False, tm=512):
    """out = relu?(A @ B + bias). bf16 operands on the MXU, f32 accumulate/output.

    K and N stay full-extent blocks (no padding); only M is tiled, and only when
    it exceeds `tm`. (TODO(synk): at real FasterRCNN sizes raise tiles to 256/512.)
    """
    M, K = a.shape
    Kb, N = b.shape
    assert K == Kb
    if bias is None:
        bias = jnp.zeros((N,), jnp.float32)
    bias2 = jnp.reshape(bias, (1, N)).astype(jnp.float32)
    a_bf = a.astype(jnp.bfloat16)
    b_bf = b.astype(jnp.bfloat16)
    if M <= tm:
        Mp, bm = M, M
    else:
        Mp, bm = _rup(M, tm), tm
        a_bf = jnp.pad(a_bf, ((0, Mp - M), (0, 0)))
    out = pl.pallas_call(
        functools.partial(_mm_bias_kernel, relu=relu),
        out_shape=jax.ShapeDtypeStruct((Mp, N), jnp.float32),
        grid_spec=pltpu.PrefetchScalarGridSpec(
            num_scalar_prefetch=0,
            grid=(Mp // bm,),
            in_specs=[pl.BlockSpec((bm, K), lambda i: (i, 0)),
                      pl.BlockSpec((K, N), lambda i: (0, 0)),
                      pl.BlockSpec((1, N), lambda i: (0, 0))],
            out_specs=pl.BlockSpec((bm, N), lambda i: (i, 0))),
        compiler_params=pltpu.CompilerParams(
            dimension_semantics=("parallel",)),      # M tiles shard across TCs (v7x)
    )(a_bf, b_bf, bias2)
    return out[:M]


def _bmm_kernel(a_ref, b_ref, o_ref):
    # blocks: a (1, M, K), b (1, K, N) -> o (1, M, N)
    o_ref[...] = lax.dot_general(
        a_ref[...], b_ref[...],
        dimension_numbers=(((2,), (1,)), ((0,), (0,))),
        preferred_element_type=jnp.float32)


def pallas_bmm(a, b):
    """Batched matmul (B, M, K) @ (B, K, N); batch is a parallel grid axis (megacore)."""
    B, M, K = a.shape
    _, _, N = b.shape
    return pl.pallas_call(
        _bmm_kernel,
        out_shape=jax.ShapeDtypeStruct((B, M, N), jnp.float32),
        grid_spec=pltpu.PrefetchScalarGridSpec(
            num_scalar_prefetch=0,
            grid=(B,),
            in_specs=[pl.BlockSpec((1, M, K), lambda i: (i, 0, 0)),
                      pl.BlockSpec((1, K, N), lambda i: (i, 0, 0))],
            out_specs=pl.BlockSpec((1, M, N), lambda i: (i, 0, 0))),
        compiler_params=pltpu.CompilerParams(
            dimension_semantics=("parallel",)),
    )(a.astype(jnp.bfloat16), b.astype(jnp.bfloat16))


# ----------------------------------- IoU kernel ---------------------------------------
def _iou_kernel(a_ref, bt_ref, o_ref):
    # a: (n, A, 4) boxes [x1,y1,x2,y2]; bt: (n, 4, B) transposed boxes; o: (n, A, B)
    a = a_ref[...]
    bt = bt_ref[...]
    ax1, ay1, ax2, ay2 = a[:, :, 0:1], a[:, :, 1:2], a[:, :, 2:3], a[:, :, 3:4]
    bx1, by1, bx2, by2 = bt[:, 0:1, :], bt[:, 1:2, :], bt[:, 2:3, :], bt[:, 3:4, :]
    tlx = jnp.maximum(ax1, bx1)
    tly = jnp.maximum(ay1, by1)
    brx = jnp.minimum(ax2, bx2)
    bry = jnp.minimum(ay2, by2)
    w = jnp.maximum(brx - tlx, 0.0)
    h = jnp.maximum(bry - tly, 0.0)
    inter = w * h
    area_a = (ax2 - ax1) * (ay2 - ay1)
    area_b = (bx2 - bx1) * (by2 - by1)
    denom = jnp.maximum(area_a + area_b - inter, 1e-9)   # eps: degenerate boxes -> 0, not NaN
    o_ref[...] = inter / denom


def pallas_bbox_iou(boxes_a, boxes_b_t):
    """IoU of boxes_a (n, A, 4) vs boxes_b_t (n, 4, B) -> (n, A, B), lane-dense on B."""
    n, A, _ = boxes_a.shape
    B = boxes_b_t.shape[2]
    return pl.pallas_call(
        _iou_kernel,
        out_shape=jax.ShapeDtypeStruct((n, A, B), jnp.float32),
        in_specs=[_VMEM, _VMEM],
        out_specs=_VMEM,
    )(boxes_a.astype(jnp.float32), boxes_b_t.astype(jnp.float32))


# ---------------------------------- loss kernels --------------------------------------
def _loc_loss_kernel(pred_ref, gt_ref, mask_ref, out_ref, *, sigma_squared):
    # pred/gt/mask: (n, S*4) lane-dense; out: (n, 1) per-image loss.
    diff = jnp.abs(gt_ref[...] - pred_ref[...])
    loss = jnp.where(diff < (1.0 / sigma_squared),
                     0.5 * sigma_squared * diff * diff,
                     diff - 0.5 / sigma_squared)
    masked = loss * mask_ref[...]
    total = jnp.sum(masked, axis=1, keepdims=True)                   # (n, 1)
    num_pos = jnp.sum(mask_ref[...], axis=1, keepdims=True) * 0.25   # positive rows (mask is x4)
    out_ref[...] = total / jnp.maximum(num_pos, 1.0)


def fast_rcnn_loc_loss(pred_loc, gt_loc, gt_label, sigma):
    """Per-image smooth-L1 over positive rows, normalized by #positives (spec semantics)."""
    n, S, _ = pred_loc.shape
    mask = jnp.broadcast_to((gt_label > 0).astype(jnp.float32)[..., None],
                            (n, S, 4)).reshape(n, S * 4)
    out = pl.pallas_call(
        functools.partial(_loc_loss_kernel, sigma_squared=float(sigma) ** 2),
        out_shape=jax.ShapeDtypeStruct((n, 1), jnp.float32),
        in_specs=[_VMEM, _VMEM, _VMEM],
        out_specs=_VMEM,
    )(pred_loc.reshape(n, S * 4).astype(jnp.float32),
      gt_loc.reshape(n, S * 4).astype(jnp.float32), mask)
    return out[:, 0]                                                 # (n,)


def _ce_kernel(logits_ref, label_ref, out_ref):
    # logits: (n, C, S) class axis on sublanes, rows on lanes (lane-dense); labels: (n, 1, S)
    x = logits_ref[...]
    m = jnp.max(x, axis=1, keepdims=True)
    z = x - m
    lse = jnp.log(jnp.sum(jnp.exp(z), axis=1, keepdims=True))
    logp = z - lse                                                   # (n, C, S)
    lab = label_ref[...]                                             # (n, 1, S) int32
    cls = lax.broadcasted_iota(jnp.int32, x.shape, 1)
    onehot = (cls == lab).astype(jnp.float32)
    picked = jnp.sum(logp * onehot, axis=1, keepdims=True)           # (n, 1, S)
    valid = (lab >= 0).astype(jnp.float32)                           # ignore_index = -1
    total = jnp.sum(picked * valid, axis=2, keepdims=True)           # (n, 1, 1)
    n_valid = jnp.sum(valid, axis=2, keepdims=True)
    out_ref[...] = -total / jnp.maximum(n_valid, 1.0)


def pallas_cross_entropy(logits, labels):
    """Per-image mean cross entropy with ignore_index=-1 -> (n,)."""
    n, S, C = logits.shape
    logits_t = jnp.swapaxes(logits, 1, 2)                            # (n, C, S): long axis last
    out = pl.pallas_call(
        _ce_kernel,
        out_shape=jax.ShapeDtypeStruct((n, 1, 1), jnp.float32),
        in_specs=[_VMEM, _VMEM],
        out_specs=_VMEM,
    )(logits_t.astype(jnp.float32), labels.astype(jnp.int32)[:, None, :])
    return out[:, 0, 0]


# -------------------------------- bbox utilities (glue) ------------------------------
def bbox2loc_jax(src, dst):
    w = src[..., 2] - src[..., 0]
    h = src[..., 3] - src[..., 1]
    cx = src[..., 0] + 0.5 * w
    cy = src[..., 1] + 0.5 * h
    bw = dst[..., 2] - dst[..., 0]
    bh = dst[..., 3] - dst[..., 1]
    bcx = dst[..., 0] + 0.5 * bw
    bcy = dst[..., 1] + 0.5 * bh
    eps = jnp.finfo(jnp.float32).eps
    w = jnp.maximum(w, eps)
    h = jnp.maximum(h, eps)
    dx = (bcx - cx) / w
    dy = (bcy - cy) / h
    dw = jnp.log(bw / w)
    dh = jnp.log(bh / h)
    return jnp.stack([dx, dy, dw, dh], axis=-1)


def loc2bbox_jax(anchor, loc):
    w = anchor[:, 2] - anchor[:, 0]
    h = anchor[:, 3] - anchor[:, 1]
    cx = anchor[:, 0] + 0.5 * w
    cy = anchor[:, 1] + 0.5 * h
    dx, dy, dw, dh = loc[..., 0], loc[..., 1], loc[..., 2], loc[..., 3]
    ncx = dx * w + cx
    ncy = dy * h + cy
    nw = jnp.exp(dw) * w
    nh = jnp.exp(dh) * h
    return jnp.stack([ncx - 0.5 * nw, ncy - 0.5 * nh,
                      ncx + 0.5 * nw, ncy + 0.5 * nh], axis=-1)


def generate_anchors(H, W, feat_stride=1.0):
    ys, xs = jnp.meshgrid(jnp.arange(H, dtype=jnp.float32),
                          jnp.arange(W, dtype=jnp.float32), indexing="ij")
    cx = (xs + 0.5) * feat_stride
    cy = (ys + 0.5) * feat_stride
    half = jnp.asarray(ANCHOR_SIZES, jnp.float32) / 2.0
    x1 = cx[..., None] - half
    y1 = cy[..., None] - half
    x2 = cx[..., None] + half
    y2 = cy[..., None] + half
    return jnp.stack([x1, y1, x2, y2], axis=-1).reshape(H * W * N_ANCHOR, 4)


# ------------------------ target creators (batched, deterministic) -------------------
def anchor_target_creator(bboxes, anchor, pos_iou_thresh=0.7, neg_iou_thresh=0.3):
    # bboxes: (n, M, 4); anchor: (S, 4) -> loc (n, S, 4), label (n, S)
    n, M, _ = bboxes.shape
    S = anchor.shape[0]
    anchor_t = jnp.broadcast_to(anchor.T[None], (n, 4, S))
    ious = pallas_bbox_iou(bboxes, anchor_t)                   # (n, M, S) — Pallas kernel
    max_ious = jnp.max(ious, axis=1)                           # (n, S)
    argmax_ious = jnp.argmax(ious, axis=1)                     # (n, S)
    gt_argmax_ious = jnp.argmax(ious, axis=2)                  # (n, M)
    bidx = jnp.arange(n)[:, None]
    argmax_ious = argmax_ious.at[bidx, gt_argmax_ious].set(
        jnp.broadcast_to(jnp.arange(M)[None, :], (n, M)))
    label = jnp.full((n, S), -1, jnp.int32)
    label = jnp.where(max_ious < neg_iou_thresh, 0, label)
    label = jnp.where(max_ious >= pos_iou_thresh, 1, label)
    label = label.at[bidx, gt_argmax_ious].set(1)
    # TODO(synk): random pos/neg subsampling (np.random.choice, dynamic shape) omitted.
    matched = jnp.take_along_axis(
        bboxes, jnp.broadcast_to(argmax_ious[..., None], (n, S, 4)), axis=1)
    loc = bbox2loc_jax(jnp.broadcast_to(anchor[None], (n, S, 4)), matched)
    return loc, label


def proposal_target_creator(rois, bboxes, labels, pos_iou_thresh=0.5):
    # rois: (n, R0, 4); bboxes: (n, M, 4); labels: (n, M)
    n, M, _ = bboxes.shape
    roi = jnp.concatenate([rois, bboxes], axis=1)              # (n, R, 4)
    R = roi.shape[1]
    iou = pallas_bbox_iou(bboxes, jnp.swapaxes(roi, 1, 2))     # (n, M, R) — Pallas kernel
    gt_assignment = jnp.argmax(iou, axis=1)                    # (n, R)
    max_iou = jnp.max(iou, axis=1)                             # (n, R)
    gt_roi_label = jnp.take_along_axis(labels, gt_assignment, axis=1).astype(jnp.int32) + 1
    # TODO(synk): random subsampling to n_sample=128 (np.random.choice, dynamic shape) omitted;
    # all (fixed-count) rois are kept and negatives get label 0, matching the reference math.
    sample_roi = roi
    matched = jnp.take_along_axis(
        bboxes, jnp.broadcast_to(gt_assignment[..., None], (n, R, 4)), axis=1)
    gt_roi_loc = bbox2loc_jax(sample_roi, matched) / jnp.asarray(LOC_NORMALIZE_STD, jnp.float32)
    gt_roi_label = jnp.where(max_iou >= pos_iou_thresh, gt_roi_label, 0)
    return sample_roi, gt_roi_loc, gt_roi_label


# ----------------------------------- synthetic model ---------------------------------
def init_params(key):
    ks = jax.random.split(key, 8)
    w = lambda k, shape, s=0.1: jax.random.normal(k, shape, jnp.float32) * s
    return {
        "w_ext": w(ks[0], (3, 3, C_IN, F_EXT)), "b_ext": jnp.zeros((F_EXT,), jnp.float32),
        "w_rpn": w(ks[1], (3, 3, F_EXT, F_EXT)), "b_rpn": jnp.zeros((F_EXT,), jnp.float32),
        "w_loc": w(ks[2], (F_EXT, N_ANCHOR * 4), 0.01), "b_loc": jnp.zeros((N_ANCHOR * 4,), jnp.float32),
        "w_score": w(ks[3], (F_EXT, N_ANCHOR * 2)), "b_score": jnp.zeros((N_ANCHOR * 2,), jnp.float32),
        "w_fc": w(ks[4], (POOL * POOL * F_EXT, HIDDEN)), "b_fc": jnp.zeros((HIDDEN,), jnp.float32),
        "w_cls_loc": w(ks[5], (HIDDEN, N_CLASS * 4), 0.01), "b_cls_loc": jnp.zeros((N_CLASS * 4,), jnp.float32),
        "w_cls_score": w(ks[6], (HIDDEN, N_CLASS)), "b_cls_score": jnp.zeros((N_CLASS,), jnp.float32),
    }


def conv3x3(x, w, b, relu=False):
    # im2col in bf16 + fused matmul/bias/relu (single pallas_call for the whole batch).
    # TODO(synk): fold the 9 (dy,dx) shifts into a K-reduction grid axis to avoid the 9x concat.
    n, H, W, C = x.shape
    xp = jnp.pad(x.astype(jnp.bfloat16), ((0, 0), (1, 1), (1, 1), (0, 0)))
    cols = [xp[:, dy:dy + H, dx:dx + W, :] for dy in range(3) for dx in range(3)]
    patches = jnp.concatenate(cols, axis=-1).reshape(n * H * W, 9 * C)
    out = pallas_matmul_bias(patches, w.reshape(9 * C, -1), b, relu=relu)
    return out.reshape(n, H, W, -1)


def rpn_forward(params, feat, img_size, scale):
    del scale  # TODO(synk): min-size filtering + NMS of the reference proposal layer omitted (dynamic shapes).
    n, H, W, _ = feat.shape
    h = conv3x3(feat, params["w_rpn"], params["b_rpn"], relu=True)
    # fused 1x1 conv: loc (A*4) || score (A*2) share the same LHS -> one matmul
    w_cat = jnp.concatenate([params["w_loc"], params["w_score"]], axis=1)
    b_cat = jnp.concatenate([params["b_loc"], params["b_score"]], axis=0)
    out = pallas_matmul_bias(h.reshape(n * H * W, -1), w_cat, b_cat)
    rpn_locs = out[:, :N_ANCHOR * 4].reshape(n, H * W * N_ANCHOR, 4)
    rpn_scores = out[:, N_ANCHOR * 4:].reshape(n, H * W * N_ANCHOR, 2)
    anchor = generate_anchors(H, W)                                # (H*W*A, 4)

    fg = jax.nn.softmax(rpn_scores, axis=-1)[..., 1]               # (n, S)
    proposals = loc2bbox_jax(anchor, rpn_locs)                     # (n, S, 4)
    proposals = jnp.stack([
        jnp.clip(proposals[..., 0], 0.0, img_size[1]),
        jnp.clip(proposals[..., 1], 0.0, img_size[0]),
        jnp.clip(proposals[..., 2], 0.0, img_size[1]),
        jnp.clip(proposals[..., 3], 0.0, img_size[0])], axis=-1)
    _, topi = lax.top_k(fg, NUM_ROIS)                              # fixed top-k (no NMS)
    idx = jnp.broadcast_to(topi[..., None], (n, NUM_ROIS, 4))
    rois = jnp.take_along_axis(proposals, idx, axis=1)             # (n, NUM_ROIS, 4)
    return rpn_locs, rpn_scores, rois, anchor


def head_forward(params, features, sample_roi):
    # features: (n, H, W, F); sample_roi: (n, R, 4) -> (n, R, NC*4), (n, R, NC)
    n, H, W, F = features.shape
    R = sample_roi.shape[1]
    x1, y1 = sample_roi[..., 0], sample_roi[..., 1]
    x2, y2 = sample_roi[..., 2], sample_roi[..., 3]
    bw = (x2 - x1) / POOL
    bh = (y2 - y1) / POOL
    p = jnp.arange(POOL, dtype=jnp.float32)
    bx0 = x1[..., None] + p * bw[..., None]
    bx1 = bx0 + bw[..., None]
    by0 = y1[..., None] + p * bh[..., None]
    by1 = by0 + bh[..., None]
    xc = jnp.arange(W, dtype=jnp.float32) + 0.5
    yc = jnp.arange(H, dtype=jnp.float32) + 0.5
    mx = (xc >= bx0[..., None]) & (xc < bx1[..., None])            # (n, R, P, W)
    my = (yc >= by0[..., None]) & (yc < by1[..., None])            # (n, R, P, H)
    mask = (my[:, :, :, None, :, None] & mx[:, :, None, :, None, :]).astype(jnp.float32)
    mask = mask.reshape(n, R * POOL * POOL, H * W)
    mask = mask / jnp.maximum(jnp.sum(mask, axis=2, keepdims=True), 1.0)
    # average ROI pooling as a batched matmul (parallel image axis -> both TCs on v7x)
    pooled = pallas_bmm(mask, features.reshape(n, H * W, F))       # (n, R*P*P, F)
    pooled = pooled.reshape(n * R, POOL * POOL * F)
    h = pallas_matmul_bias(pooled, params["w_fc"], params["b_fc"], relu=True)
    # fused classification heads: cls_loc (NC*4) || cls_score (NC)
    w_cat = jnp.concatenate([params["w_cls_loc"], params["w_cls_score"]], axis=1)
    b_cat = jnp.concatenate([params["b_cls_loc"], params["b_cls_score"]], axis=0)
    out = pallas_matmul_bias(h, w_cat, b_cat)
    roi_cls_loc = out[:, :N_CLASS * 4].reshape(n, R, N_CLASS * 4)
    roi_score = out[:, N_CLASS * 4:].reshape(n, R, N_CLASS)
    return roi_cls_loc, roi_score


# ------------------------------------- trainer forward -------------------------------
def forward(params, imgs, bboxes, labels, scale):
    n = imgs.shape[0]
    img_size = (imgs.shape[2], imgs.shape[3])
    x = jnp.transpose(imgs, (0, 2, 3, 1)).astype(jnp.float32)      # NCHW -> NHWC
    base_feature = conv3x3(x, params["w_ext"], params["b_ext"], relu=True)
    rpn_locs, rpn_scores, rois, anchor = rpn_forward(params, base_feature, img_size, scale)
    # rois are laid out per-image: (n, NUM_ROIS, 4)  (== the roi_indices selection)

    # ---- RPN losses (batched over images; per-image normalization preserved) ----
    gt_rpn_loc, gt_rpn_label = anchor_target_creator(bboxes, anchor)
    rpn_loc_loss = fast_rcnn_loc_loss(rpn_locs, gt_rpn_loc, gt_rpn_label, RPN_SIGMA)
    rpn_cls_loss = pallas_cross_entropy(rpn_scores, gt_rpn_label)      # ignore_index = -1

    # ---- ROI head + losses (batched) ----
    sample_roi, gt_roi_loc, gt_roi_label = proposal_target_creator(rois, bboxes, labels)
    roi_cls_loc, roi_score = head_forward(params, base_feature, sample_roi)

    R = sample_roi.shape[1]
    rcl = roi_cls_loc.reshape(n, R, N_CLASS, 4)
    idx = jnp.broadcast_to(gt_roi_label[:, :, None, None].astype(jnp.int32), (n, R, 1, 4))
    roi_loc = jnp.take_along_axis(rcl, idx, axis=2)[:, :, 0, :]
    roi_loc_loss = fast_rcnn_loc_loss(roi_loc, gt_roi_loc, gt_roi_label, ROI_SIGMA)
    roi_cls_loss = pallas_cross_entropy(roi_score, gt_roi_label)

    losses = [jnp.mean(rpn_loc_loss), jnp.mean(rpn_cls_loss),
              jnp.mean(roi_loc_loss), jnp.mean(roi_cls_loss)]
    losses = losses + [losses[0] + losses[1] + losses[2] + losses[3]]
    return jnp.stack(losses)
    # TODO(synk): optimizer / backward / loss_history logging are training plumbing, not forward compute.


# ----------------------------------------- main ---------------------------------------
if __name__ == "__main__":
    key = jax.random.PRNGKey(0)
    k_img, k_box, k_lab, k_par = jax.random.split(key, 4)

    imgs = jax.random.normal(k_img, (N_BATCH, C_IN, IMG, IMG), jnp.float32)

    kx, ky, kw, kh = jax.random.split(k_box, 4)
    x1 = jax.random.uniform(kx, (N_BATCH, 3), minval=0.0, maxval=8.0)
    y1 = jax.random.uniform(ky, (N_BATCH, 3), minval=0.0, maxval=8.0)
    bw = jax.random.uniform(kw, (N_BATCH, 3), minval=2.0, maxval=7.0)
    bh = jax.random.uniform(kh, (N_BATCH, 3), minval=2.0, maxval=7.0)
    bboxes = jnp.stack([x1, y1, x1 + bw, y1 + bh], axis=-1)        # (2, 3, 4) gt boxes
    labels = jax.random.randint(k_lab, (N_BATCH, 3), 0, N_FG)      # (2, 3) fg class ids

    params = init_params(k_par)

    losses = jax.jit(forward)(params, imgs, bboxes, labels, jnp.float32(1.0))
    jax.block_until_ready(losses)
    print("KERNEL_OK")
</pallas_src>

<mosaic_0001>
module attributes {stable_mosaic.version = 11 : i64} {
  func.func @_mm_bias_kernel(%arg0: i32, %arg1: memref<512x36xbf16, #tpu.memory_space<vmem>>, %arg2: memref<36x16xbf16, #tpu.memory_space<vmem>>, %arg3: memref<1x16xf32, #tpu.memory_space<vmem>>, %arg4: memref<512x16xf32, #tpu.memory_space<vmem>>) attributes {dimension_semantics = [#tpu.dimension_semantics<parallel>], iteration_bounds = array<i64: 1>, scalar_prefetch = 0 : i64, scratch_operands = 0 : i64, tpu.core_type = #tpu.core_type<tc>, window_params = [{transform_indices = @transform_0, window_bounds = array<i64: 512, 36>}, {pipeline_mode = #tpu.pipeline_mode<synchronous>, transform_indices = @transform_1, window_bounds = array<i64: 36, 16>}, {pipeline_mode = #tpu.pipeline_mode<synchronous>, transform_indices = @transform_2, window_bounds = array<i64: 1, 16>}, {transform_indices = @transform_3, window_bounds = array<i64: 512, 16>}]} {
    %c0 = arith.constant 0 : index
    %c0_0 = arith.constant 0 : index
    %0 = vector.load %arg1[%c0, %c0_0] : memref<512x36xbf16, #tpu.memory_space<vmem>>, vector<512x36xbf16>
    %c0_1 = arith.constant 0 : index
    %c0_2 = arith.constant 0 : index
    %1 = vector.load %arg2[%c0_1, %c0_2] : memref<36x16xbf16, #tpu.memory_space<vmem>>, vector<36x16xbf16>
    %cst = arith.constant dense<0.000000e+00> : vector<512x16xf32>
    %2 = tpu.matmul %0, %1, %cst {dimension_numbers = #tpu.dot_dimension_numbers<[1], [0], [0], [1], [0, 0, 1, 1], [], []>} : vector<512x36xbf16>, vector<36x16xbf16>, vector<512x16xf32> -> vector<512x16xf32>
    %c0_3 = arith.constant 0 : index
    %c0_4 = arith.constant 0 : index
    %3 = vector.load %arg3[%c0_3, %c0_4] : memref<1x16xf32, #tpu.memory_space<vmem>>, vector<1x16xf32>
    %4 = vector.broadcast %3 : vector<1x16xf32> to vector<512x16xf32>
    %5 = arith.addf %2, %4 : vector<512x16xf32>
    %cst_5 = arith.constant 0.000000e+00 : f32
    %6 = vector.broadcast %cst_5 : f32 to vector<512x16xf32>
    %7 = arith.maximumf %5, %6 : vector<512x16xf32>
    %c0_6 = arith.constant 0 : index
    %c0_7 = arith.constant 0 : index
    %8 = vector.load %arg4[%c0_6, %c0_7] : memref<512x16xf32, #tpu.memory_space<vmem>>, vector<512x16xf32>
    tpu.vector_store %arg4[%c0_6, %c0_7], %7 {strides = array<i32>} : memref<512x16xf32, #tpu.memory_space<vmem>>, vector<512x16xf32>,
    return
  }
  func.func @transform_0(%arg0: i32) -> (i32, i32) {
    %c0_i32 = arith.constant 0 : i32
    %c0_i32_0 = arith.constant 0 : i32
    return %arg0, %c0_i32 : i32, i32
  }
  func.func @transform_1(%arg0: i32) -> (i32, i32) {
    %c0_i32 = arith.constant 0 : i32
    %c0_i32_0 = arith.constant 0 : i32
    %c0_i32_1 = arith.constant 0 : i32
    return %c0_i32, %c0_i32_0 : i32, i32
  }
  func.func @transform_2(%arg0: i32) -> (i32, i32) {
    %c0_i32 = arith.constant 0 : i32
    %c0_i32_0 = arith.constant 0 : i32
    %c0_i32_1 = arith.constant 0 : i32
    return %c0_i32, %c0_i32_0 : i32, i32
  }
  func.func @transform_3(%arg0: i32) -> (i32, i32) {
    %c0_i32 = arith.constant 0 : i32
    %c0_i32_0 = arith.constant 0 : i32
    return %arg0, %c0_i32 : i32, i32
  }
}

module attributes {stable_mosaic.version = 11 : i64} {
  func.func @_mm_bias_kernel(%arg0: i32, %arg1: memref<512x144xbf16, #tpu.memory_space<vmem>>, %arg2: memref<144x16xbf16, #tpu.memory_space<vmem>>, %arg3: memref<1x16xf32, #tpu.memory_space<vmem>>, %arg4: memref<512x16xf32, #tpu.memory_space<vmem>>) attributes {dimension_semantics = [#tpu.dimension_semantics<parallel>], iteration_bounds = array<i64: 1>, scalar_prefetch = 0 : i64, scratch_operands = 0 : i64, tpu.core_type = #tpu.core_type<tc>, window_params = [{transform_indices = @transform_0, window_bounds = array<i64: 512, 144>}, {pipeline_mode = #tpu.pipeline_mode<synchronous>, transform_indices = @transform_1, window_bounds = array<i64: 144, 16>}, {pipeline_mode = #tpu.pipeline_mode<synchronous>, transform_indices = @transform_2, window_bounds = array<i64: 1, 16>}, {transform_indices = @transform_3, window_bounds = array<i64: 512, 16>}]} {
    %c0 = arith.constant 0 : index
    %c0_0 = arith.constant 0 : index
    %0 = vector.load %arg1[%c0, %c0_0] : memref<512x144xbf16, #tpu.memory_space<vmem>>, vector<512x144xbf16>
    %c0_1 = arith.constant 0 : index
    %c0_2 = arith.constant 0 : index
    %1 = vector.load %arg2[%c0_1, %c0_2] : memref<144x16xbf16, #tpu.memory_space<vmem>>, vector<144x16xbf16>
    %cst = arith.constant dense<0.000000e+00> : vector<512x16xf32>
    %2 = tpu.matmul %0, %1, %cst {dimension_numbers = #tpu.dot_dimension_numbers<[1], [0], [0], [1], [0, 0, 1, 1], [], []>} : vector<512x144xbf16>, vector<144x16xbf16>, vector<512x16xf32> -> vector<512x16xf32>
    %c0_3 = arith.constant 0 : index
    %c0_4 = arith.constant 0 : index
    %3 = vector.load %arg3[%c0_3, %c0_4] : memref<1x16xf32, #tpu.memory_space<vmem>>, vector<1x16xf32>
    %4 = vector.broadcast %3 : vector<1x16xf32> to vector<512x16xf32>
    %5 = arith.addf %2, %4 : vector<512x16xf32>
    %cst_5 = arith.constant 0.000000e+00 : f32
    %6 = vector.broadcast %cst_5 : f32 to vector<512x16xf32>
    %7 = arith.maximumf %5, %6 : vector<512x16xf32>
    %c0_6 = arith.constant 0 : index
    %c0_7 = arith.constant 0 : index
    %8 = vector.load %arg4[%c0_6, %c0_7] : memref<512x16xf32, #tpu.memory_space<vmem>>, vector<512x16xf32>
    tpu.vector_store %arg4[%c0_6, %c0_7], %7 {strides = array<i32>} : memref<512x16xf32, #tpu.memory_space<vmem>>, vector<512x16xf32>,
    return
  }
  func.func @transform_0(%arg0: i32) -> (i32, i32) {
    %c0_i32 = arith.constant 0 : i32
    %c0_i32_0 = arith.constant 0 : i32
    return %arg0, %c0_i32 : i32, i32
  }
  func.func @transform_1(%arg0: i32) -> (i32, i32) {
    %c0_i32 = arith.constant 0 : i32
    %c0_i32_0 = arith.constant 0 : i32
    %c0_i32_1 = arith.constant 0 : i32
    return %c0_i32, %c0_i32_0 : i32, i32
  }
  func.func @transform_2(%arg0: i32) -> (i32, i32) {
    %c0_i32 = arith.constant 0 : i32
    %c0_i32_0 = arith.constant 0 : i32
    %c0_i32_1 = arith.constant 0 : i32
    return %c0_i32, %c0_i32_0 : i32, i32
  }
  func.func @transform_3(%arg0: i32) -> (i32, i32) {
    %c0_i32 = arith.constant 0 : i32
    %c0_i32_0 = arith.constant 0 : i32
    return %arg0, %c0_i32 : i32, i32
  }
}

module attributes {stable_mosaic.version = 11 : i64} {
  func.func @_mm_bias_kernel(%arg0: i32, %arg1: memref<512x16xbf16, #tpu.memory_space<vmem>>, %arg2: memref<16x18xbf16, #tpu.memory_space<vmem>>, %arg3: memref<1x18xf32, #tpu.memory_space<vmem>>, %arg4: memref<512x18xf32, #tpu.memory_space<vmem>>) attributes {dimension_semantics = [#tpu.dimension_semantics<parallel>], iteration_bounds = array<i64: 1>, scalar_prefetch = 0 : i64, scratch_operands = 0 : i64, tpu.core_type = #tpu.core_type<tc>, window_params = [{transform_indices = @transform_0, window_bounds = array<i64: 512, 16>}, {pipeline_mode = #tpu.pipeline_mode<synchronous>, transform_indices = @transform_1, window_bounds = array<i64: 16, 18>}, {pipeline_mode = #tpu.pipeline_mode<synchronous>, transform_indices = @transform_2, window_bounds = array<i64: 1, 18>}, {transform_indices = @transform_3, window_bounds = array<i64: 512, 18>}]} {
    %c0 = arith.constant 0 : index
    %c0_0 = arith.constant 0 : index
    %0 = vector.load %arg1[%c0, %c0_0] : memref<512x16xbf16, #tpu.memory_space<vmem>>, vector<512x16xbf16>
    %c0_1 = arith.constant 0 : index
    %c0_2 = arith.constant 0 : index
    %1 = vector.load %arg2[%c0_1, %c0_2] : memref<16x18xbf16, #tpu.memory_space<vmem>>, vector<16x18xbf16>
    %cst = arith.constant dense<0.000000e+00> : vector<512x18xf32>
    %2 = tpu.matmul %0, %1, %cst {dimension_numbers = #tpu.dot_dimension_numbers<[1], [0], [0], [1], [0, 0, 1, 1], [], []>} : vector<512x16xbf16>, vector<16x18xbf16>, vector<512x18xf32> -> vector<512x18xf32>
    %c0_3 = arith.constant 0 : index
    %c0_4 = arith.constant 0 : index
    %3 = vector.load %arg3[%c0_3, %c0_4] : memref<1x18xf32, #tpu.memory_space<vmem>>, vector<1x18xf32>
    %4 = vector.broadcast %3 : vector<1x18xf32> to vector<512x18xf32>
    %5 = arith.addf %2, %4 : vector<512x18xf32>
    %c0_5 = arith.constant 0 : index
    %c0_6 = arith.constant 0 : index
    %6 = vector.load %arg4[%c0_5, %c0_6] : memref<512x18xf32, #tpu.memory_space<vmem>>, vector<512x18xf32>
    tpu.vector_store %arg4[%c0_5, %c0_6], %5 {strides = array<i32>} : memref<512x18xf32, #tpu.memory_space<vmem>>, vector<512x18xf32>,
    return
  }
  func.func @transform_0(%arg0: i32) -> (i32, i32) {
    %c0_i32 = arith.constant 0 : i32
    %c0_i32_0 = arith.constant 0 : i32
    return %arg0, %c0_i32 : i32, i32
  }
  func.func @transform_1(%arg0: i32) -> (i32, i32) {
    %c0_i32 = arith.constant 0 : i32
    %c0_i32_0 = arith.constant 0 : i32
    %c0_i32_1 = arith.constant 0 : i32
    return %c0_i32, %c0_i32_0 : i32, i32
  }
  func.func @transform_2(%arg0: i32) -> (i32, i32) {
    %c0_i32 = arith.constant 0 : i32
    %c0_i32_0 = arith.constant 0 : i32
    %c0_i32_1 = arith.constant 0 : i32
    return %c0_i32, %c0_i32_0 : i32, i32
  }
  func.func @transform_3(%arg0: i32) -> (i32, i32) {
    %c0_i32 = arith.constant 0 : i32
    %c0_i32_0 = arith.constant 0 : i32
    return %arg0, %c0_i32 : i32, i32
  }
}

module attributes {stable_mosaic.version = 11 : i64} {
  func.func @_iou_kernel(%arg0: memref<2x3x4xf32, #tpu.memory_space<vmem>>, %arg1: memref<2x4x768xf32, #tpu.memory_space<vmem>>, %arg2: memref<2x3x768xf32, #tpu.memory_space<vmem>>) attributes {dimension_semantics = [], scalar_prefetch = 0 : i64, scratch_operands = 0 : i64, tpu.core_type = #tpu.core_type<tc>} {
    %c0 = arith.constant 0 : index
    %c0_0 = arith.constant 0 : index
    %c0_1 = arith.constant 0 : index
    %0 = vector.load %arg0[%c0, %c0_0, %c0_1] : memref<2x3x4xf32, #tpu.memory_space<vmem>>, vector<2x3x4xf32>
    %c0_2 = arith.constant 0 : index
    %c0_3 = arith.constant 0 : index
    %c0_4 = arith.constant 0 : index
    %1 = vector.load %arg1[%c0_2, %c0_3, %c0_4] : memref<2x4x768xf32, #tpu.memory_space<vmem>>, vector<2x4x768xf32>
    %2 = vector.extract_strided_slice %0 {offsets = [0, 0, 0], sizes = [2, 3, 1], strides = [1, 1, 1]} : vector<2x3x4xf32> to vector<2x3x1xf32>
    %3 = vector.extract_strided_slice %0 {offsets = [0, 0, 1], sizes = [2, 3, 1], strides = [1, 1, 1]} : vector<2x3x4xf32> to vector<2x3x1xf32>
    %4 = vector.extract_strided_slice %0 {offsets = [0, 0, 2], sizes = [2, 3, 1], strides = [1, 1, 1]} : vector<2x3x4xf32> to vector<2x3x1xf32>
    %5 = vector.extract_strided_slice %0 {offsets = [0, 0, 3], sizes = [2, 3, 1], strides = [1, 1, 1]} : vector<2x3x4xf32> to vector<2x3x1xf32>
    %6 = vector.extract_strided_slice %1 {offsets = [0, 0, 0], sizes = [2, 1, 768], strides = [1, 1, 1]} : vector<2x4x768xf32> to vector<2x1x768xf32>
    %7 = vector.extract_strided_slice %1 {offsets = [0, 1, 0], sizes = [2, 1, 768], strides = [1, 1, 1]} : vector<2x4x768xf32> to vector<2x1x768xf32>
    %8 = vector.extract_strided_slice %1 {offsets = [0, 2, 0], sizes = [2, 1, 768], strides = [1, 1, 1]} : vector<2x4x768xf32> to vector<2x1x768xf32>
    %9 = vector.extract_strided_slice %1 {offsets = [0, 3, 0], sizes = [2, 1, 768], strides = [1, 1, 1]} : vector<2x4x768xf32> to vector<2x1x768xf32>
    %10 = vector.broadcast %2 : vector<2x3x1xf32> to vector<2x3x768xf32>
    %11 = vector.broadcast %6 : vector<2x1x768xf32> to vector<2x3x768xf32>
    %12 = arith.maximumf %10, %11 : vector<2x3x768xf32>
    %13 = vector.broadcast %3 : vector<2x3x1xf32> to vector<2x3x768xf32>
    %14 = vector.broadcast %7 : vector<2x1x768xf32> to vector<2x3x768xf32>
    %15 = arith.maximumf %13, %14 : vector<2x3x768xf32>
    %16 = vector.broadcast %4 : vector<2x3x1xf32> to vector<2x3x768xf32>
    %17 = vector.broadcast %8 : vector<2x1x768xf32> to vector<2x3x768xf32>
    %18 = arith.minimumf %16, %17 : vector<2x3x768xf32>
    %19 = vector.broadcast %5 : vector<2x3x1xf32> to vector<2x3x768xf32>
    %20 = vector.broadcast %9 : vector<2x1x768xf32> to vector<2x3x768xf32>
    %21 = arith.minimumf %19, %20 : vector<2x3x768xf32>
    %22 = arith.subf %18, %12 : vector<2x3x768xf32>
    %cst = arith.constant 0.000000e+00 : f32
    %23 = vector.broadcast %cst : f32 to vector<2x3x768xf32>
    %24 = arith.maximumf %22, %23 : vector<2x3x768xf32>
    %25 = arith.subf %21, %15 : vector<2x3x768xf32>
    %cst_5 = arith.constant 0.000000e+00 : f32
    %26 = vector.broadcast %cst_5 : f32 to vector<2x3x768xf32>
    %27 = arith.maximumf %25, %26 : vector<2x3x768xf32>
    %28 = arith.mulf %24, %27 : vector<2x3x768xf32>
    %29 = arith.subf %4, %2 : vector<2x3x1xf32>
    %30 = arith.subf %5, %3 : vector<2x3x1xf32>
    %31 = arith.mulf %29, %30 : vector<2x3x1xf32>
    %32 = arith.subf %8, %6 : vector<2x1x768xf32>
    %33 = arith.subf %9, %7 : vector<2x1x768xf32>
    %34 = arith.mulf %32, %33 : vector<2x1x768xf32>
    %35 = vector.broadcast %31 : vector<2x3x1xf32> to vector<2x3x768xf32>
    %36 = vector.broadcast %34 : vector<2x1x768xf32> to vector<2x3x768xf32>
    %37 = arith.addf %35, %36 : vector<2x3x768xf32>
    %38 = arith.subf %37, %28 : vector<2x3x768xf32>
    %cst_6 = arith.constant 9.99999971E-10 : f32
    %39 = vector.broadcast %cst_6 : f32 to vector<2x3x768xf32>
    %40 = arith.maximumf %38, %39 : vector<2x3x768xf32>
    %41 = arith.divf %28, %40 : vector<2x3x768xf32>
    %c0_7 = arith.constant 0 : index
    %c0_8 = arith.constant 0 : index
    %c0_9 = arith.constant 0 : index
    %42 = vector.load %arg2[%c0_7, %c0_8, %c0_9] : memref<2x3x768xf32, #tpu.memory_space<vmem>>, vector<2x3x768xf32>
    tpu.vector_store %arg2[%c0_7, %c0_8, %c0_9], %41 {strides = array<i32>} : memref<2x3x768xf32, #tpu.memory_space<vmem>>, vector<2x3x768xf32>,
    return
  }
}

module attributes {stable_mosaic.version = 11 : i64} {
  func.func @_ce_kernel(%arg0: memref<2x2x768xf32, #tpu.memory_space<vmem>>, %arg1: memref<2x1x768xi32, #tpu.memory_space<vmem>>, %arg2: memref<2x1x1xf32, #tpu.memory_space<vmem>>) attributes {dimension_semantics = [], scalar_prefetch = 0 : i64, scratch_operands = 0 : i64, tpu.core_type = #tpu.core_type<tc>} {
    %c0 = arith.constant 0 : index
    %c0_0 = arith.constant 0 : index
    %c0_1 = arith.constant 0 : index
    %0 = vector.load %arg0[%c0, %c0_0, %c0_1] : memref<2x2x768xf32, #tpu.memory_space<vmem>>, vector<2x2x768xf32>
    %cst = arith.constant dense<0xFF800000> : vector<2x768xf32>
    %1 = vector.multi_reduction <maximumf>, %0, %cst [1] : vector<2x2x768xf32> to vector<2x768xf32>
    %2 = vector.shape_cast %1 : vector<2x768xf32> to vector<2x1x768xf32>
    %3 = vector.broadcast %2 : vector<2x1x768xf32> to vector<2x2x768xf32>
    %4 = arith.subf %0, %3 : vector<2x2x768xf32>
    %5 = math.exp %4 : vector<2x2x768xf32>
    %cst_2 = arith.constant dense<0.000000e+00> : vector<2x768xf32>
    %6 = vector.multi_reduction <add>, %5, %cst_2 [1] : vector<2x2x768xf32> to vector<2x768xf32>
    %7 = vector.shape_cast %6 : vector<2x768xf32> to vector<2x1x768xf32>
    %8 = math.log %7 : vector<2x1x768xf32>
    %9 = vector.broadcast %8 : vector<2x1x768xf32> to vector<2x2x768xf32>
    %10 = arith.subf %4, %9 : vector<2x2x768xf32>
    %c0_3 = arith.constant 0 : index
    %c0_4 = arith.constant 0 : index
    %c0_5 = arith.constant 0 : index
    %11 = vector.load %arg1[%c0_3, %c0_4, %c0_5] : memref<2x1x768xi32, #tpu.memory_space<vmem>>, vector<2x1x768xi32>
    %12 = tpu.iota {dimensions = array<i32: 1>} : vector<2x2x768xi32>
    %13 = vector.broadcast %11 : vector<2x1x768xi32> to vector<2x2x768xi32>
    %14 = arith.cmpi eq, %12, %13 : vector<2x2x768xi32>
    %15 = arith.extui %14 : vector<2x2x768xi1> to vector<2x2x768xi32>
    %16 = arith.sitofp %15 : vector<2x2x768xi32> to vector<2x2x768xf32>
    %17 = arith.mulf %10, %16 : vector<2x2x768xf32>
    %cst_6 = arith.constant dense<0.000000e+00> : vector<2x768xf32>
    %18 = vector.multi_reduction <add>, %17, %cst_6 [1] : vector<2x2x768xf32> to vector<2x768xf32>
    %19 = vector.shape_cast %18 : vector<2x768xf32> to vector<2x1x768xf32>
    %c0_i32 = arith.constant 0 : i32
    %20 = vector.broadcast %c0_i32 : i32 to vector<2x1x768xi32>
    %21 = arith.cmpi sge, %11, %20 : vector<2x1x768xi32>
    %22 = arith.extui %21 : vector<2x1x768xi1> to vector<2x1x768xi32>
    %23 = arith.sitofp %22 : vector<2x1x768xi32> to vector<2x1x768xf32>
    %24 = arith.mulf %19, %23 : vector<2x1x768xf32>
    %cst_7 = arith.constant dense<0.000000e+00> : vector<2x1xf32>
    %25 = vector.multi_reduction <add>, %24, %cst_7 [2] : vector<2x1x768xf32> to vector<2x1xf32>
    %26 = vector.shape_cast %25 : vector<2x1xf32> to vector<2x1x1xf32>
    %cst_8 = arith.constant dense<0.000000e+00> : vector<2x1xf32>
    %27 = vector.multi_reduction <add>, %23, %cst_8 [2] : vector<2x1x768xf32> to vector<2x1xf32>
    %28 = vector.shape_cast %27 : vector<2x1xf32> to vector<2x1x1xf32>
    %cst_9 = arith.constant 0.000000e+00 : f32
    %29 = vector.broadcast %cst_9 : f32 to vector<2x1x1xf32>
    %30 = arith.subf %29, %26 : vector<2x1x1xf32>
    %cst_10 = arith.constant 1.000000e+00 : f32
    %31 = vector.broadcast %cst_10 : f32 to vector<2x1x1xf32>
    %32 = arith.maximumf %28, %31 : vector<2x1x1xf32>
    %33 = arith.divf %30, %32 : vector<2x1x1xf32>
    %c0_11 = arith.constant 0 : index
    %c0_12 = arith.constant 0 : index
    %c0_13 = arith.constant 0 : index
    %34 = vector.load %arg2[%c0_11, %c0_12, %c0_13] : memref<2x1x1xf32, #tpu.memory_space<vmem>>, vector<2x1x1xf32>
    tpu.vector_store %arg2[%c0_11, %c0_12, %c0_13], %33 {strides = array<i32>} : memref<2x1x1xf32, #tpu.memory_space<vmem>>, vector<2x1x1xf32>,
    return
  }
}

module attributes {stable_mosaic.version = 11 : i64} {
  func.func @_loc_loss_kernel(%arg0: memref<2x3072xf32, #tpu.memory_space<vmem>>, %arg1: memref<2x3072xf32, #tpu.memory_space<vmem>>, %arg2: memref<2x3072xf32, #tpu.memory_space<vmem>>, %arg3: memref<2x1xf32, #tpu.memory_space<vmem>>) attributes {dimension_semantics = [], scalar_prefetch = 0 : i64, scratch_operands = 0 : i64, tpu.core_type = #tpu.core_type<tc>} {
    %c0 = arith.constant 0 : index
    %c0_0 = arith.constant 0 : index
    %0 = vector.load %arg1[%c0, %c0_0] : memref<2x3072xf32, #tpu.memory_space<vmem>>, vector<2x3072xf32>
    %c0_1 = arith.constant 0 : index
    %c0_2 = arith.constant 0 : index
    %1 = vector.load %arg0[%c0_1, %c0_2] : memref<2x3072xf32, #tpu.memory_space<vmem>>, vector<2x3072xf32>
    %2 = arith.subf %0, %1 : vector<2x3072xf32>
    %3 = math.absf %2 : vector<2x3072xf32>
    %cst = arith.constant 1.000000e+00 : f32
    %4 = vector.broadcast %cst : f32 to vector<2x3072xf32>
    %5 = arith.cmpf olt, %3, %4 : vector<2x3072xf32>
    %cst_3 = arith.constant 5.000000e-01 : f32
    %6 = vector.broadcast %cst_3 : f32 to vector<2x3072xf32>
    %7 = arith.mulf %6, %3 : vector<2x3072xf32>
    %8 = arith.mulf %7, %3 : vector<2x3072xf32>
    %cst_4 = arith.constant 5.000000e-01 : f32
    %9 = vector.broadcast %cst_4 : f32 to vector<2x3072xf32>
    %10 = arith.subf %3, %9 : vector<2x3072xf32>
    %11 = arith.select %5, %8, %10 : vector<2x3072xi1>, vector<2x3072xf32>
    %c0_5 = arith.constant 0 : index
    %c0_6 = arith.constant 0 : index
    %12 = vector.load %arg2[%c0_5, %c0_6] : memref<2x3072xf32, #tpu.memory_space<vmem>>, vector<2x3072xf32>
    %13 = arith.mulf %11, %12 : vector<2x3072xf32>
    %cst_7 = arith.constant dense<0.000000e+00> : vector<2xf32>
    %14 = vector.multi_reduction <add>, %13, %cst_7 [1] : vector<2x3072xf32> to vector<2xf32>
    %15 = vector.shape_cast %14 : vector<2xf32> to vector<2x1xf32>
    %c0_8 = arith.constant 0 : index
    %c0_9 = arith.constant 0 : index
    %16 = vector.load %arg2[%c0_8, %c0_9] : memref<2x3072xf32, #tpu.memory_space<vmem>>, vector<2x3072xf32>
    %cst_10 = arith.constant dense<0.000000e+00> : vector<2xf32>
    %17 = vector.multi_reduction <add>, %16, %cst_10 [1] : vector<2x3072xf32> to vector<2xf32>
    %18 = vector.shape_cast %17 : vector<2xf32> to vector<2x1xf32>
    %cst_11 = arith.constant 2.500000e-01 : f32
    %19 = vector.broadcast %cst_11 : f32 to vector<2x1xf32>
    %20 = arith.mulf %18, %19 : vector<2x1xf32>
    %cst_12 = arith.constant 1.000000e+00 : f32
    %21 = vector.broadcast %cst_12 : f32 to vector<2x1xf32>
    %22 = arith.maximumf %20, %21 : vector<2x1xf32>
    %23 = arith.divf %15, %22 : vector<2x1xf32>
    %c0_13 = arith.constant 0 : index
    %c0_14 = arith.constant 0 : index
    %24 = vector.load %arg3[%c0_13, %c0_14] : memref<2x1xf32, #tpu.memory_space<vmem>>, vector<2x1xf32>
    tpu.vector_store %arg3[%c0_13, %c0_14], %23 {strides = array<i32>} : memref<2x1xf32, #tpu.memory_space<vmem>>, vector<2x1xf32>,
    return
  }
}

module attributes {stable_mosaic.version = 11 : i64} {
  func.func @_iou_kernel(%arg0: memref<2x3x4xf32, #tpu.memory_space<vmem>>, %arg1: memref<2x4x35xf32, #tpu.memory_space<vmem>>, %arg2: memref<2x3x35xf32, #tpu.memory_space<vmem>>) attributes {dimension_semantics = [], scalar_prefetch = 0 : i64, scratch_operands = 0 : i64, tpu.core_type = #tpu.core_type<tc>} {
    %c0 = arith.constant 0 : index
    %c0_0 = arith.constant 0 : index
    %c0_1 = arith.constant 0 : index
    %0 = vector.load %arg0[%c0, %c0_0, %c0_1] : memref<2x3x4xf32, #tpu.memory_space<vmem>>, vector<2x3x4xf32>
    %c0_2 = arith.constant 0 : index
    %c0_3 = arith.constant 0 : index
    %c0_4 = arith.constant 0 : index
    %1 = vector.load %arg1[%c0_2, %c0_3, %c0_4] : memref<2x4x35xf32, #tpu.memory_space<vmem>>, vector<2x4x35xf32>
    %2 = vector.extract_strided_slice %0 {offsets = [0, 0, 0], sizes = [2, 3, 1], strides = [1, 1, 1]} : vector<2x3x4xf32> to vector<2x3x1xf32>
    %3 = vector.extract_strided_slice %0 {offsets = [0, 0, 1], sizes = [2, 3, 1], strides = [1, 1, 1]} : vector<2x3x4xf32> to vector<2x3x1xf32>
    %4 = vector.extract_strided_slice %0 {offsets = [0, 0, 2], sizes = [2, 3, 1], strides = [1, 1, 1]} : vector<2x3x4xf32> to vector<2x3x1xf32>
    %5 = vector.extract_strided_slice %0 {offsets = [0, 0, 3], sizes = [2, 3, 1], strides = [1, 1, 1]} : vector<2x3x4xf32> to vector<2x3x1xf32>
    %6 = vector.extract_strided_slice %1 {offsets = [0, 0, 0], sizes = [2, 1, 35], strides = [1, 1, 1]} : vector<2x4x35xf32> to vector<2x1x35xf32>
    %7 = vector.extract_strided_slice %1 {offsets = [0, 1, 0], sizes = [2, 1, 35], strides = [1, 1, 1]} : vector<2x4x35xf32> to vector<2x1x35xf32>
    %8 = vector.extract_strided_slice %1 {offsets = [0, 2, 0], sizes = [2, 1, 35], strides = [1, 1, 1]} : vector<2x4x35xf32> to vector<2x1x35xf32>
    %9 = vector.extract_strided_slice %1 {offsets = [0, 3, 0], sizes = [2, 1, 35], strides = [1, 1, 1]} : vector<2x4x35xf32> to vector<2x1x35xf32>
    %10 = vector.broadcast %2 : vector<2x3x1xf32> to vector<2x3x35xf32>
    %11 = vector.broadcast %6 : vector<2x1x35xf32> to vector<2x3x35xf32>
    %12 = arith.maximumf %10, %11 : vector<2x3x35xf32>
    %13 = vector.broadcast %3 : vector<2x3x1xf32> to vector<2x3x35xf32>
    %14 = vector.broadcast %7 : vector<2x1x35xf32> to vector<2x3x35xf32>
    %15 = arith.maximumf %13, %14 : vector<2x3x35xf32>
    %16 = vector.broadcast %4 : vector<2x3x1xf32> to vector<2x3x35xf32>
    %17 = vector.broadcast %8 : vector<2x1x35xf32> to vector<2x3x35xf32>
    %18 = arith.minimumf %16, %17 : vector<2x3x35xf32>
    %19 = vector.broadcast %5 : vector<2x3x1xf32> to vector<2x3x35xf32>
    %20 = vector.broadcast %9 : vector<2x1x35xf32> to vector<2x3x35xf32>
    %21 = arith.minimumf %19, %20 : vector<2x3x35xf32>
    %22 = arith.subf %18, %12 : vector<2x3x35xf32>
    %cst = arith.constant 0.000000e+00 : f32
    %23 = vector.broadcast %cst : f32 to vector<2x3x35xf32>
    %24 = arith.maximumf %22, %23 : vector<2x3x35xf32>
    %25 = arith.subf %21, %15 : vector<2x3x35xf32>
    %cst_5 = arith.constant 0.000000e+00 : f32
    %26 = vector.broadcast %cst_5 : f32 to vector<2x3x35xf32>
    %27 = arith.maximumf %25, %26 : vector<2x3x35xf32>
    %28 = arith.mulf %24, %27 : vector<2x3x35xf32>
    %29 = arith.subf %4, %2 : vector<2x3x1xf32>
    %30 = arith.subf %5, %3 : vector<2x3x1xf32>
    %31 = arith.mulf %29, %30 : vector<2x3x1xf32>
    %32 = arith.subf %8, %6 : vector<2x1x35xf32>
    %33 = arith.subf %9, %7 : vector<2x1x35xf32>
    %34 = arith.mulf %32, %33 : vector<2x1x35xf32>
    %35 = vector.broadcast %31 : vector<2x3x1xf32> to vector<2x3x35xf32>
    %36 = vector.broadcast %34 : vector<2x1x35xf32> to vector<2x3x35xf32>
    %37 = arith.addf %35, %36 : vector<2x3x35xf32>
    %38 = arith.subf %37, %28 : vector<2x3x35xf32>
    %cst_6 = arith.constant 9.99999971E-10 : f32
    %39 = vector.broadcast %cst_6 : f32 to vector<2x3x35xf32>
    %40 = arith.maximumf %38, %39 : vector<2x3x35xf32>
    %41 = arith.divf %28, %40 : vector<2x3x35xf32>
    %c0_7 = arith.constant 0 : index
    %c0_8 = arith.constant 0 : index
    %c0_9 = arith.constant 0 : index
    %42 = vector.load %arg2[%c0_7, %c0_8, %c0_9] : memref<2x3x35xf32, #tpu.memory_space<vmem>>, vector<2x3x35xf32>
    tpu.vector_store %arg2[%c0_7, %c0_8, %c0_9], %41 {strides = array<i32>} : memref<2x3x35xf32, #tpu.memory_space<vmem>>, vector<2x3x35xf32>,
    return
  }
}

module attributes {stable_mosaic.version = 11 : i64} {
  func.func @_bmm_kernel(%arg0: i32, %arg1: memref<1x140x256xbf16, #tpu.memory_space<vmem>>, %arg2: memref<1x256x16xbf16, #tpu.memory_space<vmem>>, %arg3: memref<1x140x16xf32, #tpu.memory_space<vmem>>) attributes {dimension_semantics = [#tpu.dimension_semantics<parallel>], iteration_bounds = array<i64: 2>, scalar_prefetch = 0 : i64, scratch_operands = 0 : i64, tpu.core_type = #tpu.core_type<tc>, window_params = [{transform_indices = @transform_0, window_bounds = array<i64: 1, 140, 256>}, {transform_indices = @transform_1, window_bounds = array<i64: 1, 256, 16>}, {transform_indices = @transform_2, window_bounds = array<i64: 1, 140, 16>}]} {
    %c0 = arith.constant 0 : index
    %c0_0 = arith.constant 0 : index
    %c0_1 = arith.constant 0 : index
    %0 = vector.load %arg1[%c0, %c0_0, %c0_1] : memref<1x140x256xbf16, #tpu.memory_space<vmem>>, vector<1x140x256xbf16>
    %c0_2 = arith.constant 0 : index
    %c0_3 = arith.constant 0 : index
    %c0_4 = arith.constant 0 : index
    %1 = vector.load %arg2[%c0_2, %c0_3, %c0_4] : memref<1x256x16xbf16, #tpu.memory_space<vmem>>, vector<1x256x16xbf16>
    %cst = arith.constant dense<0.000000e+00> : vector<1x140x16xf32>
    %2 = tpu.matmul %0, %1, %cst {dimension_numbers = #tpu.dot_dimension_numbers<[2], [1], [1], [2], [0, 0, 0, 1, 1, 2], [0], [0]>} : vector<1x140x256xbf16>, vector<1x256x16xbf16>, vector<1x140x16xf32> -> vector<1x140x16xf32>
    %c0_5 = arith.constant 0 : index
    %c0_6 = arith.constant 0 : index
    %c0_7 = arith.constant 0 : index
    %3 = vector.load %arg3[%c0_5, %c0_6, %c0_7] : memref<1x140x16xf32, #tpu.memory_space<vmem>>, vector<1x140x16xf32>
    tpu.vector_store %arg3[%c0_5, %c0_6, %c0_7], %2 {strides = array<i32>} : memref<1x140x16xf32, #tpu.memory_space<vmem>>, vector<1x140x16xf32>,
    return
  }
  func.func @transform_0(%arg0: i32) -> (i32, i32, i32) {
    %c0_i32 = arith.constant 0 : i32
    %c0_i32_0 = arith.constant 0 : i32
    %c0_i32_1 = arith.constant 0 : i32
    return %arg0, %c0_i32, %c0_i32_0 : i32, i32, i32
  }
  func.func @transform_1(%arg0: i32) -> (i32, i32, i32) {
    %c0_i32 = arith.constant 0 : i32
    %c0_i32_0 = arith.constant 0 : i32
    %c0_i32_1 = arith.constant 0 : i32
    return %arg0, %c0_i32, %c0_i32_0 : i32, i32, i32
  }
  func.func @transform_2(%arg0: i32) -> (i32, i32, i32) {
    %c0_i32 = arith.constant 0 : i32
    %c0_i32_0 = arith.constant 0 : i32
    %c0_i32_1 = arith.constant 0 : i32
    return %arg0, %c0_i32, %c0_i32_0 : i32, i32, i32
  }
}

module attributes {stable_mosaic.version = 11 : i64} {
  func.func @_mm_bias_kernel(%arg0: i32, %arg1: memref<70x64xbf16, #tpu.memory_space<vmem>>, %arg2: memref<64x32xbf16, #tpu.memory_space<vmem>>, %arg3: memref<1x32xf32, #tpu.memory_space<vmem>>, %arg4: memref<70x32xf32, #tpu.memory_space<vmem>>) attributes {dimension_semantics = [#tpu.dimension_semantics<parallel>], iteration_bounds = array<i64: 1>, scalar_prefetch = 0 : i64, scratch_operands = 0 : i64, tpu.core_type = #tpu.core_type<tc>, window_params = [{transform_indices = @transform_0, window_bounds = array<i64: 70, 64>}, {pipeline_mode = #tpu.pipeline_mode<synchronous>, transform_indices = @transform_1, window_bounds = array<i64: 64, 32>}, {pipeline_mode = #tpu.pipeline_mode<synchronous>, transform_indices = @transform_2, window_bounds = array<i64: 1, 32>}, {transform_indices = @transform_3, window_bounds = array<i64: 70, 32>}]} {
    %c0 = arith.constant 0 : index
    %c0_0 = arith.constant 0 : index
    %0 = vector.load %arg1[%c0, %c0_0] : memref<70x64xbf16, #tpu.memory_space<vmem>>, vector<70x64xbf16>
    %c0_1 = arith.constant 0 : index
    %c0_2 = arith.constant 0 : index
    %1 = vector.load %arg2[%c0_1, %c0_2] : memref<64x32xbf16, #tpu.memory_space<vmem>>, vector<64x32xbf16>
    %cst = arith.constant dense<0.000000e+00> : vector<70x32xf32>
    %2 = tpu.matmul %0, %1, %cst {dimension_numbers = #tpu.dot_dimension_numbers<[1], [0], [0], [1], [0, 0, 1, 1], [], []>} : vector<70x64xbf16>, vector<64x32xbf16>, vector<70x32xf32> -> vector<70x32xf32>
    %c0_3 = arith.constant 0 : index
    %c0_4 = arith.constant 0 : index
    %3 = vector.load %arg3[%c0_3, %c0_4] : memref<1x32xf32, #tpu.memory_space<vmem>>, vector<1x32xf32>
    %4 = vector.broadcast %3 : vector<1x32xf32> to vector<70x32xf32>
    %5 = arith.addf %2, %4 : vector<70x32xf32>
    %cst_5 = arith.constant 0.000000e+00 : f32
    %6 = vector.broadcast %cst_5 : f32 to vector<70x32xf32>
    %7 = arith.maximumf %5, %6 : vector<70x32xf32>
    %c0_6 = arith.constant 0 : index
    %c0_7 = arith.constant 0 : index
    %8 = vector.load %arg4[%c0_6, %c0_7] : memref<70x32xf32, #tpu.memory_space<vmem>>, vector<70x32xf32>
    tpu.vector_store %arg4[%c0_6, %c0_7], %7 {strides = array<i32>} : memref<70x32xf32, #tpu.memory_space<vmem>>, vector<70x32xf32>,
    return
  }
  func.func @transform_0(%arg0: i32) -> (i32, i32) {
    %c0_i32 = arith.constant 0 : i32
    %c0_i32_0 = arith.constant 0 : i32
    return %arg0, %c0_i32 : i32, i32
  }
  func.func @transform_1(%arg0: i32) -> (i32, i32) {
    %c0_i32 = arith.constant 0 : i32
    %c0_i32_0 = arith.constant 0 : i32
    %c0_i32_1 = arith.constant 0 : i32
    return %c0_i32, %c0_i32_0 : i32, i32
  }
  func.func @transform_2(%arg0: i32) -> (i32, i32) {
    %c0_i32 = arith.constant 0 : i32
    %c0_i32_0 = arith.constant 0 : i32
    %c0_i32_1 = arith.constant 0 : i32
    return %c0_i32, %c0_i32_0 : i32, i32
  }
  func.func @transform_3(%arg0: i32) -> (i32, i32) {
    %c0_i32 = arith.constant 0 : i32
    %c0_i32_0 = arith.constant 0 : i32
    return %arg0, %c0_i32 : i32, i32
  }
}

module attributes {stable_mosaic.version = 11 : i64} {
  func.func @_mm_bias_kernel(%arg0: i32, %arg1: memref<70x32xbf16, #tpu.memory_space<vmem>>, %arg2: memref<32x20xbf16, #tpu.memory_space<vmem>>, %arg3: memref<1x20xf32, #tpu.memory_space<vmem>>, %arg4: memref<70x20xf32, #tpu.memory_space<vmem>>) attributes {dimension_semantics = [#tpu.dimension_semantics<parallel>], iteration_bounds = array<i64: 1>, scalar_prefetch = 0 : i64, scratch_operands = 0 : i64, tpu.core_type = #tpu.core_type<tc>, window_params = [{transform_indices = @transform_0, window_bounds = array<i64: 70, 32>}, {pipeline_mode = #tpu.pipeline_mode<synchronous>, transform_indices = @transform_1, window_bounds = array<i64: 32, 20>}, {pipeline_mode = #tpu.pipeline_mode<synchronous>, transform_indices = @transform_2, window_bounds = array<i64: 1, 20>}, {transform_indices = @transform_3, window_bounds = array<i64: 70, 20>}]} {
    %c0 = arith.constant 0 : index
    %c0_0 = arith.constant 0 : index
    %0 = vector.load %arg1[%c0, %c0_0] : memref<70x32xbf16, #tpu.memory_space<vmem>>, vector<70x32xbf16>
    %c0_1 = arith.constant 0 : index
    %c0_2 = arith.constant 0 : index
    %1 = vector.load %arg2[%c0_1, %c0_2] : memref<32x20xbf16, #tpu.memory_space<vmem>>, vector<32x20xbf16>
    %cst = arith.constant dense<0.000000e+00> : vector<70x20xf32>
    %2 = tpu.matmul %0, %1, %cst {dimension_numbers = #tpu.dot_dimension_numbers<[1], [0], [0], [1], [0, 0, 1, 1], [], []>} : vector<70x32xbf16>, vector<32x20xbf16>, vector<70x20xf32> -> vector<70x20xf32>
    %c0_3 = arith.constant 0 : index
    %c0_4 = arith.constant 0 : index
    %3 = vector.load %arg3[%c0_3, %c0_4] : memref<1x20xf32, #tpu.memory_space<vmem>>, vector<1x20xf32>
    %4 = vector.broadcast %3 : vector<1x20xf32> to vector<70x20xf32>
    %5 = arith.addf %2, %4 : vector<70x20xf32>
    %c0_5 = arith.constant 0 : index
    %c0_6 = arith.constant 0 : index
    %6 = vector.load %arg4[%c0_5, %c0_6] : memref<70x20xf32, #tpu.memory_space<vmem>>, vector<70x20xf32>
    tpu.vector_store %arg4[%c0_5, %c0_6], %5 {strides = array<i32>} : memref<70x20xf32, #tpu.memory_space<vmem>>, vector<70x20xf32>,
    return
  }
  func.func @transform_0(%arg0: i32) -> (i32, i32) {
    %c0_i32 = arith.constant 0 : i32
    %c0_i32_0 = arith.constant 0 : i32
    return %arg0, %c0_i32 : i32, i32
  }
  func.func @transform_1(%arg0: i32) -> (i32, i32) {
    %c0_i32 = arith.constant 0 : i32
    %c0_i32_0 = arith.constant 0 : i32
    %c0_i32_1 = arith.constant 0 : i32
    return %c0_i32, %c0_i32_0 : i32, i32
  }
  func.func @transform_2(%arg0: i32) -> (i32, i32) {
    %c0_i32 = arith.constant 0 : i32
    %c0_i32_0 = arith.constant 0 : i32
    %c0_i32_1 = arith.constant 0 : i32
    return %c0_i32, %c0_i32_0 : i32, i32
  }
  func.func @transform_3(%arg0: i32) -> (i32, i32) {
    %c0_i32 = arith.constant 0 : i32
    %c0_i32_0 = arith.constant 0 : i32
    return %arg0, %c0_i32 : i32, i32
  }
}

module attributes {stable_mosaic.version = 11 : i64} {
  func.func @_loc_loss_kernel(%arg0: memref<2x140xf32, #tpu.memory_space<vmem>>, %arg1: memref<2x140xf32, #tpu.memory_space<vmem>>, %arg2: memref<2x140xf32, #tpu.memory_space<vmem>>, %arg3: memref<2x1xf32, #tpu.memory_space<vmem>>) attributes {dimension_semantics = [], scalar_prefetch = 0 : i64, scratch_operands = 0 : i64, tpu.core_type = #tpu.core_type<tc>} {
    %c0 = arith.constant 0 : index
    %c0_0 = arith.constant 0 : index
    %0 = vector.load %arg1[%c0, %c0_0] : memref<2x140xf32, #tpu.memory_space<vmem>>, vector<2x140xf32>
    %c0_1 = arith.constant 0 : index
    %c0_2 = arith.constant 0 : index
    %1 = vector.load %arg0[%c0_1, %c0_2] : memref<2x140xf32, #tpu.memory_space<vmem>>, vector<2x140xf32>
    %2 = arith.subf %0, %1 : vector<2x140xf32>
    %3 = math.absf %2 : vector<2x140xf32>
    %cst = arith.constant 1.000000e+00 : f32
    %4 = vector.broadcast %cst : f32 to vector<2x140xf32>
    %5 = arith.cmpf olt, %3, %4 : vector<2x140xf32>
    %cst_3 = arith.constant 5.000000e-01 : f32
    %6 = vector.broadcast %cst_3 : f32 to vector<2x140xf32>
    %7 = arith.mulf %6, %3 : vector<2x140xf32>
    %8 = arith.mulf %7, %3 : vector<2x140xf32>
    %cst_4 = arith.constant 5.000000e-01 : f32
    %9 = vector.broadcast %cst_4 : f32 to vector<2x140xf32>
    %10 = arith.subf %3, %9 : vector<2x140xf32>
    %11 = arith.select %5, %8, %10 : vector<2x140xi1>, vector<2x140xf32>
    %c0_5 = arith.constant 0 : index
    %c0_6 = arith.constant 0 : index
    %12 = vector.load %arg2[%c0_5, %c0_6] : memref<2x140xf32, #tpu.memory_space<vmem>>, vector<2x140xf32>
    %13 = arith.mulf %11, %12 : vector<2x140xf32>
    %cst_7 = arith.constant dense<0.000000e+00> : vector<2xf32>
    %14 = vector.multi_reduction <add>, %13, %cst_7 [1] : vector<2x140xf32> to vector<2xf32>
    %15 = vector.shape_cast %14 : vector<2xf32> to vector<2x1xf32>
    %c0_8 = arith.constant 0 : index
    %c0_9 = arith.constant 0 : index
    %16 = vector.load %arg2[%c0_8, %c0_9] : memref<2x140xf32, #tpu.memory_space<vmem>>, vector<2x140xf32>
    %cst_10 = arith.constant dense<0.000000e+00> : vector<2xf32>
    %17 = vector.multi_reduction <add>, %16, %cst_10 [1] : vector<2x140xf32> to vector<2xf32>
    %18 = vector.shape_cast %17 : vector<2xf32> to vector<2x1xf32>
    %cst_11 = arith.constant 2.500000e-01 : f32
    %19 = vector.broadcast %cst_11 : f32 to vector<2x1xf32>
    %20 = arith.mulf %18, %19 : vector<2x1xf32>
    %cst_12 = arith.constant 1.000000e+00 : f32
    %21 = vector.broadcast %cst_12 : f32 to vector<2x1xf32>
    %22 = arith.maximumf %20, %21 : vector<2x1xf32>
    %23 = arith.divf %15, %22 : vector<2x1xf32>
    %c0_13 = arith.constant 0 : index
    %c0_14 = arith.constant 0 : index
    %24 = vector.load %arg3[%c0_13, %c0_14] : memref<2x1xf32, #tpu.memory_space<vmem>>, vector<2x1xf32>
    tpu.vector_store %arg3[%c0_13, %c0_14], %23 {strides = array<i32>} : memref<2x1xf32, #tpu.memory_space<vmem>>, vector<2x1xf32>,
    return
  }
}

module attributes {stable_mosaic.version = 11 : i64} {
  func.func @_ce_kernel(%arg0: memref<2x4x35xf32, #tpu.memory_space<vmem>>, %arg1: memref<2x1x35xi32, #tpu.memory_space<vmem>>, %arg2: memref<2x1x1xf32, #tpu.memory_space<vmem>>) attributes {dimension_semantics = [], scalar_prefetch = 0 : i64, scratch_operands = 0 : i64, tpu.core_type = #tpu.core_type<tc>} {
    %c0 = arith.constant 0 : index
    %c0_0 = arith.constant 0 : index
    %c0_1 = arith.constant 0 : index
    %0 = vector.load %arg0[%c0, %c0_0, %c0_1] : memref<2x4x35xf32, #tpu.memory_space<vmem>>, vector<2x4x35xf32>
    %cst = arith.constant dense<0xFF800000> : vector<2x35xf32>
    %1 = vector.multi_reduction <maximumf>, %0, %cst [1] : vector<2x4x35xf32> to vector<2x35xf32>
    %2 = vector.shape_cast %1 : vector<2x35xf32> to vector<2x1x35xf32>
    %3 = vector.broadcast %2 : vector<2x1x35xf32> to vector<2x4x35xf32>
    %4 = arith.subf %0, %3 : vector<2x4x35xf32>
    %5 = math.exp %4 : vector<2x4x35xf32>
    %cst_2 = arith.constant dense<0.000000e+00> : vector<2x35xf32>
    %6 = vector.multi_reduction <add>, %5, %cst_2 [1] : vector<2x4x35xf32> to vector<2x35xf32>
    %7 = vector.shape_cast %6 : vector<2x35xf32> to vector<2x1x35xf32>
    %8 = math.log %7 : vector<2x1x35xf32>
    %9 = vector.broadcast %8 : vector<2x1x35xf32> to vector<2x4x35xf32>
    %10 = arith.subf %4, %9 : vector<2x4x35xf32>
    %c0_3 = arith.constant 0 : index
    %c0_4 = arith.constant 0 : index
    %c0_5 = arith.constant 0 : index
    %11 = vector.load %arg1[%c0_3, %c0_4, %c0_5] : memref<2x1x35xi32, #tpu.memory_space<vmem>>, vector<2x1x35xi32>
    %12 = tpu.iota {dimensions = array<i32: 1>} : vector<2x4x35xi32>
    %13 = vector.broadcast %11 : vector<2x1x35xi32> to vector<2x4x35xi32>
    %14 = arith.cmpi eq, %12, %13 : vector<2x4x35xi32>
    %15 = arith.extui %14 : vector<2x4x35xi1> to vector<2x4x35xi32>
    %16 = arith.sitofp %15 : vector<2x4x35xi32> to vector<2x4x35xf32>
    %17 = arith.mulf %10, %16 : vector<2x4x35xf32>
    %cst_6 = arith.constant dense<0.000000e+00> : vector<2x35xf32>
    %18 = vector.multi_reduction <add>, %17, %cst_6 [1] : vector<2x4x35xf32> to vector<2x35xf32>
    %19 = vector.shape_cast %18 : vector<2x35xf32> to vector<2x1x35xf32>
    %c0_i32 = arith.constant 0 : i32
    %20 = vector.broadcast %c0_i32 : i32 to vector<2x1x35xi32>
    %21 = arith.cmpi sge, %11, %20 : vector<2x1x35xi32>
    %22 = arith.extui %21 : vector<2x1x35xi1> to vector<2x1x35xi32>
    %23 = arith.sitofp %22 : vector<2x1x35xi32> to vector<2x1x35xf32>
    %24 = arith.mulf %19, %23 : vector<2x1x35xf32>
    %cst_7 = arith.constant dense<0.000000e+00> : vector<2x1xf32>
    %25 = vector.multi_reduction <add>, %24, %cst_7 [2] : vector<2x1x35xf32> to vector<2x1xf32>
    %26 = vector.shape_cast %25 : vector<2x1xf32> to vector<2x1x1xf32>
    %cst_8 = arith.constant dense<0.000000e+00> : vector<2x1xf32>
    %27 = vector.multi_reduction <add>, %23, %cst_8 [2] : vector<2x1x35xf32> to vector<2x1xf32>
    %28 = vector.shape_cast %27 : vector<2x1xf32> to vector<2x1x1xf32>
    %cst_9 = arith.constant 0.000000e+00 : f32
    %29 = vector.broadcast %cst_9 : f32 to vector<2x1x1xf32>
    %30 = arith.subf %29, %26 : vector<2x1x1xf32>
    %cst_10 = arith.constant 1.000000e+00 : f32
    %31 = vector.broadcast %cst_10 : f32 to vector<2x1x1xf32>
    %32 = arith.maximumf %28, %31 : vector<2x1x1xf32>
    %33 = arith.divf %30, %32 : vector<2x1x1xf32>
    %c0_11 = arith.constant 0 : index
    %c0_12 = arith.constant 0 : index
    %c0_13 = arith.constant 0 : index
    %34 = vector.load %arg2[%c0_11, %c0_12, %c0_13] : memref<2x1x1xf32, #tpu.memory_space<vmem>>, vector<2x1x1xf32>
    tpu.vector_store %arg2[%c0_11, %c0_12, %c0_13], %33 {strides = array<i32>} : memref<2x1x1xf32, #tpu.memory_space<vmem>>, vector<2x1x1xf32>,
    return
  }
}

</mosaic_0001>

<bundles_post_ra>
// kernel: forward.12
= control target key start
LH: loop header
LB: loop body
LE: loop exit
PB: predicated region body
PF: predicated region fallthrough
CT: control target
= control target key end

     0   :  { %vm360_vm0 = vcmask 1041408   ;;  %vm263_vm1 = vcmask 293888   ;;  %vm597_vm2 = vcmask 130048   ;;  %s1360_s1 = inlined_call_operand.vmem [shape: bf16[36,16], index: 1, kind: input, shape index: {}]   ;;  %s1361_s2 = inlined_call_operand.vmem [shape: f32[1,16], index: 2, kind: input, shape index: {}]   ;;  %s1362_s0 = inlined_call_operand.vmem [shape: bf16[512,36], index: 0, kind: input, shape index: {}]   ;;  %s1363_s3 = inlined_call_operand.vmem [shape: f32[512,16], index: 3, kind: output, shape index: {}]  }
   0x1   :  { %v83_v0 = vld [vmem:[%s1360_s1 + $0x10] sm:$0x3]  ;;  %v867_v4 = vld [vmem:[%s1360_s1 + $0x8] sm:$0xff]  ;;  %v866_v5 = vld [vmem:[%s1360_s1] sm:$0xff] }
   0x2   :  { %v257_v1 = vunpack.c.l.b16 %v83_v0  ;;  %v834_v6 = vld [vmem:[%s1362_s0] sm:$0xff]  ;;  %v835_v10 = vld [vmem:[%s1362_s0 + $0x8] sm:$0xff]  ;;  %v836_v14 = vld [vmem:[%s1362_s0 + $0x10] sm:$0xff] }
   0x3   :  { %v842_v7 = vld [vmem:[%s1362_s0 + $0x40] sm:$0xff]  ;;  %v843_v11 = vld [vmem:[%s1362_s0 + $0x48] sm:$0xff]  ;;  %v844_v15 = vld [vmem:[%s1362_s0 + $0x50] sm:$0xff] }
   0x4   :  { %v260_v2 = vpack.c.b16 %v257_v1, %v257_v1  ;;  %v850_v8 = vld [vmem:[%s1362_s0 + $0x80] sm:$0xff]  ;;  %v851_v12 = vld [vmem:[%s1362_s0 + $0x88] sm:$0xff]  ;;  %v852_v16 = vld [vmem:[%s1362_s0 + $0x90] sm:$0xff] }
   0x5   :  { %v858_v9 = vld [vmem:[%s1362_s0 + $0xc0] sm:$0xff]  ;;  %v859_v13 = vld [vmem:[%s1362_s0 + $0xc8] sm:$0xff]  ;;  %v860_v17 = vld [vmem:[%s1362_s0 + $0xd0] sm:$0xff] }
   0x6   :  { %v362_v3 = vsel %vm360_vm0, %v260_v2, 0  ;;  %v837_v18 = vld [vmem:[%s1362_s0 + $0x18] sm:$0xff]  ;;  %v838_v22 = vld [vmem:[%s1362_s0 + $0x20] sm:$0xff]  ;;  %v839_v26 = vld [vmem:[%s1362_s0 + $0x28] sm:$0xff] }
   0x7   :  { %369 = vmatpush.bf16.msra.mxu0 %v362_v3  ;;  %868 = vmatpush.bf16.msra.mxu1 %v362_v3  ;;  %v845_v19 = vld [vmem:[%s1362_s0 + $0x58] sm:$0xff]  ;;  %v846_v23 = vld [vmem:[%s1362_s0 + $0x60] sm:$0xff]  ;;  %v847_v27 = vld [vmem:[%s1362_s0 + $0x68] sm:$0xff] }
   0x8   :  { %869 = vmatpush.bf16.msra.mxu2 %v362_v3  ;;  %870 = vmatpush.bf16.msra.mxu3 %v362_v3  ;;  %v853_v20 = vld [vmem:[%s1362_s0 + $0x98] sm:$0xff]  ;;  %v854_v24 = vld [vmem:[%s1362_s0 + $0xa0] sm:$0xff]  ;;  %v855_v28 = vld [vmem:[%s1362_s0 + $0xa8] sm:$0xff] }
   0x9   :  { %v861_v21 = vld [vmem:[%s1362_s0 + $0xd8] sm:$0xff]  ;;  %v862_v25 = vld [vmem:[%s1362_s0 + $0xe0] sm:$0xff]  ;;  %v863_v29 = vld [vmem:[%s1362_s0 + $0xe8] sm:$0xff] }
   0xa   :  { %v840_v30 = vld [vmem:[%s1362_s0 + $0x30] sm:$0xff]  ;;  %v841_v34 = vld [vmem:[%s1362_s0 + $0x38] sm:$0xff]  ;;  %v1038_v38 = vld [vmem:[%s1361_s2] ss:$0 sm:$0xff] }
   0xb   :  { %370 = vmatpush.bf16.msra.mxu0 %v867_v4  ;;  %871 = vmatpush.bf16.msra.mxu1 %v867_v4  ;;  %v848_v31 = vld [vmem:[%s1362_s0 + $0x70] sm:$0xff]  ;;  %v849_v35 = vld [vmem:[%s1362_s0 + $0x78] sm:$0xff] }
   0xc   :  { %872 = vmatpush.bf16.msra.mxu2 %v867_v4  ;;  %873 = vmatpush.bf16.msra.mxu3 %v867_v4  ;;  %v856_v32 = vld [vmem:[%s1362_s0 + $0xb0] sm:$0xff]  ;;  %v857_v36 = vld [vmem:[%s1362_s0 + $0xb8] sm:$0xff] }
   0xd   :  { %v864_v33 = vld [vmem:[%s1362_s0 + $0xf0] sm:$0xff]  ;;  %v865_v37 = vld [vmem:[%s1362_s0 + $0xf8] sm:$0xff] }
   0xf   :  { %371 = vmatpush.bf16.msra.mxu0 %v866_v5  ;;  %874 = vmatpush.bf16.msra.mxu1 %v866_v5 }
  0x10   :  { %875 = vmatpush.bf16.msra.mxu2 %v866_v5  ;;  %876 = vmatpush.bf16.msra.mxu3 %v866_v5 }
  0x12   :  { %802 = vmatmul.msk.bf16.vlgmr.msra.gmra.mxu0 %vm263_vm1, %v834_v6  ;;  %810 = vmatmul.msk.bf16.vlgmr.msra.gmra.mxu1 %vm263_vm1, %v842_v7 }
  0x13   :  { %818 = vmatmul.msk.bf16.vlgmr.msra.gmra.mxu2 %vm263_vm1, %v850_v8  ;;  %826 = vmatmul.msk.bf16.vlgmr.msra.gmra.mxu3 %vm263_vm1, %v858_v9 }
  0x22   :  { %803 = vmatmul.msk.bf16.gmra.mxu0 %vm263_vm1, %v835_v10  ;;  %811 = vmatmul.msk.bf16.gmra.mxu1 %vm263_vm1, %v843_v11 }
  0x23   :  { %819 = vmatmul.msk.bf16.gmra.mxu2 %vm263_vm1, %v851_v12  ;;  %827 = vmatmul.msk.bf16.gmra.mxu3 %vm263_vm1, %v859_v13 }
  0x32   :  { %804 = vmatmul.msk.bf16.gmra.mxu0 %vm263_vm1, %v836_v14  ;;  %812 = vmatmul.msk.bf16.gmra.mxu1 %vm263_vm1, %v844_v15 }
  0x33   :  { %820 = vmatmul.msk.bf16.gmra.mxu2 %vm263_vm1, %v852_v16  ;;  %828 = vmatmul.msk.bf16.gmra.mxu3 %vm263_vm1, %v860_v17 }
  0x42   :  { %805 = vmatmul.msk.bf16.gmra.mxu0 %vm263_vm1, %v837_v18  ;;  %813 = vmatmul.msk.bf16.gmra.mxu1 %vm263_vm1, %v845_v19 }
  0x43   :  { %821 = vmatmul.msk.bf16.gmra.mxu2 %vm263_vm1, %v853_v20  ;;  %829 = vmatmul.msk.bf16.gmra.mxu3 %vm263_vm1, %v861_v21 }
  0x52   :  { %806 = vmatmul.msk.bf16.gmra.mxu0 %vm263_vm1, %v838_v22  ;;  %814 = vmatmul.msk.bf16.gmra.mxu1 %vm263_vm1, %v846_v23 }
  0x53   :  { %822 = vmatmul.msk.bf16.gmra.mxu2 %vm263_vm1, %v854_v24  ;;  %830 = vmatmul.msk.bf16.gmra.mxu3 %vm263_vm1, %v862_v25 }
  0x62   :  { %807 = vmatmul.msk.bf16.gmra.mxu0 %vm263_vm1, %v839_v26  ;;  %815 = vmatmul.msk.bf16.gmra.mxu1 %vm263_vm1, %v847_v27 }
  0x63   :  { %823 = vmatmul.msk.bf16.gmra.mxu2 %vm263_vm1, %v855_v28  ;;  %831 = vmatmul.msk.bf16.gmra.mxu3 %vm263_vm1, %v863_v29 }
  0x72   :  { %808 = vmatmul.msk.bf16.gmra.mxu0 %vm263_vm1, %v840_v30  ;;  %816 = vmatmul.msk.bf16.gmra.mxu1 %vm263_vm1, %v848_v31 }
  0x73   :  { %824 = vmatmul.msk.bf16.gmra.mxu2 %vm263_vm1, %v856_v32  ;;  %832 = vmatmul.msk.bf16.gmra.mxu3 %vm263_vm1, %v864_v33 }
  0x82   :  { %809 = vmatmul.msk.bf16.gmra.mxu0 %vm263_vm1, %v841_v34  ;;  %817 = vmatmul.msk.bf16.gmra.mxu1 %vm263_vm1, %v849_v35 }
  0x83   :  { %825 = vmatmul.msk.bf16.gmra.mxu2 %vm263_vm1, %v857_v36  ;;  %833 = vmatmul.msk.bf16.gmra.mxu3 %vm263_vm1, %v865_v37 }
  0x8f   :  { %v373_v39 = vpop.f32.mrf.mxu0  ;;  %v413_v40 = vpop.f32.mrf.mxu1 }
  0x90   :  { %v374_v41 = vadd.f32 %v1038_v38, %v373_v39  ;;  %v414_v42 = vadd.f32 %v1038_v38, %v413_v40 }
  0x92   :  { %v533_v43 = vmax.f32 %v374_v41, 0.0  ;;  %v549_v44 = vmax.f32 %v414_v42, 0.0 }
  0x94   :  { %598 = vst.msk [vmem:[%s1363_s3] sm:$0xff] %vm597_vm2, %v533_v43 }
  0x95   :  { %614 = vst.msk [vmem:[%s1363_s3 + $0x80] sm:$0xff] %vm597_vm2, %v549_v44 }
  0x96   :  { %v453_v45 = vpop.f32.mrf.mxu2  ;;  %v493_v46 = vpop.f32.mrf.mxu3 }
  0x97   :  { %v454_v47 = vadd.f32 %v1038_v38, %v453_v45  ;;  %v494_v48 = vadd.f32 %v1038_v38, %v493_v46  ;;  %v375_v49 = vpop.f32.mrf.mxu0  ;;  %v415_v50 = vpop.f32.mrf.mxu1 }
  0x98   :  { %v376_v51 = vadd.f32 %v1038_v38, %v375_v49  ;;  %v416_v52 = vadd.f32 %v1038_v38, %v415_v50 }
  0x99   :  { %v565_v53 = vmax.f32 %v454_v47, 0.0  ;;  %v581_v54 = vmax.f32 %v494_v48, 0.0 }
  0x9a   :  { %v534_v55 = vmax.f32 %v376_v51, 0.0  ;;  %v550_v56 = vmax.f32 %v416_v52, 0.0 }
  0x9b   :  { %630 = vst.msk [vmem:[%s1363_s3 + $0x100] sm:$0xff] %vm597_vm2, %v565_v53 }
  0x9c   :  { %646 = vst.msk [vmem:[%s1363_s3 + $0x180] sm:$0xff] %vm597_vm2, %v581_v54 }
  0x9d   :  { %599 = vst.msk [vmem:[%s1363_s3 + $0x8] sm:$0xff] %vm597_vm2, %v534_v55 }
  0x9e   :  { %615 = vst.msk [vmem:[%s1363_s3 + $0x88] sm:$0xff] %vm597_vm2, %v550_v56  ;;  %v455_v57 = vpop.f32.mrf.mxu2  ;;  %v495_v58 = vpop.f32.mrf.mxu3 }
  0x9f   :  { %v456_v59 = vadd.f32 %v1038_v38, %v455_v57  ;;  %v496_v60 = vadd.f32 %v1038_v38, %v495_v58  ;;  %v378_v61 = vpop.f32.mrf.mxu0  ;;  %v418_v62 = vpop.f32.mrf.mxu1 }
  0xa0   :  { %v379_v63 = vadd.f32 %v1038_v38, %v378_v61  ;;  %v419_v0 = vadd.f32 %v1038_v38, %v418_v62 }
  0xa1   :  { %v566_v1 = vmax.f32 %v456_v59, 0.0  ;;  %v582_v2 = vmax.f32 %v496_v60, 0.0 }
  0xa2   :  { %v535_v3 = vmax.f32 %v379_v63, 0.0  ;;  %v551_v4 = vmax.f32 %v419_v0, 0.0 }
  0xa3   :  { %631 = vst.msk [vmem:[%s1363_s3 + $0x108] sm:$0xff] %vm597_vm2, %v566_v1 }
  0xa4   :  { %647 = vst.msk [vmem:[%s1363_s3 + $0x188] sm:$0xff] %vm597_vm2, %v582_v2 }
  0xa5   :  { %600 = vst.msk [vmem:[%s1363_s3 + $0x10] sm:$0xff] %vm597_vm2, %v535_v3 }
  0xa6   :  { %616 = vst.msk [vmem:[%s1363_s3 + $0x90] sm:$0xff] %vm597_vm2, %v551_v4  ;;  %v458_v5 = vpop.f32.mrf.mxu2  ;;  %v498_v6 = vpop.f32.mrf.mxu3 }
  0xa7   :  { %v459_v7 = vadd.f32 %v1038_v38, %v458_v5  ;;  %v499_v8 = vadd.f32 %v1038_v38, %v498_v6  ;;  %v380_v9 = vpop.f32.mrf.mxu0  ;;  %v420_v10 = vpop.f32.mrf.mxu1 }
  0xa8   :  { %v381_v11 = vadd.f32 %v1038_v38, %v380_v9  ;;  %v421_v12 = vadd.f32 %v1038_v38, %v420_v10 }
  0xa9   :  { %v567_v13 = vmax.f32 %v459_v7, 0.0  ;;  %v583_v14 = vmax.f32 %v499_v8, 0.0 }
  0xaa   :  { %v536_v15 = vmax.f32 %v381_v11, 0.0  ;;  %v552_v16 = vmax.f32 %v421_v12, 0.0 }
  0xab   :  { %632 = vst.msk [vmem:[%s1363_s3 + $0x110] sm:$0xff] %vm597_vm2, %v567_v13 }
  0xac   :  { %648 = vst.msk [vmem:[%s1363_s3 + $0x190] sm:$0xff] %vm597_vm2, %v583_v14 }
  0xad   :  { %601 = vst.msk [vmem:[%s1363_s3 + $0x18] sm:$0xff] %vm597_vm2, %v536_v15 }
  0xae   :  { %617 = vst.msk [vmem:[%s1363_s3 + $0x98] sm:$0xff] %vm597_vm2, %v552_v16  ;;  %v460_v17 = vpop.f32.mrf.mxu2  ;;  %v500_v18 = vpop.f32.mrf.mxu3 }
  0xaf   :  { %v461_v19 = vadd.f32 %v1038_v38, %v460_v17  ;;  %v501_v20 = vadd.f32 %v1038_v38, %v500_v18  ;;  %v383_v21 = vpop.f32.mrf.mxu0  ;;  %v423_v22 = vpop.f32.mrf.mxu1 }
  0xb0   :  { %v384_v23 = vadd.f32 %v1038_v38, %v383_v21  ;;  %v424_v24 = vadd.f32 %v1038_v38, %v423_v22 }
  0xb1   :  { %v568_v25 = vmax.f32 %v461_v19, 0.0  ;;  %v584_v26 = vmax.f32 %v501_v20, 0.0 }
  0xb2   :  { %v537_v27 = vmax.f32 %v384_v23, 0.0  ;;  %v553_v28 = vmax.f32 %v424_v24, 0.0 }
  0xb3   :  { %633 = vst.msk [vmem:[%s1363_s3 + $0x118] sm:$0xff] %vm597_vm2, %v568_v25 }
  0xb4   :  { %649 = vst.msk [vmem:[%s1363_s3 + $0x198] sm:$0xff] %vm597_vm2, %v584_v26 }
  0xb5   :  { %602 = vst.msk [vmem:[%s1363_s3 + $0x20] sm:$0xff] %vm597_vm2, %v537_v27 }
  0xb6   :  { %618 = vst.msk [vmem:[%s1363_s3 + $0xa0] sm:$0xff] %vm597_vm2, %v553_v28  ;;  %v463_v29 = vpop.f32.mrf.mxu2  ;;  %v503_v30 = vpop.f32.mrf.mxu3 }
  0xb7   :  { %v464_v31 = vadd.f32 %v1038_v38, %v463_v29  ;;  %v504_v32 = vadd.f32 %v1038_v38, %v503_v30  ;;  %v385_v33 = vpop.f32.mrf.mxu0  ;;  %v425_v34 = vpop.f32.mrf.mxu1 }
  0xb8   :  { %v386_v35 = vadd.f32 %v1038_v38, %v385_v33  ;;  %v426_v36 = vadd.f32 %v1038_v38, %v425_v34 }
  0xb9   :  { %v569_v37 = vmax.f32 %v464_v31, 0.0  ;;  %v585_v39 = vmax.f32 %v504_v32, 0.0 }
  0xba   :  { %v538_v40 = vmax.f32 %v386_v35, 0.0  ;;  %v554_v41 = vmax.f32 %v426_v36, 0.0 }
  0xbb   :  { %634 = vst.msk [vmem:[%s1363_s3 + $0x120] sm:$0xff] %vm597_vm2, %v569_v37 }
  0xbc   :  { %650 = vst.msk [vmem:[%s1363_s3 + $0x1a0] sm:$0xff] %vm597_vm2, %v585_v39 }
  0xbd   :  { %603 = vst.msk [vmem:[%s1363_s3 + $0x28] sm:$0xff] %vm597_vm2, %v538_v40 }
  0xbe   :  { %619 = vst.msk [vmem:[%s1363_s3 + $0xa8] sm:$0xff] %vm597_vm2, %v554_v41  ;;  %v465_v42 = vpop.f32.mrf.mxu2  ;;  %v505_v43 = vpop.f32.mrf.mxu3 }
  0xbf   :  { %v466_v44 = vadd.f32 %v1038_v38, %v465_v42  ;;  %v506_v45 = vadd.f32 %v1038_v38, %v505_v43  ;;  %v388_v46 = vpop.f32.mrf.mxu0  ;;  %v428_v47 = vpop.f32.mrf.mxu1 }
  0xc0   :  { %v389_v48 = vadd.f32 %v1038_v38, %v388_v46  ;;  %v429_v49 = vadd.f32 %v1038_v38, %v428_v47 }
  0xc1   :  { %v570_v50 = vmax.f32 %v466_v44, 0.0  ;;  %v586_v51 = vmax.f32 %v506_v45, 0.0 }
  0xc2   :  { %v539_v52 = vmax.f32 %v389_v48, 0.0  ;;  %v555_v53 = vmax.f32 %v429_v49, 0.0 }
  0xc3   :  { %635 = vst.msk [vmem:[%s1363_s3 + $0x128] sm:$0xff] %vm597_vm2, %v570_v50 }
  0xc4   :  { %651 = vst.msk [vmem:[%s1363_s3 + $0x1a8] sm:$0xff] %vm597_vm2, %v586_v51 }
  0xc5   :  { %604 = vst.msk [vmem:[%s1363_s3 + $0x30] sm:$0xff] %vm597_vm2, %v539_v52 }
  0xc6   :  { %620 = vst.msk [vmem:[%s1363_s3 + $0xb0] sm:$0xff] %vm597_vm2, %v555_v53  ;;  %v468_v54 = vpop.f32.mrf.mxu2  ;;  %v508_v55 = vpop.f32.mrf.mxu3 }
  0xc7   :  { %v469_v56 = vadd.f32 %v1038_v38, %v468_v54  ;;  %v509_v57 = vadd.f32 %v1038_v38, %v508_v55  ;;  %v390_v58 = vpop.f32.mrf.mxu0  ;;  %v430_v59 = vpop.f32.mrf.mxu1 }
  0xc8   :  { %v391_v60 = vadd.f32 %v1038_v38, %v390_v58  ;;  %v431_v61 = vadd.f32 %v1038_v38, %v430_v59 }
  0xc9   :  { %v571_v62 = vmax.f32 %v469_v56, 0.0  ;;  %v587_v63 = vmax.f32 %v509_v57, 0.0 }
  0xca   :  { %v540_v0 = vmax.f32 %v391_v60, 0.0  ;;  %v556_v1 = vmax.f32 %v431_v61, 0.0 }
  0xcb   :  { %636 = vst.msk [vmem:[%s1363_s3 + $0x130] sm:$0xff] %vm597_vm2, %v571_v62 }
  0xcc   :  { %652 = vst.msk [vmem:[%s1363_s3 + $0x1b0] sm:$0xff] %vm597_vm2, %v587_v63 }
  0xcd   :  { %605 = vst.msk [vmem:[%s1363_s3 + $0x38] sm:$0xff] %vm597_vm2, %v540_v0 }
  0xce   :  { %621 = vst.msk [vmem:[%s1363_s3 + $0xb8] sm:$0xff] %vm597_vm2, %v556_v1  ;;  %v470_v2 = vpop.f32.mrf.mxu2  ;;  %v510_v3 = vpop.f32.mrf.mxu3 }
  0xcf   :  { %v471_v4 = vadd.f32 %v1038_v38, %v470_v2  ;;  %v511_v5 = vadd.f32 %v1038_v38, %v510_v3  ;;  %v393_v6 = vpop.f32.mrf.mxu0  ;;  %v433_v7 = vpop.f32.mrf.mxu1 }
  0xd0   :  { %v394_v8 = vadd.f32 %v1038_v38, %v393_v6  ;;  %v434_v9 = vadd.f32 %v1038_v38, %v433_v7 }
  0xd1   :  { %v572_v10 = vmax.f32 %v471_v4, 0.0  ;;  %v588_v11 = vmax.f32 %v511_v5, 0.0 }
  0xd2   :  { %v541_v12 = vmax.f32 %v394_v8, 0.0  ;;  %v557_v13 = vmax.f32 %v434_v9, 0.0 }
  0xd3   :  { %637 = vst.msk [vmem:[%s1363_s3 + $0x138] sm:$0xff] %vm597_vm2, %v572_v10 }
  0xd4   :  { %653 = vst.msk [vmem:[%s1363_s3 + $0x1b8] sm:$0xff] %vm597_vm2, %v588_v11 }
  0xd5   :  { %606 = vst.msk [vmem:[%s1363_s3 + $0x40] sm:$0xff] %vm597_vm2, %v541_v12 }
  0xd6   :  { %622 = vst.msk [vmem:[%s1363_s3 + $0xc0] sm:$0xff] %vm597_vm2, %v557_v13  ;;  %v473_v14 = vpop.f32.mrf.mxu2  ;;  %v513_v15 = vpop.f32.mrf.mxu3 }
  0xd7   :  { %v474_v16 = vadd.f32 %v1038_v38, %v473_v14  ;;  %v514_v17 = vadd.f32 %v1038_v38, %v513_v15  ;;  %v395_v18 = vpop.f32.mrf.mxu0  ;;  %v435_v19 = vpop.f32.mrf.mxu1 }
  0xd8   :  { %v396_v20 = vadd.f32 %v1038_v38, %v395_v18  ;;  %v436_v21 = vadd.f32 %v1038_v38, %v435_v19 }
  0xd9   :  { %v573_v22 = vmax.f32 %v474_v16, 0.0  ;;  %v589_v23 = vmax.f32 %v514_v17, 0.0 }
  0xda   :  { %v542_v24 = vmax.f32 %v396_v20, 0.0  ;;  %v558_v25 = vmax.f32 %v436_v21, 0.0 }
  0xdb   :  { %638 = vst.msk [vmem:[%s1363_s3 + $0x140] sm:$0xff] %vm597_vm2, %v573_v22 }
  0xdc   :  { %654 = vst.msk [vmem:[%s1363_s3 + $0x1c0] sm:$0xff] %vm597_vm2, %v589_v23 }
  0xdd   :  { %607 = vst.msk [vmem:[%s1363_s3 + $0x48] sm:$0xff] %vm597_vm2, %v542_v24 }
  0xde   :  { %623 = vst.msk [vmem:[%s1363_s3 + $0xc8] sm:$0xff] %vm597_vm2, %v558_v25  ;;  %v475_v26 = vpop.f32.mrf.mxu2  ;;  %v515_v27 = vpop.f32.mrf.mxu3 }
  0xdf   :  { %v476_v28 = vadd.f32 %v1038_v38, %v475_v26  ;;  %v516_v29 = vadd.f32 %v1038_v38, %v515_v27  ;;  %v398_v30 = vpop.f32.mrf.mxu0  ;;  %v438_v31 = vpop.f32.mrf.mxu1 }
  0xe0   :  { %v399_v32 = vadd.f32 %v1038_v38, %v398_v30  ;;  %v439_v33 = vadd.f32 %v1038_v38, %v438_v31 }
  0xe1   :  { %v574_v34 = vmax.f32 %v476_v28, 0.0  ;;  %v590_v35 = vmax.f32 %v516_v29, 0.0 }
  0xe2   :  { %v543_v36 = vmax.f32 %v399_v32, 0.0  ;;  %v559_v37 = vmax.f32 %v439_v33, 0.0 }
  0xe3   :  { %639 = vst.msk [vmem:[%s1363_s3 + $0x148] sm:$0xff] %vm597_vm2, %v574_v34 }
  0xe4   :  { %655 = vst.msk [vmem:[%s1363_s3 + $0x1c8] sm:$0xff] %vm597_vm2, %v590_v35 }
  0xe5   :  { %608 = vst.msk [vmem:[%s1363_s3 + $0x50] sm:$0xff] %vm597_vm2, %v543_v36 }
  0xe6   :  { %624 = vst.msk [vmem:[%s1363_s3 + $0xd0] sm:$0xff] %vm597_vm2, %v559_v37  ;;  %v478_v39 = vpop.f32.mrf.mxu2  ;;  %v518_v40 = vpop.f32.mrf.mxu3 }
  0xe7   :  { %v479_v41 = vadd.f32 %v1038_v38, %v478_v39  ;;  %v519_v42 = vadd.f32 %v1038_v38, %v518_v40  ;;  %v400_v43 = vpop.f32.mrf.mxu0  ;;  %v440_v44 = vpop.f32.mrf.mxu1 }
  0xe8   :  { %v401_v45 = vadd.f32 %v1038_v38, %v400_v43  ;;  %v441_v46 = vadd.f32 %v1038_v38, %v440_v44 }
  0xe9   :  { %v575_v47 = vmax.f32 %v479_v41, 0.0  ;;  %v591_v48 = vmax.f32 %v519_v42, 0.0 }
  0xea   :  { %v544_v49 = vmax.f32 %v401_v45, 0.0  ;;  %v560_v50 = vmax.f32 %v441_v46, 0.0 }
  0xeb   :  { %640 = vst.msk [vmem:[%s1363_s3 + $0x150] sm:$0xff] %vm597_vm2, %v575_v47 }
  0xec   :  { %656 = vst.msk [vmem:[%s1363_s3 + $0x1d0] sm:$0xff] %vm597_vm2, %v591_v48 }
  0xed   :  { %609 = vst.msk [vmem:[%s1363_s3 + $0x58] sm:$0xff] %vm597_vm2, %v544_v49 }
  0xee   :  { %625 = vst.msk [vmem:[%s1363_s3 + $0xd8] sm:$0xff] %vm597_vm2, %v560_v50  ;;  %v480_v51 = vpop.f32.mrf.mxu2  ;;  %v520_v52 = vpop.f32.mrf.mxu3 }
  0xef   :  { %v481_v53 = vadd.f32 %v1038_v38, %v480_v51  ;;  %v521_v54 = vadd.f32 %v1038_v38, %v520_v52  ;;  %v403_v55 = vpop.f32.mrf.mxu0  ;;  %v443_v56 = vpop.f32.mrf.mxu1 }
  0xf0   :  { %v404_v57 = vadd.f32 %v1038_v38, %v403_v55  ;;  %v444_v58 = vadd.f32 %v1038_v38, %v443_v56 }
  0xf1   :  { %v576_v59 = vmax.f32 %v481_v53, 0.0  ;;  %v592_v60 = vmax.f32 %v521_v54, 0.0 }
  0xf2   :  { %v545_v61 = vmax.f32 %v404_v57, 0.0  ;;  %v561_v62 = vmax.f32 %v444_v58, 0.0 }
  0xf3   :  { %641 = vst.msk [vmem:[%s1363_s3 + $0x158] sm:$0xff] %vm597_vm2, %v576_v59 }
  0xf4   :  { %657 = vst.msk [vmem:[%s1363_s3 + $0x1d8] sm:$0xff] %vm597_vm2, %v592_v60 }
  0xf5   :  { %610 = vst.msk [vmem:[%s1363_s3 + $0x60] sm:$0xff] %vm597_vm2, %v545_v61 }
  0xf6   :  { %626 = vst.msk [vmem:[%s1363_s3 + $0xe0] sm:$0xff] %vm597_vm2, %v561_v62  ;;  %v483_v63 = vpop.f32.mrf.mxu2  ;;  %v523_v0 = vpop.f32.mrf.mxu3 }
  0xf7   :  { %v484_v1 = vadd.f32 %v1038_v38, %v483_v63  ;;  %v524_v2 = vadd.f32 %v1038_v38, %v523_v0  ;;  %v405_v3 = vpop.f32.mrf.mxu0  ;;  %v445_v4 = vpop.f32.mrf.mxu1 }
  0xf8   :  { %v406_v5 = vadd.f32 %v1038_v38, %v405_v3  ;;  %v446_v6 = vadd.f32 %v1038_v38, %v445_v4 }
  0xf9   :  { %v577_v7 = vmax.f32 %v484_v1, 0.0  ;;  %v593_v8 = vmax.f32 %v524_v2, 0.0 }
  0xfa   :  { %v546_v9 = vmax.f32 %v406_v5, 0.0  ;;  %v562_v10 = vmax.f32 %v446_v6, 0.0 }
  0xfb   :  { %642 = vst.msk [vmem:[%s1363_s3 + $0x160] sm:$0xff] %vm597_vm2, %v577_v7 }
  0xfc   :  { %658 = vst.msk [vmem:[%s1363_s3 + $0x1e0] sm:$0xff] %vm597_vm2, %v593_v8 }
  0xfd   :  { %611 = vst.msk [vmem:[%s1363_s3 + $0x68] sm:$0xff] %vm597_vm2, %v546_v9 }
  0xfe   :  { %627 = vst.msk [vmem:[%s1363_s3 + $0xe8] sm:$0xff] %vm597_vm2, %v562_v10  ;;  %v485_v11 = vpop.f32.mrf.mxu2  ;;  %v525_v12 = vpop.f32.mrf.mxu3 }
  0xff   :  { %v486_v13 = vadd.f32 %v1038_v38, %v485_v11  ;;  %v526_v14 = vadd.f32 %v1038_v38, %v525_v12  ;;  %v408_v15 = vpop.f32.mrf.mxu0  ;;  %v448_v16 = vpop.f32.mrf.mxu1 }
 0x100   :  { %v409_v17 = vadd.f32 %v1038_v38, %v408_v15  ;;  %v449_v18 = vadd.f32 %v1038_v38, %v448_v16 }
 0x101   :  { %v578_v19 = vmax.f32 %v486_v13, 0.0  ;;  %v594_v20 = vmax.f32 %v526_v14, 0.0 }
 0x102   :  { %v547_v21 = vmax.f32 %v409_v17, 0.0  ;;  %v563_v22 = vmax.f32 %v449_v18, 0.0 }
 0x103   :  { %643 = vst.msk [vmem:[%s1363_s3 + $0x168] sm:$0xff] %vm597_vm2, %v578_v19 }
 0x104   :  { %659 = vst.msk [vmem:[%s1363_s3 + $0x1e8] sm:$0xff] %vm597_vm2, %v594_v20 }
 0x105   :  { %612 = vst.msk [vmem:[%s1363_s3 + $0x70] sm:$0xff] %vm597_vm2, %v547_v21 }
 0x106   :  { %628 = vst.msk [vmem:[%s1363_s3 + $0xf0] sm:$0xff] %vm597_vm2, %v563_v22  ;;  %v488_v23 = vpop.f32.mrf.mxu2  ;;  %v528_v24 = vpop.f32.mrf.mxu3 }
 0x107   :  { %v489_v25 = vadd.f32 %v1038_v38, %v488_v23  ;;  %v529_v26 = vadd.f32 %v1038_v38, %v528_v24  ;;  %v410_v27 = vpop.f32.mrf.mxu0  ;;  %v450_v28 = vpop.f32.mrf.mxu1 }
 0x108   :  { %v411_v29 = vadd.f32 %v1038_v38, %v410_v27  ;;  %v451_v30 = vadd.f32 %v1038_v38, %v450_v28 }
 0x109   :  { %v579_v31 = vmax.f32 %v489_v25, 0.0  ;;  %v595_v32 = vmax.f32 %v529_v26, 0.0 }
 0x10a   :  { %v548_v33 = vmax.f32 %v411_v29, 0.0  ;;  %v564_v34 = vmax.f32 %v451_v30, 0.0 }
 0x10b   :  { %644 = vst.msk [vmem:[%s1363_s3 + $0x170] sm:$0xff] %vm597_vm2, %v579_v31 }
 0x10c   :  { %660 = vst.msk [vmem:[%s1363_s3 + $0x1f0] sm:$0xff] %vm597_vm2, %v595_v32 }
 0x10d   :  { %613 = vst.msk [vmem:[%s1363_s3 + $0x78] sm:$0xff] %vm597_vm2, %v548_v33 }
 0x10e   :  { %629 = vst.msk [vmem:[%s1363_s3 + $0xf8] sm:$0xff] %vm597_vm2, %v564_v34  ;;  %v490_v35 = vpop.f32.mrf.mxu2  ;;  %v530_v36 = vpop.f32.mrf.mxu3 }
 0x10f   :  { %v491_v37 = vadd.f32 %v1038_v38, %v490_v35  ;;  %v531_v39 = vadd.f32 %v1038_v38, %v530_v36 }
 0x111   :  { %v580_v40 = vmax.f32 %v491_v37, 0.0  ;;  %v596_v41 = vmax.f32 %v531_v39, 0.0 }
 0x113   :  { %645 = vst.msk [vmem:[%s1363_s3 + $0x178] sm:$0xff] %vm597_vm2, %v580_v40 }
 0x114   :  { %661 = vst.msk [vmem:[%s1363_s3 + $0x1f8] sm:$0xff] %vm597_vm2, %v596_v41 }

// kernel: forward.13
= control target key start
LH: loop header
LB: loop body
LE: loop exit
PB: predicated region body
PF: predicated region fallthrough
CT: control target
= control target key end

     0   :  { %vm443_vm0 = vcmask 130048   ;;  %s2283_s1 = inlined_call_operand.vmem [shape: bf16[144,16], index: 1, kind: input, shape index: {}]   ;;  %s2284_s0 = inlined_call_operand.vmem [shape: bf16[512,144], index: 0, kind: input, shape index: {}]   ;;  %s2285_s2 = inlined_call_operand.vmem [shape: f32[1,16], index: 2, kind: input, shape index: {}]   ;;  %s2286_s3 = inlined_call_operand.vmem [shape: f32[512,16], index: 3, kind: output, shape index: {}]  }
   0x1   :  { %v1405_v0 = vld [vmem:[%s2283_s1 + $0x38] sm:$0xff]  ;;  %v1406_v1 = vld [vmem:[%s2283_s1 + $0x40] sm:$0xff]  ;;  %v1014_v3 = vld [vmem:[%s2284_s0 + $0x8] sm:$0xf0] }
   0x2   :  { %v1334_v2 = vld [vmem:[%s2284_s0 + $0x4] sm:$0xf]  ;;  %540 = vmatpush.bf16.msra.mxu0 %v1405_v0  ;;  %1407 = vmatpush.bf16.msra.mxu2 %v1405_v0  ;;  %v1404_v5 = vld [vmem:[%s2283_s1 + $0x30] sm:$0xff]  ;;  %v1403_v6 = vld [vmem:[%s2283_s1 + $0x28] sm:$0xff] }
   0x3   :  { %v1017_v4 = vor.u32 %v1334_v2, %v1014_v3  ;;  %716 = vmatpush.bf16.msra.mxu1 %v1406_v1  ;;  %1415 = vmatpush.bf16.msra.mxu3 %v1406_v1  ;;  %v1368_v7 = vld [vmem:[%s2284_s0 + $0x114] sm:$0xf]  ;;  %v1150_v8 = vld [vmem:[%s2284_s0 + $0x118] sm:$0xf0]  ;;  %v1402_v10 = vld [vmem:[%s2283_s1 + $0x20] sm:$0xff] }
   0x4   :  { %v1153_v9 = vor.u32 %v1368_v7, %v1150_v8  ;;  %v1401_v11 = vld [vmem:[%s2283_s1 + $0x18] sm:$0xff]  ;;  %v1336_v12 = vld [vmem:[%s2284_s0 + $0x14] sm:$0xf]  ;;  %v1399_v16 = vld [vmem:[%s2283_s1 + $0x8] sm:$0xff] }
   0x5   :  { %v1022_v13 = vld [vmem:[%s2284_s0 + $0x18] sm:$0xf0]  ;;  %v1400_v15 = vld [vmem:[%s2283_s1 + $0x10] sm:$0xff]  ;;  %v1370_v17 = vld [vmem:[%s2284_s0 + $0x124] sm:$0xf] }
   0x6   :  { %1302 = vmatmul.msk.bf16.vlgmr.msra.gmra.mxu1 %vm443_vm0, %v1017_v4  ;;  %541 = vmatpush.bf16.msra.mxu0 %v1404_v5  ;;  %v1025_v14 = vor.u32 %v1336_v12, %v1022_v13  ;;  %v1158_v18 = vld [vmem:[%s2284_s0 + $0x128] sm:$0xf0]  ;;  %v1398_v20 = vld [vmem:[%s2283_s1] sm:$0xff]  ;;  %v1335_v22 = vld [vmem:[%s2284_s0 + $0x4] sm:$0xf0] }
   0x7   :  { %1408 = vmatpush.bf16.msra.mxu2 %v1404_v5  ;;  %1319 = vmatmul.msk.bf16.vlgmr.msra.gmra.mxu3 %vm443_vm0, %v1153_v9  ;;  %v1161_v19 = vor.u32 %v1370_v17, %v1158_v18  ;;  %v1012_v21 = vld [vmem:[%s2284_s0] sm:$0xf]  ;;  %v1367_v24 = vld [vmem:[%s2284_s0 + $0x104] sm:$0xf0]  ;;  %v1338_v27 = vld [vmem:[%s2284_s0 + $0x24] sm:$0xf] }
   0x8   :  { %v1140_v23 = vld [vmem:[%s2284_s0 + $0x100] sm:$0xf]  ;;  %v1013_v25 = vor.u32 %v1335_v22, %v1012_v21  ;;  %v1030_v28 = vld [vmem:[%s2284_s0 + $0x28] sm:$0xf0]  ;;  %v1372_v30 = vld [vmem:[%s2284_s0 + $0x134] sm:$0xf] }
   0x9   :  { %v1141_v26 = vor.u32 %v1367_v24, %v1140_v23  ;;  %v1033_v29 = vor.u32 %v1338_v27, %v1030_v28  ;;  %v1166_v31 = vld [vmem:[%s2284_s0 + $0x138] sm:$0xf0]  ;;  %v1020_v33 = vld [vmem:[%s2284_s0 + $0x10] sm:$0xf]  ;;  %v1337_v34 = vld [vmem:[%s2284_s0 + $0x14] sm:$0xf0] }
   0xa   :  { %542 = vmatpush.bf16.msra.mxu0 %v1403_v6  ;;  %v1169_v32 = vor.u32 %v1372_v30, %v1166_v31  ;;  %v1148_v35 = vld [vmem:[%s2284_s0 + $0x110] sm:$0xf]  ;;  %v1369_v36 = vld [vmem:[%s2284_s0 + $0x114] sm:$0xf0]  ;;  %v1021_v37 = vor.u32 %v1337_v34, %v1020_v33  ;;  %v1340_v39 = vld [vmem:[%s2284_s0 + $0x34] sm:$0xf] }
   0xb   :  { %1409 = vmatpush.bf16.msra.mxu2 %v1403_v6  ;;  %v1149_v38 = vor.u32 %v1369_v36, %v1148_v35  ;;  %v1038_v40 = vld [vmem:[%s2284_s0 + $0x38] sm:$0xf0]  ;;  %v1374_v42 = vld [vmem:[%s2284_s0 + $0x144] sm:$0xf]  ;;  %v1174_v43 = vld [vmem:[%s2284_s0 + $0x148] sm:$0xf0] }
   0xc   :  { %v1041_v41 = vor.u32 %v1340_v39, %v1038_v40  ;;  %v1177_v44 = vor.u32 %v1374_v42, %v1174_v43  ;;  %v1028_v45 = vld [vmem:[%s2284_s0 + $0x20] sm:$0xf]  ;;  %v1339_v46 = vld [vmem:[%s2284_s0 + $0x24] sm:$0xf0]  ;;  %v1342_v51 = vld [vmem:[%s2284_s0 + $0x44] sm:$0xf] }
   0xd   :  { %v1156_v47 = vld [vmem:[%s2284_s0 + $0x120] sm:$0xf]  ;;  %v1371_v48 = vld [vmem:[%s2284_s0 + $0x124] sm:$0xf0]  ;;  %v1029_v49 = vor.u32 %v1339_v46, %v1028_v45  ;;  %v1046_v52 = vld [vmem:[%s2284_s0 + $0x48] sm:$0xf0] }
   0xe   :  { %543 = vmatpush.bf16.msra.mxu0 %v1402_v10  ;;  %v1157_v50 = vor.u32 %v1371_v48, %v1156_v47  ;;  %v1049_v53 = vor.u32 %v1342_v51, %v1046_v52  ;;  %v1376_v54 = vld [vmem:[%s2284_s0 + $0x154] sm:$0xf]  ;;  %v1182_v55 = vld [vmem:[%s2284_s0 + $0x158] sm:$0xf0]  ;;  %v1036_v57 = vld [vmem:[%s2284_s0 + $0x30] sm:$0xf] }
   0xf   :  { %1410 = vmatpush.bf16.msra.mxu2 %v1402_v10  ;;  %v1185_v56 = vor.u32 %v1376_v54, %v1182_v55  ;;  %v1341_v58 = vld [vmem:[%s2284_s0 + $0x34] sm:$0xf0]  ;;  %v1164_v59 = vld [vmem:[%s2284_s0 + $0x130] sm:$0xf]  ;;  %v1344_v63 = vld [vmem:[%s2284_s0 + $0x54] sm:$0xf] }
  0x10   :  { %v1373_v60 = vld [vmem:[%s2284_s0 + $0x134] sm:$0xf0]  ;;  %v1037_v61 = vor.u32 %v1341_v58, %v1036_v57  ;;  %v1054_v0 = vld [vmem:[%s2284_s0 + $0x58] sm:$0xf0]  ;;  %v1378_v2 = vld [vmem:[%s2284_s0 + $0x164] sm:$0xf] }
  0x11   :  { %v1165_v62 = vor.u32 %v1373_v60, %v1164_v59  ;;  %v1057_v1 = vor.u32 %v1344_v63, %v1054_v0  ;;  %v1190_v3 = vld [vmem:[%s2284_s0 + $0x168] sm:$0xf0]  ;;  %v1044_v5 = vld [vmem:[%s2284_s0 + $0x40] sm:$0xf]  ;;  %v1343_v6 = vld [vmem:[%s2284_s0 + $0x44] sm:$0xf0] }
  0x12   :  { %544 = vmatpush.bf16.msra.mxu0 %v1401_v11  ;;  %v1193_v4 = vor.u32 %v1378_v2, %v1190_v3  ;;  %v1172_v7 = vld [vmem:[%s2284_s0 + $0x140] sm:$0xf]  ;;  %v1375_v8 = vld [vmem:[%s2284_s0 + $0x144] sm:$0xf0]  ;;  %v1045_v9 = vor.u32 %v1343_v6, %v1044_v5  ;;  %v1062_v12 = vld [vmem:[%s2284_s0 + $0x68] sm:$0xf0] }
  0x13   :  { %1411 = vmatpush.bf16.msra.mxu2 %v1401_v11  ;;  %v1173_v10 = vor.u32 %v1375_v8, %v1172_v7  ;;  %v1346_v11 = vld [vmem:[%s2284_s0 + $0x64] sm:$0xf]  ;;  %v1345_v17 = vld [vmem:[%s2284_s0 + $0x54] sm:$0xf0]  ;;  %v1348_v23 = vld [vmem:[%s2284_s0 + $0x74] sm:$0xf] }
  0x14   :  { %v1065_v13 = vor.u32 %v1346_v11, %v1062_v12  ;;  %v1070_v24 = vld [vmem:[%s2284_s0 + $0x78] sm:$0xf0]  ;;  %v1206_v27 = vld [vmem:[%s2284_s0 + $0x188] sm:$0xf0]  ;;  %v1060_v28 = vld [vmem:[%s2284_s0 + $0x60] sm:$0xf] }
  0x15   :  { %v1188_v31 = vld [vmem:[%s2284_s0 + $0x160] sm:$0xf]  ;;  %v1350_v35 = vld [vmem:[%s2284_s0 + $0x84] sm:$0xf]  ;;  %v1078_v36 = vld [vmem:[%s2284_s0 + $0x88] sm:$0xf0] }
  0x16   :  { %1303 = vmatmul.msk.bf16.gmra.mxu1 %vm443_vm0, %v1025_v14  ;;  %545 = vmatpush.bf16.msra.mxu0 %v1400_v15  ;;  %v1380_v14 = vld [vmem:[%s2284_s0 + $0x174] sm:$0xf]  ;;  %v1214_v40 = vld [vmem:[%s2284_s0 + $0x198] sm:$0xf0]  ;;  %v1349_v42 = vld [vmem:[%s2284_s0 + $0x74] sm:$0xf0] }
  0x17   :  { %1412 = vmatpush.bf16.msra.mxu2 %v1400_v15  ;;  %1320 = vmatmul.msk.bf16.gmra.mxu3 %vm443_vm0, %v1161_v19  ;;  %v1198_v15 = vld [vmem:[%s2284_s0 + $0x178] sm:$0xf0]  ;;  %v1180_v19 = vld [vmem:[%s2284_s0 + $0x150] sm:$0xf]  ;;  %v1384_v39 = vld [vmem:[%s2284_s0 + $0x194] sm:$0xf] }
  0x18   :  { %v1201_v18 = vor.u32 %v1380_v14, %v1198_v15  ;;  %v1217_v43 = vor.u32 %v1384_v39, %v1214_v40  ;;  %v1196_v45 = vld [vmem:[%s2284_s0 + $0x170] sm:$0xf]  ;;  %v1381_v46 = vld [vmem:[%s2284_s0 + $0x174] sm:$0xf0]  ;;  %v1386_v55 = vld [vmem:[%s2284_s0 + $0x1a4] sm:$0xf] }
  0x19   :  { %v1197_v48 = vor.u32 %v1381_v46, %v1196_v45  ;;  %v1076_v57 = vld [vmem:[%s2284_s0 + $0x80] sm:$0xf]  ;;  %v1351_v58 = vld [vmem:[%s2284_s0 + $0x84] sm:$0xf0]  ;;  %v1094_v5 = vld [vmem:[%s2284_s0 + $0xa8] sm:$0xf0] }
  0x1a   :  { %546 = vmatpush.bf16.msra.mxu0 %v1399_v16  ;;  %v1383_v63 = vld [vmem:[%s2284_s0 + $0x184] sm:$0xf0]  ;;  %v1077_v0 = vor.u32 %v1351_v58, %v1076_v57  ;;  %v1238_v45 = vld [vmem:[%s2284_s0 + $0x1c8] sm:$0xf0] }
  0x1b   :  { %1413 = vmatpush.bf16.msra.mxu2 %v1399_v16  ;;  %v1052_v16 = vld [vmem:[%s2284_s0 + $0x50] sm:$0xf] }
  0x1c   :  { %v1053_v21 = vor.u32 %v1345_v17, %v1052_v16  ;;  %v1388_v16 = vld [vmem:[%s2284_s0 + $0x1b4] sm:$0xf]  ;;  %v1230_v17 = vld [vmem:[%s2284_s0 + $0x1b8] sm:$0xf0] }
  0x1e   :  { %547 = vmatpush.bf16.msra.mxu0 %v1398_v20 }
  0x1f   :  { %1414 = vmatpush.bf16.msra.mxu2 %v1398_v20  ;;  %v1377_v20 = vld [vmem:[%s2284_s0 + $0x154] sm:$0xf0] }
  0x20   :  { %v1181_v22 = vor.u32 %v1377_v20, %v1180_v19  ;;  %v1353_v19 = vld [vmem:[%s2284_s0 + $0x94] sm:$0xf0]  ;;  %v1233_v20 = vor.u32 %v1388_v16, %v1230_v17  ;;  %v1392_v16 = vld [vmem:[%s2284_s0 + $0x1d4] sm:$0xf]  ;;  %v1246_v17 = vld [vmem:[%s2284_s0 + $0x1d8] sm:$0xf0] }
  0x21   :  { %548 = vmatmul.bf16.vlgmr.msra.gmra.mxu0 %v1013_v25  ;;  %v1073_v25 = vor.u32 %v1348_v23, %v1070_v24  ;;  %v1212_v23 = vld [vmem:[%s2284_s0 + $0x190] sm:$0xf]  ;;  %v1385_v24 = vld [vmem:[%s2284_s0 + $0x194] sm:$0xf0] }
  0x22   :  { %628 = vmatmul.bf16.vlgmr.msra.gmra.mxu2 %v1141_v26  ;;  %v1382_v26 = vld [vmem:[%s2284_s0 + $0x184] sm:$0xf] }
  0x23   :  { %v1209_v30 = vor.u32 %v1382_v26, %v1206_v27 }
  0x26   :  { %1304 = vmatmul.msk.bf16.gmra.mxu1 %vm443_vm0, %v1033_v29  ;;  %v1347_v29 = vld [vmem:[%s2284_s0 + $0x64] sm:$0xf0] }
  0x27   :  { %1321 = vmatmul.msk.bf16.gmra.mxu3 %vm443_vm0, %v1169_v32  ;;  %v1379_v32 = vld [vmem:[%s2284_s0 + $0x164] sm:$0xf0]  ;;  %v1061_v33 = vor.u32 %v1347_v29, %v1060_v28  ;;  %v1213_v28 = vor.u32 %v1385_v24, %v1212_v23  ;;  %v1228_v23 = vld [vmem:[%s2284_s0 + $0x1b0] sm:$0xf]  ;;  %v1389_v24 = vld [vmem:[%s2284_s0 + $0x1b4] sm:$0xf0] }
  0x28   :  { %v1189_v34 = vor.u32 %v1379_v32, %v1188_v31  ;;  %v1102_v31 = vld [vmem:[%s2284_s0 + $0xb8] sm:$0xf0] }
  0x31   :  { %553 = vmatmul.bf16.gmra.mxu0 %v1021_v37  ;;  %v1081_v37 = vor.u32 %v1350_v35, %v1078_v36 }
  0x32   :  { %633 = vmatmul.bf16.gmra.mxu2 %v1149_v38 }
  0x36   :  { %1305 = vmatmul.msk.bf16.gmra.mxu1 %vm443_vm0, %v1041_v41  ;;  %v1068_v41 = vld [vmem:[%s2284_s0 + $0x70] sm:$0xf] }
  0x37   :  { %1322 = vmatmul.msk.bf16.gmra.mxu3 %vm443_vm0, %v1177_v44  ;;  %v1069_v47 = vor.u32 %v1349_v42, %v1068_v41 }
  0x41   :  { %558 = vmatmul.bf16.gmra.mxu0 %v1029_v49  ;;  %v1352_v49 = vld [vmem:[%s2284_s0 + $0x94] sm:$0xf] }
  0x42   :  { %638 = vmatmul.bf16.gmra.mxu2 %v1157_v50  ;;  %v1086_v50 = vld [vmem:[%s2284_s0 + $0x98] sm:$0xf0] }
  0x43   :  { %v1089_v52 = vor.u32 %v1352_v49, %v1086_v50 }
  0x46   :  { %1306 = vmatmul.msk.bf16.gmra.mxu1 %vm443_vm0, %v1049_v53 }
  0x47   :  { %1323 = vmatmul.msk.bf16.gmra.mxu3 %vm443_vm0, %v1185_v56  ;;  %v1222_v56 = vld [vmem:[%s2284_s0 + $0x1a8] sm:$0xf0] }
  0x48   :  { %v1225_v59 = vor.u32 %v1386_v55, %v1222_v56 }
  0x51   :  { %563 = vmatmul.bf16.gmra.mxu0 %v1037_v61  ;;  %v1712_v61 = vld [vmem:[%s2285_s2] ss:$0 sm:$0xff] }
  0x52   :  { %643 = vmatmul.bf16.gmra.mxu2 %v1165_v62  ;;  %v1204_v62 = vld [vmem:[%s2284_s0 + $0x180] sm:$0xf] }
  0x53   :  { %v1205_v2 = vor.u32 %v1383_v63, %v1204_v62  ;;  %v1358_v62 = vld [vmem:[%s2284_s0 + $0xc4] sm:$0xf]  ;;  %v1110_v63 = vld [vmem:[%s2284_s0 + $0xc8] sm:$0xf0] }
  0x56   :  { %1307 = vmatmul.msk.bf16.gmra.mxu1 %vm443_vm0, %v1057_v1 }
  0x57   :  { %1324 = vmatmul.msk.bf16.gmra.mxu3 %vm443_vm0, %v1193_v4  ;;  %v1354_v4 = vld [vmem:[%s2284_s0 + $0xa4] sm:$0xf] }
  0x58   :  { %v1097_v8 = vor.u32 %v1354_v4, %v1094_v5  ;;  %v1113_v4 = vor.u32 %v1358_v62, %v1110_v63 }
  0x61   :  { %568 = vmatmul.bf16.gmra.mxu0 %v1045_v9 }
  0x62   :  { %648 = vmatmul.bf16.gmra.mxu2 %v1173_v10 }
  0x66   :  { %1308 = vmatmul.msk.bf16.gmra.mxu1 %vm443_vm0, %v1065_v13 }
  0x67   :  { %1325 = vmatmul.msk.bf16.gmra.mxu3 %vm443_vm0, %v1201_v18  ;;  %v1084_v18 = vld [vmem:[%s2284_s0 + $0x90] sm:$0xf] }
  0x68   :  { %v1085_v26 = vor.u32 %v1353_v19, %v1084_v18  ;;  %v1100_v19 = vld [vmem:[%s2284_s0 + $0xb0] sm:$0xf] }
  0x71   :  { %573 = vmatmul.bf16.gmra.mxu0 %v1053_v21 }
  0x72   :  { %653 = vmatmul.bf16.gmra.mxu2 %v1181_v22 }
  0x76   :  { %1309 = vmatmul.msk.bf16.gmra.mxu1 %vm443_vm0, %v1073_v25 }
  0x77   :  { %1326 = vmatmul.msk.bf16.gmra.mxu3 %vm443_vm0, %v1209_v30  ;;  %v1356_v30 = vld [vmem:[%s2284_s0 + $0xb4] sm:$0xf] }
  0x81   :  { %578 = vmatmul.bf16.gmra.mxu0 %v1061_v33 }
  0x82   :  { %658 = vmatmul.bf16.gmra.mxu2 %v1189_v34  ;;  %v1105_v34 = vor.u32 %v1356_v30, %v1102_v31  ;;  %v1229_v30 = vor.u32 %v1389_v24, %v1228_v23  ;;  %v1116_v23 = vld [vmem:[%s2284_s0 + $0xd0] sm:$0xf]  ;;  %v1361_v24 = vld [vmem:[%s2284_s0 + $0xd4] sm:$0xf0] }
  0x83   :  { %v718_v38 = vpop.f32.mrf.mxu1 }
  0x86   :  { %1310 = vmatmul.msk.bf16.gmra.mxu1 %vm443_vm0, %v1081_v37 }
  0x87   :  { %1327 = vmatmul.msk.bf16.gmra.mxu3 %vm443_vm0, %v1217_v43 }
  0x8a   :  { %v1692_v51 = vpop.f32.mrf.mxu3 }
  0x8b   :  { %v720_v44 = vpop.f32.mrf.mxu1 }
  0x91   :  { %583 = vmatmul.bf16.gmra.mxu0 %v1069_v47  ;;  %v1092_v47 = vld [vmem:[%s2284_s0 + $0xa0] sm:$0xf] }
  0x92   :  { %663 = vmatmul.bf16.gmra.mxu2 %v1197_v48  ;;  %v1695_v54 = vpop.f32.mrf.mxu3  ;;  %v1355_v48 = vld [vmem:[%s2284_s0 + $0xa4] sm:$0xf0] }
  0x93   :  { %v723_v53 = vpop.f32.mrf.mxu1  ;;  %v1093_v56 = vor.u32 %v1355_v48, %v1092_v47 }
  0x96   :  { %1311 = vmatmul.msk.bf16.gmra.mxu1 %vm443_vm0, %v1089_v52  ;;  %v1220_v52 = vld [vmem:[%s2284_s0 + $0x1a0] sm:$0xf] }
  0x97   :  { %1328 = vmatmul.msk.bf16.gmra.mxu3 %vm443_vm0, %v1225_v59 }
  0x9a   :  { %v1728_v6 = vpop.f32.mrf.mxu3 }
  0x9b   :  { %v725_v60 = vpop.f32.mrf.mxu1 }
  0x9e   :  { %v549_v1 = vpop.f32.mrf.mxu0 }
  0x9f   :  { %v550_v3 = vadd.f32 %v1712_v61, %v549_v1 }
  0xa1   :  { %v719_v7 = vadd.f32 %v718_v38, %v550_v3  ;;  %588 = vmatmul.bf16.gmra.mxu0 %v1077_v0 }
  0xa2   :  { %668 = vmatmul.bf16.gmra.mxu2 %v1205_v2  ;;  %v1740_v14 = vpop.f32.mrf.mxu3 }
  0xa3   :  { %v878_v9 = vmax.f32 %v719_v7, 0.0  ;;  %v1730_v10 = vpop.f32.mrf.mxu1 }
  0xa5   :  { %942 = vst.msk [vmem:[%s2286_s3] sm:$0xff] %vm443_vm0, %v878_v9  ;;  %v1736_v11 = vpop.f32.mrf.mxu2 }
  0xa6   :  { %1312 = vmatmul.msk.bf16.gmra.mxu1 %vm443_vm0, %v1097_v8  ;;  %v551_v12 = vpop.f32.mrf.mxu0 }
  0xa7   :  { %v552_v13 = vadd.f32 %v1712_v61, %v551_v12  ;;  %1329 = vmatmul.msk.bf16.gmra.mxu3 %vm443_vm0, %v1233_v20  ;;  %v1357_v20 = vld [vmem:[%s2284_s0 + $0xb4] sm:$0xf0] }
  0xa9   :  { %v721_v15 = vadd.f32 %v720_v44, %v552_v13  ;;  %v1390_v44 = vld [vmem:[%s2284_s0 + $0x1c4] sm:$0xf] }
  0xaa   :  { %v1776_v32 = vpop.f32.mrf.mxu3  ;;  %v1241_v49 = vor.u32 %v1390_v44, %v1238_v45 }
  0xab   :  { %v879_v21 = vmax.f32 %v721_v15, 0.0  ;;  %v1754_v22 = vpop.f32.mrf.mxu1 }
  0xad   :  { %943 = vst.msk [vmem:[%s2286_s3 + $0x8] sm:$0xff] %vm443_vm0, %v879_v21  ;;  %v1767_v25 = vpop.f32.mrf.mxu2 }
  0xae   :  { %v554_v27 = vpop.f32.mrf.mxu0 }
  0xaf   :  { %v555_v29 = vadd.f32 %v1712_v61, %v554_v27  ;;  %v1101_v27 = vor.u32 %v1357_v20, %v1100_v19  ;;  %v1396_v20 = vld [vmem:[%s2284_s0 + $0x1f4] sm:$0xf] }
  0xb1   :  { %v724_v33 = vadd.f32 %v723_v53, %v555_v29  ;;  %593 = vmatmul.bf16.gmra.mxu0 %v1085_v26  ;;  %v1387_v53 = vld [vmem:[%s2284_s0 + $0x1a4] sm:$0xf0] }
  0xb2   :  { %673 = vmatmul.bf16.gmra.mxu2 %v1213_v28  ;;  %v1787_v41 = vpop.f32.mrf.mxu3  ;;  %v1221_v59 = vor.u32 %v1387_v53, %v1220_v52  ;;  %v1108_v53 = vld [vmem:[%s2284_s0 + $0xc0] sm:$0xf] }
  0xb3   :  { %v880_v35 = vmax.f32 %v724_v33, 0.0  ;;  %v1778_v36 = vpop.f32.mrf.mxu1  ;;  %v1360_v33 = vld [vmem:[%s2284_s0 + $0xd4] sm:$0xf] }
  0xb5   :  { %944 = vst.msk [vmem:[%s2286_s3 + $0x10] sm:$0xff] %vm443_vm0, %v880_v35  ;;  %v634_v37 = vpop.f32.mrf.mxu2 }
  0xb6   :  { %v635_v38 = vadd.f32 %v1712_v61, %v634_v37  ;;  %1313 = vmatmul.msk.bf16.gmra.mxu1 %vm443_vm0, %v1105_v34  ;;  %v556_v39 = vpop.f32.mrf.mxu0  ;;  %v1118_v34 = vld [vmem:[%s2284_s0 + $0xd8] sm:$0xf0] }
  0xb7   :  { %v557_v40 = vadd.f32 %v1712_v61, %v556_v39  ;;  %1330 = vmatmul.msk.bf16.gmra.mxu3 %vm443_vm0, %v1241_v49  ;;  %v1394_v49 = vld [vmem:[%s2284_s0 + $0x1e4] sm:$0xf] }
  0xb8   :  { %v804_v42 = vadd.f32 %v1692_v51, %v635_v38 }
  0xb9   :  { %v726_v43 = vadd.f32 %v725_v60, %v557_v40  ;;  %v1121_v40 = vor.u32 %v1360_v33, %v1118_v34 }
  0xba   :  { %v912_v46 = vmax.f32 %v804_v42, 0.0  ;;  %v1827_v0 = vpop.f32.mrf.mxu3 }
  0xbb   :  { %v881_v50 = vmax.f32 %v726_v43, 0.0  ;;  %v1802_v51 = vpop.f32.mrf.mxu1 }
  0xbc   :  { %976 = vst.msk [vmem:[%s2286_s3 + $0x110] sm:$0xff] %vm443_vm0, %v912_v46 }
  0xbd   :  { %945 = vst.msk [vmem:[%s2286_s3 + $0x18] sm:$0xff] %vm443_vm0, %v881_v50  ;;  %v636_v55 = vpop.f32.mrf.mxu2  ;;  %v1254_v50 = vld [vmem:[%s2284_s0 + $0x1e8] sm:$0xf0] }
  0xbe   :  { %v637_v57 = vadd.f32 %v1712_v61, %v636_v55  ;;  %v559_v58 = vpop.f32.mrf.mxu0  ;;  %v1359_v55 = vld [vmem:[%s2284_s0 + $0xc4] sm:$0xf0] }
  0xbf   :  { %v560_v60 = vadd.f32 %v1712_v61, %v559_v58  ;;  %v1391_v58 = vld [vmem:[%s2284_s0 + $0x1c4] sm:$0xf0] }
  0xc0   :  { %v806_v1 = vadd.f32 %v1695_v54, %v637_v57  ;;  %v1236_v57 = vld [vmem:[%s2284_s0 + $0x1c0] sm:$0xf] }
  0xc1   :  { %v729_v2 = vadd.f32 %v1730_v10, %v560_v60  ;;  %598 = vmatmul.bf16.gmra.mxu0 %v1093_v56  ;;  %v1109_v60 = vor.u32 %v1359_v55, %v1108_v53 }
  0xc2   :  { %v913_v3 = vmax.f32 %v806_v1, 0.0  ;;  %678 = vmatmul.bf16.gmra.mxu2 %v1221_v59  ;;  %v1844_v12 = vpop.f32.mrf.mxu3  ;;  %v1237_v1 = vor.u32 %v1391_v58, %v1236_v57 }
  0xc3   :  { %v882_v5 = vmax.f32 %v729_v2, 0.0  ;;  %v1831_v7 = vpop.f32.mrf.mxu1 }
  0xc4   :  { %977 = vst.msk [vmem:[%s2286_s3 + $0x118] sm:$0xff] %vm443_vm0, %v913_v3  ;;  %v1362_v3 = vld [vmem:[%s2284_s0 + $0xe4] sm:$0xf] }
  0xc5   :  { %946 = vst.msk [vmem:[%s2286_s3 + $0x20] sm:$0xff] %vm443_vm0, %v882_v5  ;;  %v639_v54 = vpop.f32.mrf.mxu2 }
  0xc6   :  { %v640_v8 = vadd.f32 %v1712_v61, %v639_v54  ;;  %1314 = vmatmul.msk.bf16.gmra.mxu1 %vm443_vm0, %v1113_v4  ;;  %v561_v9 = vpop.f32.mrf.mxu0  ;;  %v1126_v4 = vld [vmem:[%s2284_s0 + $0xe8] sm:$0xf0] }
  0xc7   :  { %v562_v10 = vadd.f32 %v1712_v61, %v561_v9 }
  0xc8   :  { %v809_v13 = vadd.f32 %v1728_v6, %v640_v8  ;;  %v1249_v6 = vor.u32 %v1392_v16, %v1246_v17 }
  0xc9   :  { %v731_v15 = vadd.f32 %v1754_v22, %v562_v10  ;;  %v1129_v10 = vor.u32 %v1362_v3, %v1126_v4  ;;  %v1366_v3 = vld [vmem:[%s2284_s0 + $0x104] sm:$0xf]  ;;  %v1142_v4 = vld [vmem:[%s2284_s0 + $0x108] sm:$0xf0] }
  0xca   :  { %v914_v18 = vmax.f32 %v809_v13, 0.0  ;;  %1331 = vmatmul.msk.bf16.gmra.mxu3 %vm443_vm0, %v1249_v6  ;;  %v1885_v35 = vpop.f32.mrf.mxu3  ;;  %v1262_v6 = vld [vmem:[%s2284_s0 + $0x1f8] sm:$0xf0] }
  0xcb   :  { %v883_v21 = vmax.f32 %v731_v15, 0.0  ;;  %v1860_v22 = vpop.f32.mrf.mxu1 }
  0xcc   :  { %978 = vst.msk [vmem:[%s2286_s3 + $0x120] sm:$0xff] %vm443_vm0, %v914_v18 }
  0xcd   :  { %947 = vst.msk [vmem:[%s2286_s3 + $0x28] sm:$0xff] %vm443_vm0, %v883_v21  ;;  %v641_v26 = vpop.f32.mrf.mxu2 }
  0xce   :  { %v642_v28 = vadd.f32 %v1712_v61, %v641_v26  ;;  %v564_v29 = vpop.f32.mrf.mxu0 }
  0xcf   :  { %v565_v31 = vadd.f32 %v1712_v61, %v564_v29 }
  0xd0   :  { %v811_v37 = vadd.f32 %v1740_v14, %v642_v28  ;;  %v1393_v28 = vld [vmem:[%s2284_s0 + $0x1d4] sm:$0xf0] }
  0xd1   :  { %v734_v38 = vadd.f32 %v1778_v36, %v565_v31  ;;  %603 = vmatmul.bf16.gmra.mxu0 %v1101_v27  ;;  %v1244_v27 = vld [vmem:[%s2284_s0 + $0x1d0] sm:$0xf]  ;;  %v1117_v31 = vor.u32 %v1361_v24, %v1116_v23  ;;  %v1365_v23 = vld [vmem:[%s2284_s0 + $0xf4] sm:$0xf0] }
  0xd2   :  { %v915_v39 = vmax.f32 %v811_v37, 0.0  ;;  %683 = vmatmul.bf16.gmra.mxu2 %v1229_v30  ;;  %v1902_v46 = vpop.f32.mrf.mxu3  ;;  %v1245_v37 = vor.u32 %v1393_v28, %v1244_v27 }
  0xd3   :  { %v884_v42 = vmax.f32 %v734_v38, 0.0  ;;  %v1889_v43 = vpop.f32.mrf.mxu1 }
  0xd4   :  { %979 = vst.msk [vmem:[%s2286_s3 + $0x128] sm:$0xff] %vm443_vm0, %v915_v39  ;;  %v1364_v39 = vld [vmem:[%s2284_s0 + $0xf4] sm:$0xf] }
  0xd5   :  { %948 = vst.msk [vmem:[%s2286_s3 + $0x30] sm:$0xff] %vm443_vm0, %v884_v42  ;;  %v644_v14 = vpop.f32.mrf.mxu2 }
  0xd6   :  { %v645_v36 = vadd.f32 %v1712_v61, %v644_v14  ;;  %1315 = vmatmul.msk.bf16.gmra.mxu1 %vm443_vm0, %v1121_v40  ;;  %v566_v44 = vpop.f32.mrf.mxu0  ;;  %v1134_v40 = vld [vmem:[%s2284_s0 + $0xf8] sm:$0xf0] }
  0xd7   :  { %v567_v45 = vadd.f32 %v1712_v61, %v566_v44  ;;  %v1137_v44 = vor.u32 %v1364_v39, %v1134_v40 }
  0xd8   :  { %v814_v47 = vadd.f32 %v1776_v32, %v645_v36  ;;  %v1257_v32 = vor.u32 %v1394_v49, %v1254_v50 }
  0xd9   :  { %v736_v48 = vadd.f32 %v1802_v51, %v567_v45 }
  0xda   :  { %v916_v52 = vmax.f32 %v814_v47, 0.0  ;;  %1332 = vmatmul.msk.bf16.gmra.mxu3 %vm443_vm0, %v1257_v32  ;;  %v1945_v8 = vpop.f32.mrf.mxu3  ;;  %v1124_v32 = vld [vmem:[%s2284_s0 + $0xe0] sm:$0xf] }
  0xdb   :  { %v885_v56 = vmax.f32 %v736_v48, 0.0  ;;  %v1918_v51 = vpop.f32.mrf.mxu1 }
  0xdc   :  { %980 = vst.msk [vmem:[%s2286_s3 + $0x130] sm:$0xff] %vm443_vm0, %v916_v52 }
  0xdd   :  { %949 = vst.msk [vmem:[%s2286_s3 + $0x38] sm:$0xff] %vm443_vm0, %v885_v56  ;;  %v646_v59 = vpop.f32.mrf.mxu2  ;;  %v1363_v56 = vld [vmem:[%s2284_s0 + $0xe4] sm:$0xf0] }
  0xde   :  { %v647_v62 = vadd.f32 %v1712_v61, %v646_v59  ;;  %v569_v63 = vpop.f32.mrf.mxu0  ;;  %v1252_v59 = vld [vmem:[%s2284_s0 + $0x1e0] sm:$0xf] }
  0xdf   :  { %v570_v2 = vadd.f32 %v1712_v61, %v569_v63 }
  0xe0   :  { %v816_v5 = vadd.f32 %v1787_v41, %v647_v62 }
  0xe1   :  { %v739_v54 = vadd.f32 %v1831_v7, %v570_v2  ;;  %608 = vmatmul.bf16.gmra.mxu0 %v1109_v60  ;;  %v1125_v60 = vor.u32 %v1363_v56, %v1124_v32 }
  0xe2   :  { %v917_v9 = vmax.f32 %v816_v5, 0.0  ;;  %688 = vmatmul.bf16.gmra.mxu2 %v1237_v1  ;;  %v1982_v29 = vpop.f32.mrf.mxu3 }
  0xe3   :  { %v886_v13 = vmax.f32 %v739_v54, 0.0  ;;  %v1947_v15 = vpop.f32.mrf.mxu1 }
  0xe4   :  { %981 = vst.msk [vmem:[%s2286_s3 + $0x138] sm:$0xff] %vm443_vm0, %v917_v9 }
  0xe5   :  { %950 = vst.msk [vmem:[%s2286_s3 + $0x40] sm:$0xff] %vm443_vm0, %v886_v13  ;;  %v649_v41 = vpop.f32.mrf.mxu2  ;;  %v1145_v13 = vor.u32 %v1366_v3, %v1142_v4 }
  0xe6   :  { %v650_v7 = vadd.f32 %v1712_v61, %v649_v41  ;;  %1316 = vmatmul.msk.bf16.gmra.mxu1 %vm443_vm0, %v1129_v10  ;;  %v571_v16 = vpop.f32.mrf.mxu0 }
  0xe7   :  { %v572_v17 = vadd.f32 %v1712_v61, %v571_v16 }
  0xe8   :  { %v819_v18 = vadd.f32 %v1827_v0, %v650_v7  ;;  %v1265_v0 = vor.u32 %v1396_v20, %v1262_v6 }
  0xe9   :  { %v741_v19 = vadd.f32 %v1860_v22, %v572_v17 }
  0xea   :  { %v918_v21 = vmax.f32 %v819_v18, 0.0  ;;  %1333 = vmatmul.msk.bf16.gmra.mxu3 %vm443_vm0, %v1265_v0  ;;  %v2013_v48 = vpop.f32.mrf.mxu3 }
  0xeb   :  { %v887_v26 = vmax.f32 %v741_v19, 0.0  ;;  %v1974_v22 = vpop.f32.mrf.mxu1 }
  0xec   :  { %982 = vst.msk [vmem:[%s2286_s3 + $0x140] sm:$0xff] %vm443_vm0, %v918_v21  ;;  %v1132_v21 = vld [vmem:[%s2284_s0 + $0xf0] sm:$0xf] }
  0xed   :  { %951 = vst.msk [vmem:[%s2286_s3 + $0x48] sm:$0xff] %vm443_vm0, %v887_v26  ;;  %v651_v30 = vpop.f32.mrf.mxu2  ;;  %v1260_v26 = vld [vmem:[%s2284_s0 + $0x1f0] sm:$0xf]  ;;  %v1133_v27 = vor.u32 %v1365_v23, %v1132_v21 }
  0xee   :  { %v652_v33 = vadd.f32 %v1712_v61, %v651_v30  ;;  %v574_v34 = vpop.f32.mrf.mxu0 }
  0xef   :  { %v575_v38 = vadd.f32 %v1712_v61, %v574_v34 }
  0xf0   :  { %v821_v42 = vadd.f32 %v1844_v12, %v652_v33 }
  0xf1   :  { %v744_v14 = vadd.f32 %v1889_v43, %v575_v38  ;;  %613 = vmatmul.bf16.gmra.mxu0 %v1117_v31 }
  0xf2   :  { %v919_v36 = vmax.f32 %v821_v42, 0.0  ;;  %693 = vmatmul.bf16.gmra.mxu2 %v1245_v37  ;;  %v835_v5 = vpop.f32.mrf.mxu3 }
  0xf3   :  { %v888_v45 = vmax.f32 %v744_v14, 0.0  ;;  %v2003_v47 = vpop.f32.mrf.mxu1 }
  0xf4   :  { %983 = vst.msk [vmem:[%s2286_s3 + $0x148] sm:$0xff] %vm443_vm0, %v919_v36 }
  0xf5   :  { %952 = vst.msk [vmem:[%s2286_s3 + $0x50] sm:$0xff] %vm443_vm0, %v888_v45  ;;  %v654_v12 = vpop.f32.mrf.mxu2 }
  0xf6   :  { %v655_v43 = vadd.f32 %v1712_v61, %v654_v12  ;;  %1317 = vmatmul.msk.bf16.gmra.mxu1 %vm443_vm0, %v1137_v44  ;;  %v576_v49 = vpop.f32.mrf.mxu0 }
  0xf7   :  { %v577_v50 = vadd.f32 %v1712_v61, %v576_v49 }
  0xf8   :  { %v824_v52 = vadd.f32 %v1885_v35, %v655_v43  ;;  %v1395_v35 = vld [vmem:[%s2284_s0 + $0x1e4] sm:$0xf0] }
  0xf9   :  { %v746_v53 = vadd.f32 %v1918_v51, %v577_v50  ;;  %v1253_v1 = vor.u32 %v1395_v35, %v1252_v59 }
  0xfa   :  { %v920_v55 = vmax.f32 %v824_v52, 0.0  ;;  %v838_v20 = vpop.f32.mrf.mxu3 }
  0xfb   :  { %v889_v57 = vmax.f32 %v746_v53, 0.0  ;;  %v755_v58 = vpop.f32.mrf.mxu1 }
  0xfc   :  { %984 = vst.msk [vmem:[%s2286_s3 + $0x150] sm:$0xff] %vm443_vm0, %v920_v55 }
  0xfd   :  { %953 = vst.msk [vmem:[%s2286_s3 + $0x58] sm:$0xff] %vm443_vm0, %v889_v57  ;;  %v656_v51 = vpop.f32.mrf.mxu2 }
  0xfe   :  { %v657_v62 = vadd.f32 %v1712_v61, %v656_v51  ;;  %v579_v63 = vpop.f32.mrf.mxu0 }
  0xff   :  { %v580_v2 = vadd.f32 %v1712_v61, %v579_v63 }
 0x100   :  { %v826_v54 = vadd.f32 %v1902_v46, %v657_v62 }
 0x101   :  { %v749_v9 = vadd.f32 %v1947_v15, %v580_v2  ;;  %618 = vmatmul.bf16.gmra.mxu0 %v1125_v60 }
 0x102   :  { %v921_v10 = vmax.f32 %v826_v54, 0.0  ;;  %698 = vmatmul.bf16.gmra.mxu2 %v1253_v1  ;;  %v840_v42 = vpop.f32.mrf.mxu3 }
 0x103   :  { %v890_v41 = vmax.f32 %v749_v9, 0.0  ;;  %v758_v7 = vpop.f32.mrf.mxu1 }
 0x104   :  { %985 = vst.msk [vmem:[%s2286_s3 + $0x158] sm:$0xff] %vm443_vm0, %v921_v10 }
 0x105   :  { %954 = vst.msk [vmem:[%s2286_s3 + $0x60] sm:$0xff] %vm443_vm0, %v890_v41  ;;  %v659_v16 = vpop.f32.mrf.mxu2 }
 0x106   :  { %v660_v46 = vadd.f32 %v1712_v61, %v659_v16  ;;  %1318 = vmatmul.msk.bf16.gmra.mxu1 %vm443_vm0, %v1145_v13  ;;  %v581_v15 = vpop.f32.mrf.mxu0 }
 0x107   :  { %v582_v17 = vadd.f32 %v1712_v61, %v581_v15 }
 0x108   :  { %v829_v18 = vadd.f32 %v1945_v8, %v660_v46  ;;  %v1397_v8 = vld [vmem:[%s2284_s0 + $0x1f4] sm:$0xf0] }
 0x109   :  { %v751_v19 = vadd.f32 %v1974_v22, %v582_v17  ;;  %v1261_v31 = vor.u32 %v1397_v8, %v1260_v26 }
 0x10a   :  { %v922_v6 = vmax.f32 %v829_v18, 0.0  ;;  %v843_v52 = vpop.f32.mrf.mxu3 }
 0x10b   :  { %v891_v24 = vmax.f32 %v751_v19, 0.0  ;;  %v760_v0 = vpop.f32.mrf.mxu1 }
 0x10c   :  { %986 = vst.msk [vmem:[%s2286_s3 + $0x160] sm:$0xff] %vm443_vm0, %v922_v6 }
 0x10d   :  { %955 = vst.msk [vmem:[%s2286_s3 + $0x68] sm:$0xff] %vm443_vm0, %v891_v24  ;;  %v661_v22 = vpop.f32.mrf.mxu2 }
 0x10e   :  { %v662_v28 = vadd.f32 %v1712_v61, %v661_v22  ;;  %v584_v30 = vpop.f32.mrf.mxu0 }
 0x10f   :  { %v585_v33 = vadd.f32 %v1712_v61, %v584_v30 }
 0x110   :  { %v831_v34 = vadd.f32 %v1982_v29, %v662_v28 }
 0x111   :  { %v754_v37 = vadd.f32 %v2003_v47, %v585_v33  ;;  %623 = vmatmul.bf16.gmra.mxu0 %v1133_v27 }
 0x112   :  { %v923_v38 = vmax.f32 %v831_v34, 0.0  ;;  %703 = vmatmul.bf16.gmra.mxu2 %v1261_v31  ;;  %v845_v63 = vpop.f32.mrf.mxu3 }
 0x113   :  { %v892_v39 = vmax.f32 %v754_v37, 0.0  ;;  %v763_v40 = vpop.f32.mrf.mxu1 }
 0x114   :  { %987 = vst.msk [vmem:[%s2286_s3 + $0x168] sm:$0xff] %vm443_vm0, %v923_v38 }
 0x115   :  { %956 = vst.msk [vmem:[%s2286_s3 + $0x70] sm:$0xff] %vm443_vm0, %v892_v39  ;;  %v664_v14 = vpop.f32.mrf.mxu2 }
 0x116   :  { %v665_v29 = vadd.f32 %v1712_v61, %v664_v14  ;;  %v586_v36 = vpop.f32.mrf.mxu0 }
 0x117   :  { %v587_v44 = vadd.f32 %v1712_v61, %v586_v36 }
 0x118   :  { %v834_v45 = vadd.f32 %v2013_v48, %v665_v29 }
 0x119   :  { %v756_v47 = vadd.f32 %v755_v58, %v587_v44 }
 0x11a   :  { %v924_v12 = vmax.f32 %v834_v45, 0.0  ;;  %v848_v16 = vpop.f32.mrf.mxu3 }
 0x11b   :  { %v893_v43 = vmax.f32 %v756_v47, 0.0  ;;  %v765_v49 = vpop.f32.mrf.mxu1 }
 0x11c   :  { %988 = vst.msk [vmem:[%s2286_s3 + $0x170] sm:$0xff] %vm443_vm0, %v924_v12 }
 0x11d   :  { %957 = vst.msk [vmem:[%s2286_s3 + $0x78] sm:$0xff] %vm443_vm0, %v893_v43  ;;  %v666_v50 = vpop.f32.mrf.mxu2 }
 0x11e   :  { %v667_v53 = vadd.f32 %v1712_v61, %v666_v50  ;;  %v589_v55 = vpop.f32.mrf.mxu0 }
 0x11f   :  { %v590_v48 = vadd.f32 %v1712_v61, %v589_v55 }
 0x120   :  { %v836_v32 = vadd.f32 %v835_v5, %v667_v53 }
 0x121   :  { %v759_v56 = vadd.f32 %v758_v7, %v590_v48 }
 0x122   :  { %v925_v57 = vmax.f32 %v836_v32, 0.0  ;;  %v850_v8 = vpop.f32.mrf.mxu3 }
 0x123   :  { %v894_v58 = vmax.f32 %v759_v56, 0.0  ;;  %v768_v59 = vpop.f32.mrf.mxu1 }
 0x124   :  { %989 = vst.msk [vmem:[%s2286_s3 + $0x178] sm:$0xff] %vm443_vm0, %v925_v57 }
 0x125   :  { %958 = vst.msk [vmem:[%s2286_s3 + $0x80] sm:$0xff] %vm443_vm0, %v894_v58  ;;  %v669_v35 = vpop.f32.mrf.mxu2 }
 0x126   :  { %v670_v51 = vadd.f32 %v1712_v61, %v669_v35  ;;  %v591_v60 = vpop.f32.mrf.mxu0 }
 0x127   :  { %v592_v62 = vadd.f32 %v1712_v61, %v591_v60 }
 0x128   :  { %v839_v1 = vadd.f32 %v838_v20, %v670_v51 }
 0x129   :  { %v761_v2 = vadd.f32 %v760_v0, %v592_v62 }
 0x12a   :  { %v926_v3 = vmax.f32 %v839_v1, 0.0 }
 0x12b   :  { %v895_v4 = vmax.f32 %v761_v2, 0.0  ;;  %v770_v5 = vpop.f32.mrf.mxu1 }
 0x12c   :  { %990 = vst.msk [vmem:[%s2286_s3 + $0x180] sm:$0xff] %vm443_vm0, %v926_v3 }
 0x12d   :  { %959 = vst.msk [vmem:[%s2286_s3 + $0x88] sm:$0xff] %vm443_vm0, %v895_v4  ;;  %v671_v54 = vpop.f32.mrf.mxu2 }
 0x12e   :  { %v672_v9 = vadd.f32 %v1712_v61, %v671_v54  ;;  %v594_v10 = vpop.f32.mrf.mxu0 }
 0x12f   :  { %v595_v13 = vadd.f32 %v1712_v61, %v594_v10 }
 0x130   :  { %v841_v41 = vadd.f32 %v840_v42, %v672_v9 }
 0x131   :  { %v764_v7 = vadd.f32 %v763_v40, %v595_v13  ;;  %v853_v40 = vpop.f32.mrf.mxu3 }
 0x132   :  { %v927_v46 = vmax.f32 %v841_v41, 0.0 }
 0x133   :  { %v896_v15 = vmax.f32 %v764_v7, 0.0  ;;  %v773_v17 = vpop.f32.mrf.mxu1 }
 0x134   :  { %991 = vst.msk [vmem:[%s2286_s3 + $0x188] sm:$0xff] %vm443_vm0, %v927_v46 }
 0x135   :  { %960 = vst.msk [vmem:[%s2286_s3 + $0x90] sm:$0xff] %vm443_vm0, %v896_v15  ;;  %v674_v18 = vpop.f32.mrf.mxu2 }
 0x136   :  { %v675_v19 = vadd.f32 %v1712_v61, %v674_v18  ;;  %v596_v20 = vpop.f32.mrf.mxu0 }
 0x137   :  { %v597_v6 = vadd.f32 %v1712_v61, %v596_v20 }
 0x138   :  { %v844_v21 = vadd.f32 %v843_v52, %v675_v19 }
 0x139   :  { %v766_v23 = vadd.f32 %v765_v49, %v597_v6  ;;  %v855_v53 = vpop.f32.mrf.mxu3 }
 0x13a   :  { %v928_v24 = vmax.f32 %v844_v21, 0.0 }
 0x13b   :  { %v897_v0 = vmax.f32 %v766_v23, 0.0  ;;  %v775_v26 = vpop.f32.mrf.mxu1 }
 0x13c   :  { %992 = vst.msk [vmem:[%s2286_s3 + $0x190] sm:$0xff] %vm443_vm0, %v928_v24 }
 0x13d   :  { %961 = vst.msk [vmem:[%s2286_s3 + $0x98] sm:$0xff] %vm443_vm0, %v897_v0  ;;  %v676_v22 = vpop.f32.mrf.mxu2 }
 0x13e   :  { %v677_v27 = vadd.f32 %v1712_v61, %v676_v22  ;;  %v599_v28 = vpop.f32.mrf.mxu0 }
 0x13f   :  { %v600_v30 = vadd.f32 %v1712_v61, %v599_v28 }
 0x140   :  { %v846_v31 = vadd.f32 %v845_v63, %v677_v27 }
 0x141   :  { %v769_v33 = vadd.f32 %v768_v59, %v600_v30  ;;  %v858_v63 = vpop.f32.mrf.mxu3 }
 0x142   :  { %v929_v34 = vmax.f32 %v846_v31, 0.0 }
 0x143   :  { %v898_v37 = vmax.f32 %v769_v33, 0.0  ;;  %v778_v38 = vpop.f32.mrf.mxu1 }
 0x144   :  { %993 = vst.msk [vmem:[%s2286_s3 + $0x198] sm:$0xff] %vm443_vm0, %v929_v34 }
 0x145   :  { %962 = vst.msk [vmem:[%s2286_s3 + $0xa0] sm:$0xff] %vm443_vm0, %v898_v37  ;;  %v679_v39 = vpop.f32.mrf.mxu2 }
 0x146   :  { %v680_v42 = vadd.f32 %v1712_v61, %v679_v39  ;;  %v601_v14 = vpop.f32.mrf.mxu0 }
 0x147   :  { %v602_v29 = vadd.f32 %v1712_v61, %v601_v14 }
 0x148   :  { %v849_v36 = vadd.f32 %v848_v16, %v680_v42 }
 0x149   :  { %v771_v44 = vadd.f32 %v770_v5, %v602_v29  ;;  %v860_v46 = vpop.f32.mrf.mxu3 }
 0x14a   :  { %v930_v45 = vmax.f32 %v849_v36, 0.0 }
 0x14b   :  { %v899_v47 = vmax.f32 %v771_v44, 0.0  ;;  %v780_v12 = vpop.f32.mrf.mxu1 }
 0x14c   :  { %994 = vst.msk [vmem:[%s2286_s3 + $0x1a0] sm:$0xff] %vm443_vm0, %v930_v45 }
 0x14d   :  { %963 = vst.msk [vmem:[%s2286_s3 + $0xa8] sm:$0xff] %vm443_vm0, %v899_v47  ;;  %v681_v43 = vpop.f32.mrf.mxu2 }
 0x14e   :  { %v682_v49 = vadd.f32 %v1712_v61, %v681_v43  ;;  %v604_v50 = vpop.f32.mrf.mxu0 }
 0x14f   :  { %v605_v52 = vadd.f32 %v1712_v61, %v604_v50 }
 0x150   :  { %v851_v55 = vadd.f32 %v850_v8, %v682_v49 }
 0x151   :  { %v774_v48 = vadd.f32 %v773_v17, %v605_v52 }
 0x152   :  { %v931_v32 = vmax.f32 %v851_v55, 0.0  ;;  %v630_v55 = vadd.f32 %v1712_v61, %v1736_v11 }
 0x153   :  { %v900_v56 = vmax.f32 %v774_v48, 0.0  ;;  %v783_v57 = vpop.f32.mrf.mxu1 }
 0x154   :  { %995 = vst.msk [vmem:[%s2286_s3 + $0x1a8] sm:$0xff] %vm443_vm0, %v931_v32 }
 0x155   :  { %964 = vst.msk [vmem:[%s2286_s3 + $0xb0] sm:$0xff] %vm443_vm0, %v900_v56  ;;  %v684_v58 = vpop.f32.mrf.mxu2 }
 0x156   :  { %v685_v59 = vadd.f32 %v1712_v61, %v684_v58  ;;  %v606_v35 = vpop.f32.mrf.mxu0 }
 0x157   :  { %v607_v51 = vadd.f32 %v1712_v61, %v606_v35 }
 0x158   :  { %v854_v60 = vadd.f32 %v853_v40, %v685_v59 }
 0x159   :  { %v776_v62 = vadd.f32 %v775_v26, %v607_v51  ;;  %v863_v26 = vpop.f32.mrf.mxu3 }
 0x15a   :  { %v932_v1 = vmax.f32 %v854_v60, 0.0 }
 0x15b   :  { %v901_v2 = vmax.f32 %v776_v62, 0.0  ;;  %v785_v3 = vpop.f32.mrf.mxu1 }
 0x15c   :  { %996 = vst.msk [vmem:[%s2286_s3 + $0x1b0] sm:$0xff] %vm443_vm0, %v932_v1 }
 0x15d   :  { %965 = vst.msk [vmem:[%s2286_s3 + $0xb8] sm:$0xff] %vm443_vm0, %v901_v2  ;;  %v686_v4 = vpop.f32.mrf.mxu2 }
 0x15e   :  { %v687_v5 = vadd.f32 %v1712_v61, %v686_v4  ;;  %v609_v54 = vpop.f32.mrf.mxu0 }
 0x15f   :  { %v610_v9 = vadd.f32 %v1712_v61, %v609_v54 }
 0x160   :  { %v856_v10 = vadd.f32 %v855_v53, %v687_v5 }
 0x161   :  { %v779_v13 = vadd.f32 %v778_v38, %v610_v9  ;;  %v865_v42 = vpop.f32.mrf.mxu3 }
 0x162   :  { %v933_v41 = vmax.f32 %v856_v10, 0.0 }
 0x163   :  { %v902_v7 = vmax.f32 %v779_v13, 0.0  ;;  %v788_v16 = vpop.f32.mrf.mxu1 }
 0x164   :  { %997 = vst.msk [vmem:[%s2286_s3 + $0x1b8] sm:$0xff] %vm443_vm0, %v933_v41 }
 0x165   :  { %966 = vst.msk [vmem:[%s2286_s3 + $0xc0] sm:$0xff] %vm443_vm0, %v902_v7  ;;  %v689_v15 = vpop.f32.mrf.mxu2 }
 0x166   :  { %v690_v17 = vadd.f32 %v1712_v61, %v689_v15  ;;  %v611_v18 = vpop.f32.mrf.mxu0 }
 0x167   :  { %v612_v19 = vadd.f32 %v1712_v61, %v611_v18 }
 0x168   :  { %v859_v20 = vadd.f32 %v858_v63, %v690_v17  ;;  %v632_v63 = vadd.f32 %v1712_v61, %v1767_v25 }
 0x169   :  { %v781_v6 = vadd.f32 %v780_v12, %v612_v19  ;;  %v868_v53 = vpop.f32.mrf.mxu3 }
 0x16a   :  { %v934_v21 = vmax.f32 %v859_v20, 0.0 }
 0x16b   :  { %v903_v23 = vmax.f32 %v781_v6, 0.0  ;;  %v790_v24 = vpop.f32.mrf.mxu1 }
 0x16c   :  { %998 = vst.msk [vmem:[%s2286_s3 + $0x1c0] sm:$0xff] %vm443_vm0, %v934_v21 }
 0x16d   :  { %967 = vst.msk [vmem:[%s2286_s3 + $0xc8] sm:$0xff] %vm443_vm0, %v903_v23  ;;  %v691_v0 = vpop.f32.mrf.mxu2 }
 0x16e   :  { %v692_v8 = vadd.f32 %v1712_v61, %v691_v0  ;;  %v614_v22 = vpop.f32.mrf.mxu0 }
 0x16f   :  { %v615_v27 = vadd.f32 %v1712_v61, %v614_v22 }
 0x170   :  { %v861_v28 = vadd.f32 %v860_v46, %v692_v8 }
 0x171   :  { %v784_v30 = vadd.f32 %v783_v57, %v615_v27 }
 0x172   :  { %v935_v31 = vmax.f32 %v861_v28, 0.0 }
 0x173   :  { %v904_v33 = vmax.f32 %v784_v30, 0.0  ;;  %v793_v34 = vpop.f32.mrf.mxu1 }
 0x174   :  { %999 = vst.msk [vmem:[%s2286_s3 + $0x1c8] sm:$0xff] %vm443_vm0, %v935_v31 }
 0x175   :  { %968 = vst.msk [vmem:[%s2286_s3 + $0xd0] sm:$0xff] %vm443_vm0, %v904_v33  ;;  %v694_v37 = vpop.f32.mrf.mxu2 }
 0x176   :  { %v695_v38 = vadd.f32 %v1712_v61, %v694_v37  ;;  %v616_v39 = vpop.f32.mrf.mxu0 }
 0x177   :  { %v617_v40 = vadd.f32 %v1712_v61, %v616_v39 }
 0x178   :  { %v864_v14 = vadd.f32 %v863_v26, %v695_v38 }
 0x179   :  { %v786_v29 = vadd.f32 %v785_v3, %v617_v40  ;;  %v870_v3 = vpop.f32.mrf.mxu3 }
 0x17a   :  { %v936_v36 = vmax.f32 %v864_v14, 0.0 }
 0x17b   :  { %v905_v44 = vmax.f32 %v786_v29, 0.0  ;;  %v795_v45 = vpop.f32.mrf.mxu1 }
 0x17c   :  { %1000 = vst.msk [vmem:[%s2286_s3 + $0x1d0] sm:$0xff] %vm443_vm0, %v936_v36 }
 0x17d   :  { %969 = vst.msk [vmem:[%s2286_s3 + $0xd8] sm:$0xff] %vm443_vm0, %v905_v44  ;;  %v696_v47 = vpop.f32.mrf.mxu2 }
 0x17e   :  { %v697_v12 = vadd.f32 %v1712_v61, %v696_v47  ;;  %v619_v43 = vpop.f32.mrf.mxu0 }
 0x17f   :  { %v620_v49 = vadd.f32 %v1712_v61, %v619_v43 }
 0x180   :  { %v866_v50 = vadd.f32 %v865_v42, %v697_v12 }
 0x181   :  { %v789_v52 = vadd.f32 %v788_v16, %v620_v49  ;;  %v873_v15 = vpop.f32.mrf.mxu3 }
 0x182   :  { %v937_v48 = vmax.f32 %v866_v50, 0.0 }
 0x183   :  { %v906_v32 = vmax.f32 %v789_v52, 0.0  ;;  %v798_v56 = vpop.f32.mrf.mxu1 }
 0x184   :  { %1001 = vst.msk [vmem:[%s2286_s3 + $0x1d8] sm:$0xff] %vm443_vm0, %v937_v48  ;;  %v799_v57 = vadd.f32 %v798_v56, %v630_v55 }
 0x185   :  { %970 = vst.msk [vmem:[%s2286_s3 + $0xe0] sm:$0xff] %vm443_vm0, %v906_v32  ;;  %v699_v58 = vpop.f32.mrf.mxu2 }
 0x186   :  { %v910_v59 = vmax.f32 %v799_v57, 0.0  ;;  %v700_v35 = vadd.f32 %v1712_v61, %v699_v58  ;;  %v621_v51 = vpop.f32.mrf.mxu0 }
 0x187   :  { %v622_v11 = vadd.f32 %v1712_v61, %v621_v51 }
 0x188   :  { %974 = vst.msk [vmem:[%s2286_s3 + $0x100] sm:$0xff] %vm443_vm0, %v910_v59  ;;  %v869_v60 = vadd.f32 %v868_v53, %v700_v35 }
 0x189   :  { %v791_v62 = vadd.f32 %v790_v24, %v622_v11  ;;  %v875_v8 = vpop.f32.mrf.mxu3 }
 0x18a   :  { %v938_v1 = vmax.f32 %v869_v60, 0.0 }
 0x18b   :  { %v907_v2 = vmax.f32 %v791_v62, 0.0  ;;  %v800_v4 = vpop.f32.mrf.mxu1 }
 0x18c   :  { %1002 = vst.msk [vmem:[%s2286_s3 + $0x1e0] sm:$0xff] %vm443_vm0, %v938_v1  ;;  %v801_v5 = vadd.f32 %v800_v4, %v632_v63 }
 0x18d   :  { %971 = vst.msk [vmem:[%s2286_s3 + $0xe8] sm:$0xff] %vm443_vm0, %v907_v2  ;;  %v701_v54 = vpop.f32.mrf.mxu2 }
 0x18e   :  { %v911_v9 = vmax.f32 %v801_v5, 0.0  ;;  %v702_v10 = vadd.f32 %v1712_v61, %v701_v54  ;;  %v624_v25 = vpop.f32.mrf.mxu0 }
 0x18f   :  { %v625_v13 = vadd.f32 %v1712_v61, %v624_v25 }
 0x190   :  { %975 = vst.msk [vmem:[%s2286_s3 + $0x108] sm:$0xff] %vm443_vm0, %v911_v9  ;;  %v871_v41 = vadd.f32 %v870_v3, %v702_v10 }
 0x191   :  { %v794_v7 = vadd.f32 %v793_v34, %v625_v13 }
 0x192   :  { %v939_v16 = vmax.f32 %v871_v41, 0.0 }
 0x193   :  { %v908_v46 = vmax.f32 %v794_v7, 0.0 }
 0x194   :  { %1003 = vst.msk [vmem:[%s2286_s3 + $0x1e8] sm:$0xff] %vm443_vm0, %v939_v16 }
 0x195   :  { %972 = vst.msk [vmem:[%s2286_s3 + $0xf0] sm:$0xff] %vm443_vm0, %v908_v46  ;;  %v704_v17 = vpop.f32.mrf.mxu2 }
 0x196   :  { %v705_v18 = vadd.f32 %v1712_v61, %v704_v17  ;;  %v626_v19 = vpop.f32.mrf.mxu0 }
 0x197   :  { %v627_v20 = vadd.f32 %v1712_v61, %v626_v19 }
 0x198   :  { %v874_v6 = vadd.f32 %v873_v15, %v705_v18 }
 0x199   :  { %v796_v21 = vadd.f32 %v795_v45, %v627_v20 }
 0x19a   :  { %v940_v23 = vmax.f32 %v874_v6, 0.0 }
 0x19b   :  { %v909_v24 = vmax.f32 %v796_v21, 0.0 }
 0x19c   :  { %1004 = vst.msk [vmem:[%s2286_s3 + $0x1f0] sm:$0xff] %vm443_vm0, %v940_v23 }
 0x19d   :  { %973 = vst.msk [vmem:[%s2286_s3 + $0xf8] sm:$0xff] %vm443_vm0, %v909_v24  ;;  %v706_v0 = vpop.f32.mrf.mxu2 }
 0x19e   :  { %v707_v26 = vadd.f32 %v1712_v61, %v706_v0 }
 0x1a0   :  { %v876_v22 = vadd.f32 %v875_v8, %v707_v26 }
 0x1a2   :  { %v941_v27 = vmax.f32 %v876_v22, 0.0 }
 0x1a4   :  { %1005 = vst.msk [vmem:[%s2286_s3 + $0x1f8] sm:$0xff] %vm443_vm0, %v941_v27 }

// kernel: forward.14
= control target key start
LH: loop header
LB: loop body
LE: loop exit
PB: predicated region body
PF: predicated region fallthrough
CT: control target
= control target key end

     0   :  { %vm251_vm0 = vcmask 130048   ;;  %vm517_vm1 = vcmask 146432   ;;  %s1263_s1 = inlined_call_operand.vmem [shape: bf16[16,18], index: 1, kind: input, shape index: {}]   ;;  %s1264_s0 = inlined_call_operand.vmem [shape: bf16[512,16], index: 0, kind: input, shape index: {}]   ;;  %s1265_s2 = inlined_call_operand.vmem [shape: f32[1,18], index: 2, kind: input, shape index: {}]   ;;  %s1266_s3 = inlined_call_operand.vmem [shape: f32[512,18], index: 3, kind: output, shape index: {}]  }
   0x1   :  { %v782_v0 = vld [vmem:[%s1263_s1] sm:$0xff]  ;;  %v751_v5 = vld [vmem:[%s1264_s0 + $0x8] sm:$0xff]  ;;  %v752_v9 = vld [vmem:[%s1264_s0 + $0x10] sm:$0xff] }
   0x2   :  { %v750_v1 = vld [vmem:[%s1264_s0] sm:$0xff]  ;;  %355 = vmatpush.bf16.msra.mxu0 %v782_v0  ;;  %783 = vmatpush.bf16.msra.mxu1 %v782_v0  ;;  %v759_v6 = vld [vmem:[%s1264_s0 + $0x48] sm:$0xff]  ;;  %v760_v10 = vld [vmem:[%s1264_s0 + $0x50] sm:$0xff] }
   0x3   :  { %v758_v2 = vld [vmem:[%s1264_s0 + $0x40] sm:$0xff]  ;;  %784 = vmatpush.bf16.msra.mxu2 %v782_v0  ;;  %785 = vmatpush.bf16.msra.mxu3 %v782_v0  ;;  %v767_v7 = vld [vmem:[%s1264_s0 + $0x88] sm:$0xff]  ;;  %v768_v11 = vld [vmem:[%s1264_s0 + $0x90] sm:$0xff] }
   0x4   :  { %v766_v3 = vld [vmem:[%s1264_s0 + $0x80] sm:$0xff]  ;;  %v775_v8 = vld [vmem:[%s1264_s0 + $0xc8] sm:$0xff]  ;;  %v776_v12 = vld [vmem:[%s1264_s0 + $0xd0] sm:$0xff] }
   0x5   :  { %v774_v4 = vld [vmem:[%s1264_s0 + $0xc0] sm:$0xff]  ;;  %718 = vmatmul.msk.bf16.vlgmr.msra.gmra.mxu0 %vm251_vm0, %v750_v1  ;;  %726 = vmatmul.msk.bf16.vlgmr.msra.gmra.mxu1 %vm251_vm0, %v758_v2  ;;  %v753_v13 = vld [vmem:[%s1264_s0 + $0x18] sm:$0xff]  ;;  %v755_v21 = vld [vmem:[%s1264_s0 + $0x28] sm:$0xff] }
   0x6   :  { %734 = vmatmul.msk.bf16.vlgmr.msra.gmra.mxu2 %vm251_vm0, %v766_v3  ;;  %742 = vmatmul.msk.bf16.vlgmr.msra.gmra.mxu3 %vm251_vm0, %v774_v4  ;;  %v761_v14 = vld [vmem:[%s1264_s0 + $0x58] sm:$0xff]  ;;  %v754_v17 = vld [vmem:[%s1264_s0 + $0x20] sm:$0xff]  ;;  %v763_v22 = vld [vmem:[%s1264_s0 + $0x68] sm:$0xff] }
   0x7   :  { %v769_v15 = vld [vmem:[%s1264_s0 + $0x98] sm:$0xff]  ;;  %v762_v18 = vld [vmem:[%s1264_s0 + $0x60] sm:$0xff]  ;;  %v771_v23 = vld [vmem:[%s1264_s0 + $0xa8] sm:$0xff] }
   0x8   :  { %v777_v16 = vld [vmem:[%s1264_s0 + $0xd8] sm:$0xff]  ;;  %v770_v19 = vld [vmem:[%s1264_s0 + $0xa0] sm:$0xff]  ;;  %v779_v24 = vld [vmem:[%s1264_s0 + $0xe8] sm:$0xff] }
   0x9   :  { %v778_v20 = vld [vmem:[%s1264_s0 + $0xe0] sm:$0xff]  ;;  %v756_v25 = vld [vmem:[%s1264_s0 + $0x30] sm:$0xff]  ;;  %v757_v29 = vld [vmem:[%s1264_s0 + $0x38] sm:$0xff] }
   0xa   :  { %v764_v26 = vld [vmem:[%s1264_s0 + $0x70] sm:$0xff]  ;;  %v765_v30 = vld [vmem:[%s1264_s0 + $0x78] sm:$0xff]  ;;  %v941_v33 = vld [vmem:[%s1265_s2] ss:$0 sm:$0xff] }
   0xb   :  { %v772_v27 = vld [vmem:[%s1264_s0 + $0xb0] sm:$0xff]  ;;  %v773_v31 = vld [vmem:[%s1264_s0 + $0xb8] sm:$0xff] }
   0xc   :  { %v780_v28 = vld [vmem:[%s1264_s0 + $0xf0] sm:$0xff]  ;;  %v781_v32 = vld [vmem:[%s1264_s0 + $0xf8] sm:$0xff] }
  0x15   :  { %719 = vmatmul.msk.bf16.gmra.mxu0 %vm251_vm0, %v751_v5  ;;  %727 = vmatmul.msk.bf16.gmra.mxu1 %vm251_vm0, %v759_v6 }
  0x16   :  { %735 = vmatmul.msk.bf16.gmra.mxu2 %vm251_vm0, %v767_v7  ;;  %743 = vmatmul.msk.bf16.gmra.mxu3 %vm251_vm0, %v775_v8 }
  0x25   :  { %720 = vmatmul.msk.bf16.gmra.mxu0 %vm251_vm0, %v752_v9  ;;  %728 = vmatmul.msk.bf16.gmra.mxu1 %vm251_vm0, %v760_v10 }
  0x26   :  { %736 = vmatmul.msk.bf16.gmra.mxu2 %vm251_vm0, %v768_v11  ;;  %744 = vmatmul.msk.bf16.gmra.mxu3 %vm251_vm0, %v776_v12 }
  0x35   :  { %721 = vmatmul.msk.bf16.gmra.mxu0 %vm251_vm0, %v753_v13  ;;  %729 = vmatmul.msk.bf16.gmra.mxu1 %vm251_vm0, %v761_v14 }
  0x36   :  { %737 = vmatmul.msk.bf16.gmra.mxu2 %vm251_vm0, %v769_v15  ;;  %745 = vmatmul.msk.bf16.gmra.mxu3 %vm251_vm0, %v777_v16 }
  0x45   :  { %722 = vmatmul.msk.bf16.gmra.mxu0 %vm251_vm0, %v754_v17  ;;  %730 = vmatmul.msk.bf16.gmra.mxu1 %vm251_vm0, %v762_v18 }
  0x46   :  { %738 = vmatmul.msk.bf16.gmra.mxu2 %vm251_vm0, %v770_v19  ;;  %746 = vmatmul.msk.bf16.gmra.mxu3 %vm251_vm0, %v778_v20 }
  0x55   :  { %723 = vmatmul.msk.bf16.gmra.mxu0 %vm251_vm0, %v755_v21  ;;  %731 = vmatmul.msk.bf16.gmra.mxu1 %vm251_vm0, %v763_v22 }
  0x56   :  { %739 = vmatmul.msk.bf16.gmra.mxu2 %vm251_vm0, %v771_v23  ;;  %747 = vmatmul.msk.bf16.gmra.mxu3 %vm251_vm0, %v779_v24 }
  0x65   :  { %724 = vmatmul.msk.bf16.gmra.mxu0 %vm251_vm0, %v756_v25  ;;  %732 = vmatmul.msk.bf16.gmra.mxu1 %vm251_vm0, %v764_v26 }
  0x66   :  { %740 = vmatmul.msk.bf16.gmra.mxu2 %vm251_vm0, %v772_v27  ;;  %748 = vmatmul.msk.bf16.gmra.mxu3 %vm251_vm0, %v780_v28 }
  0x75   :  { %725 = vmatmul.msk.bf16.gmra.mxu0 %vm251_vm0, %v757_v29  ;;  %733 = vmatmul.msk.bf16.gmra.mxu1 %vm251_vm0, %v765_v30 }
  0x76   :  { %741 = vmatmul.msk.bf16.gmra.mxu2 %vm251_vm0, %v773_v31  ;;  %749 = vmatmul.msk.bf16.gmra.mxu3 %vm251_vm0, %v781_v32 }
  0x82   :  { %v357_v34 = vpop.f32.mrf.mxu0  ;;  %v397_v35 = vpop.f32.mrf.mxu1 }
  0x83   :  { %v358_v36 = vadd.f32 %v941_v33, %v357_v34  ;;  %v398_v37 = vadd.f32 %v941_v33, %v397_v35 }
  0x85   :  { %518 = vst.msk [vmem:[%s1266_s3] sm:$0xff] %vm517_vm1, %v358_v36 }
  0x86   :  { %534 = vst.msk [vmem:[%s1266_s3 + $0x80] sm:$0xff] %vm517_vm1, %v398_v37 }
  0x89   :  { %v437_v38 = vpop.f32.mrf.mxu2  ;;  %v477_v39 = vpop.f32.mrf.mxu3 }
  0x8a   :  { %v438_v40 = vadd.f32 %v941_v33, %v437_v38  ;;  %v478_v41 = vadd.f32 %v941_v33, %v477_v39  ;;  %v359_v42 = vpop.f32.mrf.mxu0  ;;  %v399_v43 = vpop.f32.mrf.mxu1 }
  0x8b   :  { %v360_v44 = vadd.f32 %v941_v33, %v359_v42  ;;  %v400_v45 = vadd.f32 %v941_v33, %v399_v43 }
  0x8c   :  { %550 = vst.msk [vmem:[%s1266_s3 + $0x100] sm:$0xff] %vm517_vm1, %v438_v40 }
  0x8d   :  { %566 = vst.msk [vmem:[%s1266_s3 + $0x180] sm:$0xff] %vm517_vm1, %v478_v41 }
  0x8e   :  { %519 = vst.msk [vmem:[%s1266_s3 + $0x8] sm:$0xff] %vm517_vm1, %v360_v44 }
  0x8f   :  { %535 = vst.msk [vmem:[%s1266_s3 + $0x88] sm:$0xff] %vm517_vm1, %v400_v45 }
  0x91   :  { %v439_v46 = vpop.f32.mrf.mxu2  ;;  %v479_v47 = vpop.f32.mrf.mxu3 }
  0x92   :  { %v440_v48 = vadd.f32 %v941_v33, %v439_v46  ;;  %v480_v49 = vadd.f32 %v941_v33, %v479_v47  ;;  %v362_v50 = vpop.f32.mrf.mxu0  ;;  %v402_v51 = vpop.f32.mrf.mxu1 }
  0x93   :  { %v363_v52 = vadd.f32 %v941_v33, %v362_v50  ;;  %v403_v53 = vadd.f32 %v941_v33, %v402_v51 }
  0x94   :  { %551 = vst.msk [vmem:[%s1266_s3 + $0x108] sm:$0xff] %vm517_vm1, %v440_v48 }
  0x95   :  { %567 = vst.msk [vmem:[%s1266_s3 + $0x188] sm:$0xff] %vm517_vm1, %v480_v49 }
  0x96   :  { %520 = vst.msk [vmem:[%s1266_s3 + $0x10] sm:$0xff] %vm517_vm1, %v363_v52 }
  0x97   :  { %536 = vst.msk [vmem:[%s1266_s3 + $0x90] sm:$0xff] %vm517_vm1, %v403_v53 }
  0x99   :  { %v442_v54 = vpop.f32.mrf.mxu2  ;;  %v482_v55 = vpop.f32.mrf.mxu3 }
  0x9a   :  { %v443_v56 = vadd.f32 %v941_v33, %v442_v54  ;;  %v483_v57 = vadd.f32 %v941_v33, %v482_v55  ;;  %v364_v58 = vpop.f32.mrf.mxu0  ;;  %v404_v59 = vpop.f32.mrf.mxu1 }
  0x9b   :  { %v365_v60 = vadd.f32 %v941_v33, %v364_v58  ;;  %v405_v61 = vadd.f32 %v941_v33, %v404_v59 }
  0x9c   :  { %552 = vst.msk [vmem:[%s1266_s3 + $0x110] sm:$0xff] %vm517_vm1, %v443_v56 }
  0x9d   :  { %568 = vst.msk [vmem:[%s1266_s3 + $0x190] sm:$0xff] %vm517_vm1, %v483_v57 }
  0x9e   :  { %521 = vst.msk [vmem:[%s1266_s3 + $0x18] sm:$0xff] %vm517_vm1, %v365_v60 }
  0x9f   :  { %537 = vst.msk [vmem:[%s1266_s3 + $0x98] sm:$0xff] %vm517_vm1, %v405_v61 }
  0xa1   :  { %v444_v62 = vpop.f32.mrf.mxu2  ;;  %v484_v63 = vpop.f32.mrf.mxu3 }
  0xa2   :  { %v445_v0 = vadd.f32 %v941_v33, %v444_v62  ;;  %v485_v1 = vadd.f32 %v941_v33, %v484_v63  ;;  %v367_v2 = vpop.f32.mrf.mxu0  ;;  %v407_v3 = vpop.f32.mrf.mxu1 }
  0xa3   :  { %v368_v4 = vadd.f32 %v941_v33, %v367_v2  ;;  %v408_v5 = vadd.f32 %v941_v33, %v407_v3 }
  0xa4   :  { %553 = vst.msk [vmem:[%s1266_s3 + $0x118] sm:$0xff] %vm517_vm1, %v445_v0 }
  0xa5   :  { %569 = vst.msk [vmem:[%s1266_s3 + $0x198] sm:$0xff] %vm517_vm1, %v485_v1 }
  0xa6   :  { %522 = vst.msk [vmem:[%s1266_s3 + $0x20] sm:$0xff] %vm517_vm1, %v368_v4 }
  0xa7   :  { %538 = vst.msk [vmem:[%s1266_s3 + $0xa0] sm:$0xff] %vm517_vm1, %v408_v5 }
  0xa9   :  { %v447_v6 = vpop.f32.mrf.mxu2  ;;  %v487_v7 = vpop.f32.mrf.mxu3 }
  0xaa   :  { %v448_v8 = vadd.f32 %v941_v33, %v447_v6  ;;  %v488_v9 = vadd.f32 %v941_v33, %v487_v7  ;;  %v369_v10 = vpop.f32.mrf.mxu0  ;;  %v409_v11 = vpop.f32.mrf.mxu1 }
  0xab   :  { %v370_v12 = vadd.f32 %v941_v33, %v369_v10  ;;  %v410_v13 = vadd.f32 %v941_v33, %v409_v11 }
  0xac   :  { %554 = vst.msk [vmem:[%s1266_s3 + $0x120] sm:$0xff] %vm517_vm1, %v448_v8 }
  0xad   :  { %570 = vst.msk [vmem:[%s1266_s3 + $0x1a0] sm:$0xff] %vm517_vm1, %v488_v9 }
  0xae   :  { %523 = vst.msk [vmem:[%s1266_s3 + $0x28] sm:$0xff] %vm517_vm1, %v370_v12 }
  0xaf   :  { %539 = vst.msk [vmem:[%s1266_s3 + $0xa8] sm:$0xff] %vm517_vm1, %v410_v13 }
  0xb1   :  { %v449_v14 = vpop.f32.mrf.mxu2  ;;  %v489_v15 = vpop.f32.mrf.mxu3 }
  0xb2   :  { %v450_v16 = vadd.f32 %v941_v33, %v449_v14  ;;  %v490_v17 = vadd.f32 %v941_v33, %v489_v15  ;;  %v372_v18 = vpop.f32.mrf.mxu0  ;;  %v412_v19 = vpop.f32.mrf.mxu1 }
  0xb3   :  { %v373_v20 = vadd.f32 %v941_v33, %v372_v18  ;;  %v413_v21 = vadd.f32 %v941_v33, %v412_v19 }
  0xb4   :  { %555 = vst.msk [vmem:[%s1266_s3 + $0x128] sm:$0xff] %vm517_vm1, %v450_v16 }
  0xb5   :  { %571 = vst.msk [vmem:[%s1266_s3 + $0x1a8] sm:$0xff] %vm517_vm1, %v490_v17 }
  0xb6   :  { %524 = vst.msk [vmem:[%s1266_s3 + $0x30] sm:$0xff] %vm517_vm1, %v373_v20 }
  0xb7   :  { %540 = vst.msk [vmem:[%s1266_s3 + $0xb0] sm:$0xff] %vm517_vm1, %v413_v21 }
  0xb9   :  { %v452_v22 = vpop.f32.mrf.mxu2  ;;  %v492_v23 = vpop.f32.mrf.mxu3 }
  0xba   :  { %v453_v24 = vadd.f32 %v941_v33, %v452_v22  ;;  %v493_v25 = vadd.f32 %v941_v33, %v492_v23  ;;  %v374_v26 = vpop.f32.mrf.mxu0  ;;  %v414_v27 = vpop.f32.mrf.mxu1 }
  0xbb   :  { %v375_v28 = vadd.f32 %v941_v33, %v374_v26  ;;  %v415_v29 = vadd.f32 %v941_v33, %v414_v27 }
  0xbc   :  { %556 = vst.msk [vmem:[%s1266_s3 + $0x130] sm:$0xff] %vm517_vm1, %v453_v24 }
  0xbd   :  { %572 = vst.msk [vmem:[%s1266_s3 + $0x1b0] sm:$0xff] %vm517_vm1, %v493_v25 }
  0xbe   :  { %525 = vst.msk [vmem:[%s1266_s3 + $0x38] sm:$0xff] %vm517_vm1, %v375_v28 }
  0xbf   :  { %541 = vst.msk [vmem:[%s1266_s3 + $0xb8] sm:$0xff] %vm517_vm1, %v415_v29 }
  0xc1   :  { %v454_v30 = vpop.f32.mrf.mxu2  ;;  %v494_v31 = vpop.f32.mrf.mxu3 }
  0xc2   :  { %v455_v32 = vadd.f32 %v941_v33, %v454_v30  ;;  %v495_v34 = vadd.f32 %v941_v33, %v494_v31  ;;  %v377_v35 = vpop.f32.mrf.mxu0  ;;  %v417_v36 = vpop.f32.mrf.mxu1 }
  0xc3   :  { %v378_v37 = vadd.f32 %v941_v33, %v377_v35  ;;  %v418_v38 = vadd.f32 %v941_v33, %v417_v36 }
  0xc4   :  { %557 = vst.msk [vmem:[%s1266_s3 + $0x138] sm:$0xff] %vm517_vm1, %v455_v32 }
  0xc5   :  { %573 = vst.msk [vmem:[%s1266_s3 + $0x1b8] sm:$0xff] %vm517_vm1, %v495_v34 }
  0xc6   :  { %526 = vst.msk [vmem:[%s1266_s3 + $0x40] sm:$0xff] %vm517_vm1, %v378_v37 }
  0xc7   :  { %542 = vst.msk [vmem:[%s1266_s3 + $0xc0] sm:$0xff] %vm517_vm1, %v418_v38 }
  0xc9   :  { %v457_v39 = vpop.f32.mrf.mxu2  ;;  %v497_v40 = vpop.f32.mrf.mxu3 }
  0xca   :  { %v458_v41 = vadd.f32 %v941_v33, %v457_v39  ;;  %v498_v42 = vadd.f32 %v941_v33, %v497_v40  ;;  %v379_v43 = vpop.f32.mrf.mxu0  ;;  %v419_v44 = vpop.f32.mrf.mxu1 }
  0xcb   :  { %v380_v45 = vadd.f32 %v941_v33, %v379_v43  ;;  %v420_v46 = vadd.f32 %v941_v33, %v419_v44 }
  0xcc   :  { %558 = vst.msk [vmem:[%s1266_s3 + $0x140] sm:$0xff] %vm517_vm1, %v458_v41 }
  0xcd   :  { %574 = vst.msk [vmem:[%s1266_s3 + $0x1c0] sm:$0xff] %vm517_vm1, %v498_v42 }
  0xce   :  { %527 = vst.msk [vmem:[%s1266_s3 + $0x48] sm:$0xff] %vm517_vm1, %v380_v45 }
  0xcf   :  { %543 = vst.msk [vmem:[%s1266_s3 + $0xc8] sm:$0xff] %vm517_vm1, %v420_v46 }
  0xd1   :  { %v459_v47 = vpop.f32.mrf.mxu2  ;;  %v499_v48 = vpop.f32.mrf.mxu3 }
  0xd2   :  { %v460_v49 = vadd.f32 %v941_v33, %v459_v47  ;;  %v500_v50 = vadd.f32 %v941_v33, %v499_v48  ;;  %v382_v51 = vpop.f32.mrf.mxu0  ;;  %v422_v52 = vpop.f32.mrf.mxu1 }
  0xd3   :  { %v383_v53 = vadd.f32 %v941_v33, %v382_v51  ;;  %v423_v54 = vadd.f32 %v941_v33, %v422_v52 }
  0xd4   :  { %559 = vst.msk [vmem:[%s1266_s3 + $0x148] sm:$0xff] %vm517_vm1, %v460_v49 }
  0xd5   :  { %575 = vst.msk [vmem:[%s1266_s3 + $0x1c8] sm:$0xff] %vm517_vm1, %v500_v50 }
  0xd6   :  { %528 = vst.msk [vmem:[%s1266_s3 + $0x50] sm:$0xff] %vm517_vm1, %v383_v53 }
  0xd7   :  { %544 = vst.msk [vmem:[%s1266_s3 + $0xd0] sm:$0xff] %vm517_vm1, %v423_v54 }
  0xd9   :  { %v462_v55 = vpop.f32.mrf.mxu2  ;;  %v502_v56 = vpop.f32.mrf.mxu3 }
  0xda   :  { %v463_v57 = vadd.f32 %v941_v33, %v462_v55  ;;  %v503_v58 = vadd.f32 %v941_v33, %v502_v56  ;;  %v384_v59 = vpop.f32.mrf.mxu0  ;;  %v424_v60 = vpop.f32.mrf.mxu1 }
  0xdb   :  { %v385_v61 = vadd.f32 %v941_v33, %v384_v59  ;;  %v425_v62 = vadd.f32 %v941_v33, %v424_v60 }
  0xdc   :  { %560 = vst.msk [vmem:[%s1266_s3 + $0x150] sm:$0xff] %vm517_vm1, %v463_v57 }
  0xdd   :  { %576 = vst.msk [vmem:[%s1266_s3 + $0x1d0] sm:$0xff] %vm517_vm1, %v503_v58 }
  0xde   :  { %529 = vst.msk [vmem:[%s1266_s3 + $0x58] sm:$0xff] %vm517_vm1, %v385_v61 }
  0xdf   :  { %545 = vst.msk [vmem:[%s1266_s3 + $0xd8] sm:$0xff] %vm517_vm1, %v425_v62 }
  0xe1   :  { %v464_v63 = vpop.f32.mrf.mxu2  ;;  %v504_v0 = vpop.f32.mrf.mxu3 }
  0xe2   :  { %v465_v1 = vadd.f32 %v941_v33, %v464_v63  ;;  %v505_v2 = vadd.f32 %v941_v33, %v504_v0  ;;  %v387_v3 = vpop.f32.mrf.mxu0  ;;  %v427_v4 = vpop.f32.mrf.mxu1 }
  0xe3   :  { %v388_v5 = vadd.f32 %v941_v33, %v387_v3  ;;  %v428_v6 = vadd.f32 %v941_v33, %v427_v4 }
  0xe4   :  { %561 = vst.msk [vmem:[%s1266_s3 + $0x158] sm:$0xff] %vm517_vm1, %v465_v1 }
  0xe5   :  { %577 = vst.msk [vmem:[%s1266_s3 + $0x1d8] sm:$0xff] %vm517_vm1, %v505_v2 }
  0xe6   :  { %530 = vst.msk [vmem:[%s1266_s3 + $0x60] sm:$0xff] %vm517_vm1, %v388_v5 }
  0xe7   :  { %546 = vst.msk [vmem:[%s1266_s3 + $0xe0] sm:$0xff] %vm517_vm1, %v428_v6 }
  0xe9   :  { %v467_v7 = vpop.f32.mrf.mxu2  ;;  %v507_v8 = vpop.f32.mrf.mxu3 }
  0xea   :  { %v468_v9 = vadd.f32 %v941_v33, %v467_v7  ;;  %v508_v10 = vadd.f32 %v941_v33, %v507_v8  ;;  %v389_v11 = vpop.f32.mrf.mxu0  ;;  %v429_v12 = vpop.f32.mrf.mxu1 }
  0xeb   :  { %v390_v13 = vadd.f32 %v941_v33, %v389_v11  ;;  %v430_v14 = vadd.f32 %v941_v33, %v429_v12 }
  0xec   :  { %562 = vst.msk [vmem:[%s1266_s3 + $0x160] sm:$0xff] %vm517_vm1, %v468_v9 }
  0xed   :  { %578 = vst.msk [vmem:[%s1266_s3 + $0x1e0] sm:$0xff] %vm517_vm1, %v508_v10 }
  0xee   :  { %531 = vst.msk [vmem:[%s1266_s3 + $0x68] sm:$0xff] %vm517_vm1, %v390_v13 }
  0xef   :  { %547 = vst.msk [vmem:[%s1266_s3 + $0xe8] sm:$0xff] %vm517_vm1, %v430_v14 }
  0xf1   :  { %v469_v15 = vpop.f32.mrf.mxu2  ;;  %v509_v16 = vpop.f32.mrf.mxu3 }
  0xf2   :  { %v470_v17 = vadd.f32 %v941_v33, %v469_v15  ;;  %v510_v18 = vadd.f32 %v941_v33, %v509_v16  ;;  %v392_v19 = vpop.f32.mrf.mxu0  ;;  %v432_v20 = vpop.f32.mrf.mxu1 }
  0xf3   :  { %v393_v21 = vadd.f32 %v941_v33, %v392_v19  ;;  %v433_v22 = vadd.f32 %v941_v33, %v432_v20 }
  0xf4   :  { %563 = vst.msk [vmem:[%s1266_s3 + $0x168] sm:$0xff] %vm517_vm1, %v470_v17 }
  0xf5   :  { %579 = vst.msk [vmem:[%s1266_s3 + $0x1e8] sm:$0xff] %vm517_vm1, %v510_v18 }
  0xf6   :  { %532 = vst.msk [vmem:[%s1266_s3 + $0x70] sm:$0xff] %vm517_vm1, %v393_v21 }
  0xf7   :  { %548 = vst.msk [vmem:[%s1266_s3 + $0xf0] sm:$0xff] %vm517_vm1, %v433_v22 }
  0xf9   :  { %v472_v23 = vpop.f32.mrf.mxu2  ;;  %v512_v24 = vpop.f32.mrf.mxu3 }
  0xfa   :  { %v473_v25 = vadd.f32 %v941_v33, %v472_v23  ;;  %v513_v26 = vadd.f32 %v941_v33, %v512_v24  ;;  %v394_v27 = vpop.f32.mrf.mxu0  ;;  %v434_v28 = vpop.f32.mrf.mxu1 }
  0xfb   :  { %v395_v29 = vadd.f32 %v941_v33, %v394_v27  ;;  %v435_v30 = vadd.f32 %v941_v33, %v434_v28 }
  0xfc   :  { %564 = vst.msk [vmem:[%s1266_s3 + $0x170] sm:$0xff] %vm517_vm1, %v473_v25 }
  0xfd   :  { %580 = vst.msk [vmem:[%s1266_s3 + $0x1f0] sm:$0xff] %vm517_vm1, %v513_v26 }
  0xfe   :  { %533 = vst.msk [vmem:[%s1266_s3 + $0x78] sm:$0xff] %vm517_vm1, %v395_v29 }
  0xff   :  { %549 = vst.msk [vmem:[%s1266_s3 + $0xf8] sm:$0xff] %vm517_vm1, %v435_v30 }
 0x101   :  { %v474_v31 = vpop.f32.mrf.mxu2  ;;  %v514_v32 = vpop.f32.mrf.mxu3 }
 0x102   :  { %v475_v34 = vadd.f32 %v941_v33, %v474_v31  ;;  %v515_v35 = vadd.f32 %v941_v33, %v514_v32 }
 0x104   :  { %565 = vst.msk [vmem:[%s1266_s3 + $0x178] sm:$0xff] %vm517_vm1, %v475_v34 }
 0x105   :  { %581 = vst.msk [vmem:[%s1266_s3 + $0x1f8] sm:$0xff] %vm517_vm1, %v515_v35 }

// kernel: forward.15
= control target key start
LH: loop header
LB: loop body
LE: loop exit
PB: predicated region body
PF: predicated region fallthrough
CT: control target
= control target key end

     0   :  { %s731_s11 = smov 2   ;;  %v732_v2 = vmov 1   ;;  %v733_v3 = vmov 0   ;;  %v734_v4 = vmov 3   ;;  %v735_v5 = vmov 2   ;;  %s736_s14 = smov 127   ;;  %s1290_s0 = inlined_call_operand.vmem [shape: f32[2,3,4], index: 0, kind: input, shape index: {}]   ;;  %s1291_s1 = inlined_call_operand.vmem [shape: f32[2,4,768], index: 1, kind: input, shape index: {}]   ;;  %s1292_s2 = inlined_call_operand.vmem [shape: f32[2,3,768], index: 2, kind: output, shape index: {}]  }
   0x1   :  { %v11_v0 = vld [vmem:[%s1290_s0] sm:$0x7]  ;;  %v12_v1 = vld [vmem:[%s1290_s0 + $0x4] sm:$0x7]  ;;  %700 = vset.pattern.permute.xlu1 %v732_v2  ;;  %699 = vset.pattern.permute.xlu0 %v732_v2  ;;  %v768_v16 = vld [vmem:[%s1291_s1 + $0x8] sm:$0xff] }
   0x2   :  { %311 = vrot.lane.b32.xlu0 %v11_v0, %s731_s11  ;;  %698 = vset.pattern.permute.xlu2 %v733_v3  ;;  %v763_v15 = vld [vmem:[%s1291_s1] sm:$0xff]  ;;  %v773_v17 = vld [vmem:[%s1291_s1 + $0x10] sm:$0xff]  ;;  %v37_v20 = vperm.slane %v768_v16, 0  ;;  %v38_v21 = vperm.slane %v768_v16, 4  ;;  %v784_v24 = vld [vmem:[%s1291_s1 + $0x18] sm:$0xff]  ;;  %v149_v51 = vperm.slane %v768_v16, 2 }
   0x3   :  { %21 = vperm.xlu2 %698, %v11_v0   ;;  %v35_v18 = vperm.slane %v763_v15, 0  ;;  %v36_v19 = vperm.slane %v763_v15, 4  ;;  %v39_v22 = vperm.slane %v773_v17, 0  ;;  %v40_v23 = vperm.slane %v773_v17, 4  ;;  %v789_v25 = vld [vmem:[%s1291_s1 + $0x20] sm:$0xff]  ;;  %v798_v28 = vld [vmem:[%s1291_s1 + $0x28] sm:$0xff] }
   0x4   :  { %v41_v29 = vperm.slane %v784_v24, 0  ;;  %v42_v30 = vperm.slane %v784_v24, 4  ;;  %v802_v31 = vperm.slane %v37_v20, 0  ;;  %v804_v32 = vperm.slane %v38_v21, 0 }
   0x5   :  { %v791_v26 = vperm.slane %v35_v18, 0  ;;  %v793_v27 = vperm.slane %v36_v19, 0  ;;  %v806_v33 = vperm.slane %v39_v22, 0  ;;  %v808_v34 = vperm.slane %v40_v23, 0 }
   0x6   :  { %v43_v36 = vperm.slane %v789_v25, 0  ;;  %v44_v37 = vperm.slane %v789_v25, 4  ;;  %v45_v38 = vperm.slane %v798_v28, 0  ;;  %v46_v39 = vperm.slane %v798_v28, 4 }
   0x7   :  { %v820_v42 = vperm.slane %v41_v29, 0  ;;  %v822_v43 = vperm.slane %v42_v30, 0  ;;  %v147_v49 = vperm.slane %v763_v15, 2  ;;  %v148_v50 = vperm.slane %v763_v15, 6 }
   0x8   :  { %v832_v48 = vperm.slane %v43_v36, 0  ;;  %v837_v52 = vperm.slane %v44_v37, 0  ;;  %v839_v53 = vperm.slane %v45_v38, 0  ;;  %v841_v54 = vperm.slane %v46_v39, 0 }
   0x9   :  { %v150_v55 = vperm.slane %v768_v16, 6  ;;  %v151_v58 = vperm.slane %v773_v17, 2  ;;  %v152_v59 = vperm.slane %v773_v17, 6  ;;  %v97_v60 = vperm.slane %v784_v24, 1 }
   0xa   :  { %313 = vrot.lane.b32.xlu0 %v12_v1, %s731_s11  ;;  %v98_v61 = vperm.slane %v784_v24, 5  ;;  %v99_v62 = vperm.slane %v789_v25, 1  ;;  %v100_v63 = vperm.slane %v789_v25, 5  ;;  %v172_v2 = vperm.slane %v148_v50, 2 }
   0xb   :  { %26 = vperm.xlu2 %698, %v12_v1   ;;  %v173_v3 = vperm.slane %v149_v51, 2  ;;  %v94_v36 = vperm.slane %v768_v16, 5  ;;  %v203_v37 = vperm.slane %v763_v15, 3  ;;  %v204_v38 = vperm.slane %v763_v15, 7 }
   0xc   :  { %v866_v18 = vperm.slane %v98_v61, 1  ;;  %v868_v19 = vperm.slane %v99_v62, 1  ;;  %v870_v20 = vperm.slane %v100_v63, 1  ;;  %v95_v50 = vperm.slane %v773_v17, 1 }
   0xd   :  { %v205_v51 = vperm.slane %v768_v16, 3  ;;  %v206_v63 = vperm.slane %v768_v16, 7 }
  0x12   :  { %84 = vperm.xlu0 %699, %v11_v0  }
  0x13   :  { %701 = vset.pattern.permute.xlu2 %v735_v5 }
  0x14   :  { %140 = vperm.xlu2 %701, %v11_v0  }
  0x1a   :  { %704 = vset.pattern.permute.xlu0 %v734_v4 }
  0x1b   :  { %200 = vperm.xlu0 %704, %v12_v1  }
  0x1c   :  { %703 = vset.pattern.permute.xlu2 %v734_v4 }
  0x1d   :  { %196 = vperm.xlu2 %703, %v11_v0  }
  0x23   :  { %706 = vset.pattern.permute.xlu0 %v735_v5 }
  0x25   :  { %705 = vset.pattern.permute.xlu2 %v735_v5 }
  0x5d   :  { %v758_v14 = vpop.permute.xlu2 %21 }
  0x5e   :  { %v71_v40 = vmax.f32 %v758_v14, %v791_v26  ;;  %v72_v41 = vmax.f32 %v758_v14, %v793_v27  ;;  %v73_v44 = vmax.f32 %v758_v14, %v802_v31  ;;  %v74_v45 = vmax.f32 %v758_v14, %v804_v32 }
  0x5f   :  { %v75_v46 = vmax.f32 %v758_v14, %v806_v33  ;;  %v76_v47 = vmax.f32 %v758_v14, %v808_v34  ;;  %v91_v26 = vperm.slane %v763_v15, 1  ;;  %v92_v31 = vperm.slane %v763_v15, 5 }
  0x60   :  { %v93_v32 = vperm.slane %v768_v16, 1  ;;  %v230_v33 = vperm.slane %v206_v63, 3  ;;  %v153_v63 = vperm.slane %v784_v24, 2  ;;  %v332_v34 = vrot.slane %v784_v24, 6 }
  0x61   :  { %v115_v62 = vperm.slane %v91_v26, 1 }
  0x65   :  { %v810_v35 = vpop.permute.xlu2 %26 }
  0x74   :  { %v312_v6 = vpop.permute.xlu0 %311 }
  0x75   :  { %v317_v7 = vsub.f32 %v11_v0, %v312_v6  ;;  %v141_v6 = vpop.permute.xlu2 %140 }
  0x76   :  { %v184_v22 = vmin.f32 %v141_v6, %v172_v2  ;;  %v185_v23 = vmin.f32 %v141_v6, %v173_v3  ;;  %v116_v2 = vperm.slane %v92_v31, 1  ;;  %v208_v3 = vperm.slane %v773_v17, 7 }
  0x77   :  { %321 = vrot.lane.b32.xlu1 %v317_v7, %s736_s14 }
  0x78   :  { %v232_v31 = vperm.slane %v208_v3, 3 }
  0x7c   :  { %v314_v8 = vpop.permute.xlu0 %313 }
  0x7d   :  { %v318_v9 = vsub.f32 %v12_v1, %v314_v8  ;;  %v102_v8 = vperm.slane %v798_v28, 5 }
  0x7f   :  { %323 = vrot.lane.b32.xlu1 %v318_v9, %s736_s14  ;;  %v875_v30 = vperm.slane %v102_v8, 1 }
  0x87   :  { %88 = vperm.xlu1 %700, %v12_v1  }
  0x8f   :  { %702 = vset.pattern.permute.xlu1 %v735_v5  ;;  %v174_v5 = vperm.slane %v150_v55, 2 }
  0x90   :  { %144 = vperm.xlu1 %702, %v12_v1   ;;  %v171_v1 = vperm.slane %v147_v49, 2 }
  0x91   :  { %v186_v27 = vmin.f32 %v141_v6, %v174_v5  ;;  %v227_v5 = vperm.slane %v203_v37, 3 }
  0x92   :  { %v183_v21 = vmin.f32 %v141_v6, %v171_v1  ;;  %v207_v1 = vperm.slane %v773_v17, 3 }
  0x93   :  { %v891_v61 = vsub.f32 %v186_v27, %v74_v45  ;;  %v229_v45 = vperm.slane %v205_v51, 3 }
  0x94   :  { %v884_v55 = vsub.f32 %v183_v21, %v71_v40  ;;  %v119_v21 = vperm.slane %v95_v50, 1 }
  0xe9   :  { %v322_v10 = vpop.permute.xlu1 %321 }
  0xea   :  { %v327_v11 = vmul.f32 %v322_v10, %v317_v7  ;;  %v101_v7 = vperm.slane %v798_v28, 1 }
  0xec   :  { %379 = vperm.xlu1 %702, %v327_v11   ;;  %v175_v11 = vperm.slane %v151_v58, 2  ;;  %v873_v29 = vperm.slane %v101_v7, 1  ;;  %v886_v58 = vsub.f32 %v184_v22, %v72_v41  ;;  %v197_v7 = vpop.permute.xlu2 %196  ;;  %v85_v22 = vpop.permute.xlu0 %84 }
  0xed   :  { %v127_v26 = vmax.f32 %v85_v22, %v115_v62  ;;  %v128_v27 = vmax.f32 %v85_v22, %v116_v2  ;;  %v239_v37 = vmin.f32 %v197_v7, %v227_v5  ;;  %v131_v50 = vmax.f32 %v85_v22, %v119_v21 }
  0xee   :  { %v187_v39 = vmin.f32 %v141_v6, %v175_v11  ;;  %v154_v5 = vperm.slane %v784_v24, 6  ;;  %v333_v11 = vrot.slane %v789_v25, 6 }
  0xef   :  { %v913_v2 = vsub.f32 %v239_v37, %v127_v26  ;;  %v212_v26 = vperm.slane %v789_v25, 7 }
  0xf0   :  { %v899_v40 = vsub.f32 %v187_v39, %v75_v46  ;;  %v231_v46 = vperm.slane %v207_v1, 3  ;;  %v244_v1 = vmin.f32 %v197_v7, %v232_v31  ;;  %v214_v31 = vperm.slane %v798_v28, 7 }
  0xf1   :  { %v324_v12 = vpop.permute.xlu1 %323  ;;  %v177_v39 = vperm.slane %v153_v63, 2  ;;  %v178_v0 = vperm.slane %v154_v5, 2 }
  0xf2   :  { %v328_v13 = vmul.f32 %v324_v12, %v318_v9  ;;  %v176_v12 = vperm.slane %v152_v59, 2  ;;  %v888_v59 = vsub.f32 %v185_v23, %v73_v44  ;;  %v117_v44 = vperm.slane %v93_v32, 1 }
  0xf3   :  { %v243_v62 = vmin.f32 %v197_v7, %v231_v46 }
  0xf4   :  { %384 = vperm.xlu2 %705, %v328_v13   ;;  %v864_v13 = vperm.slane %v97_v60, 1  ;;  %v188_v49 = vmin.f32 %v141_v6, %v176_v12  ;;  %v96_v60 = vperm.slane %v773_v17, 5  ;;  %v228_v6 = vperm.slane %v204_v38, 3 }
  0xf5   :  { %v118_v12 = vperm.slane %v94_v36, 1  ;;  %v129_v32 = vmax.f32 %v85_v22, %v117_v44  ;;  %v241_v38 = vmin.f32 %v197_v7, %v229_v45  ;;  %v155_v44 = vperm.slane %v789_v25, 2 }
  0xf6   :  { %v904_v41 = vsub.f32 %v188_v49, %v76_v47  ;;  %v120_v23 = vperm.slane %v96_v60, 1  ;;  %v240_v14 = vmin.f32 %v197_v7, %v228_v6  ;;  %v242_v60 = vmin.f32 %v197_v7, %v230_v33 }
  0xf7   :  { %v130_v49 = vmax.f32 %v85_v22, %v118_v12  ;;  %v918_v6 = vsub.f32 %v241_v38, %v129_v32  ;;  %v209_v45 = vperm.slane %v784_v24, 3  ;;  %v210_v12 = vperm.slane %v784_v24, 7 }
  0xf8   :  { %v132_v51 = vmax.f32 %v85_v22, %v120_v23  ;;  %v915_v3 = vsub.f32 %v240_v14, %v128_v27  ;;  %v156_v22 = vperm.slane %v789_v25, 6  ;;  %v157_v23 = vperm.slane %v798_v28, 2 }
  0xf9   :  { %v89_v21 = vpop.permute.xlu1 %88  ;;  %v211_v7 = vperm.slane %v789_v25, 3  ;;  %v927_v33 = vsub.f32 %v242_v60, %v130_v49  ;;  %v929_v46 = vsub.f32 %v243_v62, %v131_v50  ;;  %v213_v27 = vperm.slane %v798_v28, 3  ;;  %v201_v62 = vpop.permute.xlu0 %200 }
  0xfa   :  { %v933_v37 = vsub.f32 %v244_v1, %v132_v51  ;;  %v158_v38 = vperm.slane %v798_v28, 6  ;;  %v233_v47 = vperm.slane %v209_v45, 3  ;;  %v234_v49 = vperm.slane %v210_v12, 3 }
  0xfb   :  { %v235_v60 = vperm.slane %v211_v7, 3  ;;  %v236_v50 = vperm.slane %v212_v26, 3  ;;  %v237_v1 = vperm.slane %v213_v27, 3  ;;  %v238_v14 = vperm.slane %v214_v31, 3 }
  0xfc   :  { %v334_v32 = vrot.slane %v798_v28, 6  ;;  %v133_v8 = vmax.f32 %v89_v21, %v864_v13  ;;  %v134_v36 = vmax.f32 %v89_v21, %v866_v18  ;;  %v135_v63 = vmax.f32 %v89_v21, %v868_v19 }
  0xfd   :  { %v136_v12 = vmax.f32 %v89_v21, %v870_v20  ;;  %v137_v7 = vmax.f32 %v89_v21, %v873_v29  ;;  %v245_v26 = vmin.f32 %v201_v62, %v233_v47  ;;  %v246_v10 = vmin.f32 %v201_v62, %v234_v49 }
  0xfe   :  { %v247_v9 = vmin.f32 %v201_v62, %v235_v60  ;;  %v248_v51 = vmin.f32 %v201_v62, %v236_v50  ;;  %v344_v27 = vsub.f32 %v784_v24, %v332_v34  ;;  %v345_v31 = vsub.f32 %v789_v25, %v333_v11 }
  0xff   :  { %v138_v13 = vmax.f32 %v89_v21, %v875_v30  ;;  %v249_v4 = vmin.f32 %v201_v62, %v237_v1  ;;  %v250_v18 = vmin.f32 %v201_v62, %v238_v14  ;;  %v346_v19 = vsub.f32 %v798_v28, %v334_v32 }
 0x100   :  { %v179_v45 = vperm.slane %v155_v44, 2  ;;  %v180_v57 = vperm.slane %v156_v22, 2  ;;  %v181_v20 = vperm.slane %v157_v23, 2  ;;  %v292_v29 = vmax.f32 %v933_v37, 0.0 }
 0x101   :  { %v182_v47 = vperm.slane %v158_v38, 2  ;;  %v281_v49 = vsub.f32 %v245_v26, %v133_v8  ;;  %v282_v60 = vsub.f32 %v246_v10, %v134_v36  ;;  %v283_v50 = vsub.f32 %v247_v9, %v135_v63 }
 0x102   :  { %v145_v56 = vpop.permute.xlu1 %144  ;;  %v284_v24 = vsub.f32 %v248_v51, %v136_v12  ;;  %v689_v34 = vrot.slane %v344_v27, 9  ;;  %v690_v25 = vrot.slane %v345_v31, 9  ;;  %v285_v30 = vsub.f32 %v249_v4, %v137_v7 }
 0x103   :  { %v189_v11 = vmin.f32 %v145_v56, %v177_v39  ;;  %v286_v21 = vsub.f32 %v250_v18, %v138_v13  ;;  %v691_v14 = vrot.slane %v346_v19, 9  ;;  %v190_v62 = vmin.f32 %v145_v56, %v178_v0 }
 0x104   :  { %v191_v28 = vmin.f32 %v145_v56, %v179_v45  ;;  %v192_v5 = vmin.f32 %v145_v56, %v180_v57  ;;  %v193_v44 = vmin.f32 %v145_v56, %v181_v20  ;;  %v194_v22 = vmin.f32 %v145_v56, %v182_v47 }
 0x105   :  { %v293_v23 = vmax.f32 %v281_v49, 0.0  ;;  %v329_v32 = vrot.slane %v763_v15, 6  ;;  %v330_v38 = vrot.slane %v768_v16, 6  ;;  %v294_v8 = vmax.f32 %v282_v60, 0.0 }
 0x106   :  { %v295_v10 = vmax.f32 %v283_v50, 0.0  ;;  %v374_v9 = vmul.f32 %v689_v34, %v344_v27  ;;  %v375_v36 = vmul.f32 %v690_v25, %v345_v31  ;;  %v1293_v39 = vmax.f32 %v810_v35, %v820_v42 }
 0x107   :  { %v296_v51 = vmax.f32 %v284_v24, 0.0  ;;  %v376_v1 = vmul.f32 %v691_v14, %v346_v19  ;;  %v331_v0 = vrot.slane %v773_v17, 6  ;;  %v1294_v56 = vmax.f32 %v810_v35, %v822_v43 }
 0x108   :  { %v257_v4 = vsub.f32 %v189_v11, %v1293_v39  ;;  %v1295_v63 = vmax.f32 %v810_v35, %v832_v48  ;;  %v1296_v12 = vmax.f32 %v810_v35, %v837_v52  ;;  %v1297_v42 = vmax.f32 %v810_v35, %v839_v53 }
 0x109   :  { %v258_v57 = vsub.f32 %v190_v62, %v1294_v56  ;;  %v1298_v27 = vmax.f32 %v810_v35, %v841_v54  ;;  %v297_v13 = vmax.f32 %v285_v30, 0.0  ;;  %v341_v43 = vsub.f32 %v763_v15, %v329_v32 }
 0x10a   :  { %v259_v45 = vsub.f32 %v191_v28, %v1295_v63  ;;  %v260_v7 = vsub.f32 %v192_v5, %v1296_v12  ;;  %v261_v26 = vsub.f32 %v193_v44, %v1297_v42  ;;  %v342_v18 = vsub.f32 %v768_v16, %v330_v38 }
 0x10b   :  { %v262_v31 = vsub.f32 %v194_v22, %v1298_v27  ;;  %v399_v19 = vperm.slane %v374_v9, 2  ;;  %v400_v48 = vperm.slane %v374_v9, 6  ;;  %v401_v20 = vperm.slane %v375_v36, 2 }
 0x10c   :  { %v402_v47 = vperm.slane %v375_v36, 6  ;;  %v269_v49 = vmax.f32 %v257_v4, 0.0  ;;  %v403_v52 = vperm.slane %v376_v1, 2  ;;  %v404_v60 = vperm.slane %v376_v1, 6 }
 0x10d   :  { %v343_v50 = vsub.f32 %v773_v17, %v331_v0  ;;  %v270_v53 = vmax.f32 %v258_v57, 0.0  ;;  %v271_v24 = vmax.f32 %v259_v45, 0.0  ;;  %v272_v34 = vmax.f32 %v260_v7, 0.0 }
 0x10e   :  { %v273_v25 = vmax.f32 %v261_v26, 0.0  ;;  %v274_v35 = vmax.f32 %v262_v31, 0.0  ;;  %v298_v54 = vmax.f32 %v286_v21, 0.0  ;;  %v686_v11 = vrot.slane %v341_v43, 9 }
 0x10f   :  { %v687_v30 = vrot.slane %v342_v18, 9  ;;  %v423_v15 = vperm.slane %v399_v19, 2  ;;  %v424_v14 = vperm.slane %v400_v48, 2  ;;  %v425_v16 = vperm.slane %v401_v20, 2 }
 0x110   :  { %v426_v62 = vperm.slane %v402_v47, 2  ;;  %v427_v28 = vperm.slane %v403_v52, 2  ;;  %v428_v5 = vperm.slane %v404_v60, 2  ;;  %v978_v44 = vmul.f32 %v293_v23, %v269_v49 }
 0x111   :  { %v688_v22 = vrot.slane %v343_v50, 9  ;;  %v980_v32 = vmul.f32 %v294_v8, %v270_v53  ;;  %v982_v17 = vmul.f32 %v295_v10, %v271_v24  ;;  %v984_v38 = vmul.f32 %v296_v51, %v272_v34 }
 0x112   :  { %v986_v9 = vmul.f32 %v297_v13, %v273_v25  ;;  %v988_v36 = vmul.f32 %v298_v54, %v274_v35  ;;  %v371_v39 = vmul.f32 %v686_v11, %v341_v43  ;;  %v372_v4 = vmul.f32 %v687_v30, %v342_v18 }
 0x113   :  { %v1299_v1 = vmax.f32 %v884_v55, 0.0  ;;  %v1300_v0 = vmax.f32 %v913_v2, 0.0  ;;  %v373_v45 = vmul.f32 %v688_v22, %v343_v50  ;;  %v1301_v12 = vmax.f32 %v886_v58, 0.0 }
 0x114   :  { %v1302_v7 = vmax.f32 %v915_v3, 0.0  ;;  %v393_v13 = vperm.slane %v371_v39, 2  ;;  %v394_v43 = vperm.slane %v371_v39, 6  ;;  %v395_v18 = vperm.slane %v372_v4, 2 }
 0x115   :  { %v994_v23 = vmul.f32 %v1300_v0, %v1299_v1  ;;  %v1303_v48 = vmax.f32 %v888_v59, 0.0  ;;  %v1304_v20 = vmax.f32 %v918_v6, 0.0  ;;  %v396_v52 = vperm.slane %v372_v4, 6 }
 0x116   :  { %v1000_v42 = vmul.f32 %v1302_v7, %v1301_v12  ;;  %v1305_v60 = vmax.f32 %v891_v61, 0.0  ;;  %v1306_v50 = vmax.f32 %v927_v33, 0.0  ;;  %v1307_v24 = vmax.f32 %v899_v40, 0.0 }
 0x117   :  { %v1017_v47 = vmul.f32 %v1304_v20, %v1303_v48  ;;  %v1308_v34 = vmax.f32 %v929_v46, 0.0  ;;  %v397_v6 = vperm.slane %v373_v45, 2  ;;  %v398_v35 = vperm.slane %v373_v45, 6 }
 0x118   :  { %v1024_v53 = vmul.f32 %v1306_v50, %v1305_v60  ;;  %v417_v61 = vperm.slane %v393_v13, 2  ;;  %v418_v33 = vperm.slane %v394_v43, 2  ;;  %v1041_v46 = vperm.slane %v395_v18, 2 }
 0x119   :  { %v1030_v25 = vmul.f32 %v1308_v34, %v1307_v24 }
 0x14e   :  { %v385_v21 = vpop.permute.xlu2 %384 }
 0x14f   :  { %v435_v56 = vadd.f32 %v423_v15, %v385_v21  ;;  %v436_v8 = vadd.f32 %v424_v14, %v385_v21  ;;  %v437_v57 = vadd.f32 %v425_v16, %v385_v21  ;;  %v438_v10 = vadd.f32 %v426_v62, %v385_v21 }
 0x150   :  { %v439_v63 = vadd.f32 %v427_v28, %v385_v21  ;;  %v440_v51 = vadd.f32 %v428_v5, %v385_v21  ;;  %v1047_v16 = vperm.slane %v396_v52, 2  ;;  %v1052_v5 = vperm.slane %v397_v6, 2 }
 0x151   :  { %v447_v26 = vsub.f32 %v435_v56, %v978_v44  ;;  %v448_v55 = vsub.f32 %v436_v8, %v980_v32  ;;  %v449_v2 = vsub.f32 %v437_v57, %v982_v17  ;;  %v450_v27 = vsub.f32 %v438_v10, %v984_v38 }
 0x152   :  { %v451_v31 = vsub.f32 %v439_v63, %v986_v9  ;;  %v452_v49 = vsub.f32 %v440_v51, %v988_v36  ;;  %v1057_v21 = vperm.slane %v398_v35, 2 }
 0x153   :  { %v1007_v19 = vmax.f32 %v447_v26, 1e-09  ;;  %v1009_v58 = vmax.f32 %v448_v55, 1e-09  ;;  %v1011_v3 = vmax.f32 %v449_v2, 1e-09 }
 0x154   :  { %v1032_v59 = vmax.f32 %v450_v27, 1e-09  ;;  %v1035_v54 = vmax.f32 %v451_v31, 1e-09  ;;  %v1043_v30 = vmax.f32 %v452_v49, 1e-09 }
 0x155   :  { %707 = vrcp.f32 %v1007_v19  ;;  %v566_v11 = vand.u32 2147483648, %v1007_v19  ;;  %v581_v40 = vand.u32 2147483648, %v1009_v58  ;;  %v564_v15 = vand.u32 2147483647, %v1007_v19 }
 0x156   :  { %709 = vrcp.f32 %v1009_v58  ;;  %v596_v14 = vand.u32 2147483648, %v1011_v3  ;;  %v579_v62 = vand.u32 2147483647, %v1009_v58  ;;  %v611_v28 = vand.u32 2147483648, %v1032_v59 }
 0x157   :  { %711 = vrcp.f32 %v1011_v3  ;;  %vm560_vm0 = vweird.f32 %v1007_v19  ;;  %v594_v22 = vand.u32 2147483647, %v1011_v3  ;;  %v567_v4 = vor.u32 1.1754944e-38, %v566_v11 }
 0x158   :  { %713 = vrcp.f32 %v1032_v59  ;;  %vm575_vm1 = vweird.f32 %v1009_v58  ;;  %v1060_v1 = vor.u32 1.1754944e-38, %v581_v40  ;;  %v626_v0 = vand.u32 2147483648, %v1035_v54 }
 0x159   :  { %715 = vrcp.f32 %v1035_v54  ;;  %vm1064_vm2 = vcmp.eq.f32.partialorder %v564_v15, 8.507059e+37  ;;  %vm590_vm3 = vweird.f32 %v1011_v3  ;;  %v597_v10 = vor.u32 1.1754944e-38, %v596_v14 }
 0x15a   :  { %v609_v63 = vand.u32 2147483647, %v1032_v59  ;;  %717 = vrcp.f32 %v1043_v30  ;;  %vm1072_vm5 = vcmp.eq.f32.partialorder %v579_v62, 8.507059e+37  ;;  %v1076_v7 = vor.u32 1.1754944e-38, %v611_v28 }
 0x15b   :  { %v708_v39 = vpop.eup %707  ;;  %v624_v26 = vand.u32 2147483647, %v1035_v54  ;;  %vm1080_vm7 = vcmp.eq.f32.partialorder %v594_v22, 8.507059e+37  ;;  %v1085_v31 = vor.u32 1.1754944e-38, %v626_v0  ;;  %v639_v48 = vand.u32 2147483647, %v1043_v30 }
 0x15c   :  { %v710_v56 = vpop.eup %709  ;;  %v556_v8 = vmul.f32 %v708_v39, %v1007_v19  ;;  %vm561_vm4 = vweird.f32 %v708_v39  ;;  %v641_v20 = vand.u32 2147483648, %v1043_v30  ;;  %vm1093_vm12 = vcmp.eq.f32.partialorder %v609_v63, 8.507059e+37 }
 0x15d   :  { %v712_v51 = vpop.eup %711  ;;  %v571_v45 = vmul.f32 %v710_v56, %v1009_v58  ;;  %vm576_vm6 = vweird.f32 %v710_v56  ;;  %vm1101_vm14 = vcmp.eq.f32.partialorder %v624_v26, 8.507059e+37  ;;  %vm562_vm10 = vmor %vm560_vm0, %vm561_vm4  ;;  %vm1111_vm8 = vcmp.eq.f32.partialorder %v639_v48, 8.507059e+37 }
 0x15e   :  { %v557_v55 = vsub.f32 1.0, %v556_v8  ;;  %v586_v2 = vmul.f32 %v712_v51, %v1011_v3  ;;  %v1087_v13 = vpop.permute.xlu1 %379  ;;  %v714_v43 = vpop.eup %713  ;;  %vm591_vm9 = vweird.f32 %v712_v51  ;;  %v642_v63 = vor.u32 1.1754944e-38, %v641_v20  ;;  %vm577_vm15 = vmor %vm575_vm1, %vm576_vm6 }
 0x15f   :  { %v572_v18 = vsub.f32 1.0, %v571_v45  ;;  %v716_v49 = vpop.eup %715  ;;  %v601_v50 = vmul.f32 %v714_v43, %v1032_v59  ;;  %v1098_v34 = vadd.f32 %v417_v61, %v1087_v13  ;;  %vm606_vm13 = vweird.f32 %v714_v43  ;;  %vm592_vm0 = vmor %vm590_vm3, %vm591_vm9 }
 0x160   :  { %v558_v52 = vmul.f32 %v708_v39, %v557_v55  ;;  %v587_v60 = vsub.f32 1.0, %v586_v2  ;;  %v616_v35 = vmul.f32 %v716_v49, %v1035_v54  ;;  %v430_v40 = vadd.f32 %v418_v33, %v1087_v13  ;;  %v718_v15 = vpop.eup %717 }
 0x161   :  { %v573_v6 = vmul.f32 %v710_v56, %v572_v18  ;;  %v602_v28 = vsub.f32 1.0, %v601_v50  ;;  %v631_v0 = vmul.f32 %v718_v15, %v1043_v30  ;;  %vm636_vm11 = vweird.f32 %v718_v15 }
 0x162   :  { %v559_v14 = vadd.f32 %v708_v39, %v558_v52  ;;  %v588_v62 = vmul.f32 %v712_v51, %v587_v60  ;;  %v617_v22 = vsub.f32 1.0, %v616_v35  ;;  %v431_v20 = vadd.f32 %v1041_v46, %v1087_v13 }
 0x163   :  { %v574_v61 = vadd.f32 %v710_v56, %v573_v6  ;;  %v603_v26 = vmul.f32 %v714_v43, %v602_v28  ;;  %v632_v18 = vsub.f32 1.0, %v631_v0  ;;  %vm1321_vm1 = vweird.f32 %v1032_v59 }
 0x164   :  { %v563_v45 = vsel %vm562_vm10, %v708_v39, %v559_v14  ;;  %v589_v33 = vadd.f32 %v712_v51, %v588_v62  ;;  %v618_v2 = vmul.f32 %v716_v49, %v617_v22  ;;  %vm1322_vm3 = vweird.f32 %v716_v49 }
 0x165   :  { %v568_v19 = vsel %vm1064_vm2, %v567_v4, %v563_v45  ;;  %v578_v55 = vsel %vm577_vm15, %v710_v56, %v574_v61  ;;  %v604_v58 = vadd.f32 %v714_v43, %v603_v26  ;;  %vm607_vm2 = vmor %vm1321_vm1, %vm606_vm13  ;;  %v633_v56 = vmul.f32 %v718_v15, %v632_v18 }
 0x166   :  { %v583_v39 = vsel %vm1072_vm5, %v1060_v1, %v578_v55  ;;  %v593_v48 = vsel %vm592_vm0, %v712_v51, %v589_v33  ;;  %v619_v3 = vadd.f32 %v716_v49, %v618_v2  ;;  %v569_v57 = vmul.f32 %v568_v19, %v978_v44 }
 0x167   :  { %v584_v52 = vmul.f32 %v583_v39, %v980_v32  ;;  %v598_v4 = vsel %vm1080_vm7, %v597_v10, %v593_v48  ;;  %v608_v12 = vsel %vm607_vm2, %v714_v43, %v604_v58  ;;  %vm1323_vm4 = vweird.f32 %v1035_v54 }
 0x168   :  { %vm622_vm5 = vmor %vm1323_vm4, %vm1322_vm3  ;;  %v432_v46 = vadd.f32 %v1047_v16, %v1087_v13  ;;  %v433_v32 = vadd.f32 %v1052_v5, %v1087_v13  ;;  %v613_v59 = vsel %vm1093_vm12, %v1076_v7, %v608_v12  ;;  %v634_v10 = vadd.f32 %v718_v15, %v633_v56 }
 0x169   :  { %v623_v1 = vsel %vm622_vm5, %v716_v49, %v619_v3  ;;  %v660_v51 = vrot.slane %v584_v52, 4  ;;  %v599_v44 = vmul.f32 %v598_v4, %v982_v17  ;;  %v614_v27 = vmul.f32 %v613_v59, %v984_v38 }
 0x16a   :  { %v628_v54 = vsel %vm1101_vm14, %v1085_v31, %v623_v1  ;;  %vm1324_vm6 = vweird.f32 %v1043_v30  ;;  %v441_v16 = vsub.f32 %v1098_v34, %v994_v23  ;;  %vm1325_vm9 = vcmask 1043456  }
 0x16b   :  { %vm637_vm7 = vmor %vm1324_vm6, %vm636_vm11  ;;  %v667_v7 = vsel %vm1325_vm9, %v569_v57, %v660_v51  ;;  %v434_v43 = vadd.f32 %v1057_v21, %v1087_v13  ;;  %v442_v17 = vsub.f32 %v430_v40, %v1000_v42  ;;  %v661_v49 = vrot.slane %v614_v27, 4 }
 0x16c   :  { %v638_v5 = vsel %vm637_vm7, %v718_v15, %v634_v10  ;;  %679 = vst [vmem:[%s1292_s2 + $0x18] sm:$0x77] %v667_v7  ;;  %v443_v30 = vsub.f32 %v431_v20, %v1017_v47  ;;  %v444_v31 = vsub.f32 %v432_v46, %v1024_v53  ;;  %v445_v50 = vsub.f32 %v433_v32, %v1030_v25  ;;  %vm1326_vm10 = vmmov %vm1325_vm9 }
 0x16d   :  { %v643_v38 = vsel %vm1111_vm8, %v642_v63, %v638_v5  ;;  %v453_v24 = vmax.f32 %v441_v16, 1e-09  ;;  %v668_v21 = vsel %vm1326_vm10, %v599_v44, %v661_v49  ;;  %v1327_v13 = vmax.f32 %v904_v41, 0.0  ;;  %vm1328_vm8 = vmmov %vm1325_vm9 }
 0x16e   :  { %v644_v60 = vmul.f32 %v643_v38, %v988_v36  ;;  %v1175_v6 = vmax.f32 %v442_v17, 1e-09  ;;  %v1177_v35 = vmax.f32 %v443_v30, 1e-09  ;;  %v629_v11 = vmul.f32 %v628_v54, %v986_v9  ;;  %680 = vst [vmem:[%s1292_s2 + $0x20] sm:$0x77] %v668_v21 }
 0x16f   :  { %v1173_v34 = vmul.f32 %v292_v29, %v1327_v13  ;;  %719 = vrcp.f32 %v453_v24  ;;  %v1184_v15 = vmax.f32 %v444_v31, 1e-09  ;;  %v1188_v37 = vmax.f32 %v445_v50, 1e-09 }
 0x170   :  { %v662_v40 = vrot.slane %v644_v60, 4  ;;  %721 = vrcp.f32 %v1175_v6  ;;  %v474_v29 = vand.u32 2147483647, %v453_v24  ;;  %v476_v9 = vand.u32 2147483648, %v453_v24 }
 0x171   :  { %v446_v36 = vsub.f32 %v434_v43, %v1173_v34  ;;  %723 = vrcp.f32 %v1177_v35  ;;  %v489_v62 = vand.u32 2147483647, %v1175_v6  ;;  %v491_v61 = vand.u32 2147483648, %v1175_v6 }
 0x172   :  { %v669_v41 = vsel %vm1328_vm8, %v629_v11, %v662_v40  ;;  %725 = vrcp.f32 %v1184_v15  ;;  %vm470_vm11 = vweird.f32 %v453_v24  ;;  %vm485_vm12 = vweird.f32 %v1175_v6 }
 0x173   :  { %681 = vst [vmem:[%s1292_s2 + $0x28] sm:$0x77] %v669_v41  ;;  %v1194_v14 = vmax.f32 %v446_v36, 1e-09  ;;  %727 = vrcp.f32 %v1188_v37  ;;  %v506_v8 = vand.u32 2147483648, %v1177_v35  ;;  %vm1202_vm13 = vcmp.eq.f32.partialorder %v474_v29, 8.507059e+37 }
 0x174   :  { %v477_v45 = vor.u32 1.1754944e-38, %v476_v9  ;;  %vm500_vm14 = vweird.f32 %v1177_v35  ;;  %v504_v26 = vand.u32 2147483647, %v1177_v35  ;;  %vm1209_vm15 = vcmp.eq.f32.partialorder %v489_v62, 8.507059e+37 }
 0x175   :  { %v720_v28 = vpop.eup %719  ;;  %v519_v18 = vand.u32 2147483647, %v1184_v15  ;;  %729 = vrcp.f32 %v1194_v14  ;;  %v492_v48 = vor.u32 1.1754944e-38, %v491_v61  ;;  %vm515_vm0 = vweird.f32 %v1184_v15 }
 0x176   :  { %v722_v22 = vpop.eup %721  ;;  %v466_v0 = vmul.f32 %v720_v28, %v453_v24  ;;  %vm471_vm1 = vweird.f32 %v720_v28  ;;  %v507_v4 = vor.u32 1.1754944e-38, %v506_v8  ;;  %v521_v3 = vand.u32 2147483648, %v1184_v15 }
 0x177   :  { %v481_v33 = vmul.f32 %v722_v22, %v1175_v6  ;;  %v724_v19 = vpop.eup %723  ;;  %vm486_vm2 = vweird.f32 %v722_v22  ;;  %vm1220_vm3 = vcmp.eq.f32.partialorder %v504_v26, 8.507059e+37  ;;  %vm1225_vm4 = vcmp.eq.f32.partialorder %v519_v18, 8.507059e+37  ;;  %vm1233_vm6 = vmor %vm470_vm11, %vm471_vm1 }
 0x178   :  { %v467_v55 = vsub.f32 1.0, %v466_v0  ;;  %v496_v58 = vmul.f32 %v724_v19, %v1177_v35  ;;  %v726_v20 = vpop.eup %725  ;;  %vm530_vm5 = vweird.f32 %v1188_v37  ;;  %vm501_vm7 = vweird.f32 %v724_v19  ;;  %vm487_vm9 = vmor %vm485_vm12, %vm486_vm2 }
 0x179   :  { %v482_v39 = vsub.f32 1.0, %v481_v33  ;;  %v1218_v56 = vpop.eup %727  ;;  %v511_v32 = vmul.f32 %v726_v20, %v1184_v15  ;;  %v522_v7 = vor.u32 1.1754944e-38, %v521_v3  ;;  %v534_v17 = vand.u32 2147483647, %v1188_v37  ;;  %vm1249_vm8 = vmor %vm500_vm14, %vm501_vm7 }
 0x17a   :  { %v468_v52 = vmul.f32 %v720_v28, %v467_v55  ;;  %v497_v12 = vsub.f32 1.0, %v496_v58  ;;  %v526_v10 = vmul.f32 %v1218_v56, %v1188_v37  ;;  %vm516_vm10 = vweird.f32 %v726_v20 }
 0x17b   :  { %v483_v57 = vmul.f32 %v722_v22, %v482_v39  ;;  %v512_v54 = vsub.f32 1.0, %v511_v32  ;;  %v730_v16 = vpop.eup %729  ;;  %v536_v40 = vand.u32 2147483648, %v1188_v37  ;;  %vm517_vm11 = vmor %vm515_vm0, %vm516_vm10  ;;  %vm531_vm12 = vweird.f32 %v1218_v56 }
 0x17c   :  { %v469_v59 = vadd.f32 %v720_v28, %v468_v52  ;;  %v498_v27 = vmul.f32 %v724_v19, %v497_v12  ;;  %v527_v43 = vsub.f32 1.0, %v526_v10  ;;  %v541_v21 = vmul.f32 %v730_v16, %v1194_v14  ;;  %vm532_vm14 = vmor %vm530_vm5, %vm531_vm12 }
 0x17d   :  { %v484_v44 = vadd.f32 %v722_v22, %v483_v57  ;;  %v513_v30 = vmul.f32 %v726_v20, %v512_v54  ;;  %v549_v41 = vand.u32 2147483647, %v1194_v14  ;;  %vm545_vm0 = vweird.f32 %v1194_v14 }
 0x17e   :  { %v473_v5 = vsel %vm1233_vm6, %v720_v28, %v469_v59  ;;  %v499_v49 = vadd.f32 %v724_v19, %v498_v27  ;;  %v528_v24 = vmul.f32 %v1218_v56, %v527_v43  ;;  %v542_v36 = vsub.f32 1.0, %v541_v21 }
 0x17f   :  { %v488_v38 = vsel %vm487_vm9, %v722_v22, %v484_v44  ;;  %v478_v31 = vsel %vm1202_vm13, %v477_v45, %v473_v5  ;;  %v514_v11 = vadd.f32 %v726_v20, %v513_v30  ;;  %vm546_vm13 = vweird.f32 %v730_v16 }
 0x180   :  { %v493_v60 = vsel %vm1209_vm15, %v492_v48, %v488_v38  ;;  %v503_v6 = vsel %vm1249_vm8, %v724_v19, %v499_v49  ;;  %v529_v35 = vadd.f32 %v1218_v56, %v528_v24  ;;  %v479_v29 = vmul.f32 %v478_v31, %v994_v23  ;;  %vm547_vm1 = vmor %vm545_vm0, %vm546_vm13 }
 0x181   :  { %v494_v13 = vmul.f32 %v493_v60, %v1000_v42  ;;  %v518_v9 = vsel %vm517_vm11, %v726_v20, %v514_v11  ;;  %v551_v42 = vand.u32 2147483648, %v1194_v14  ;;  %v508_v28 = vsel %vm1220_vm3, %v507_v4, %v503_v6 }
 0x182   :  { %v523_v15 = vsel %vm1225_vm4, %v522_v7, %v518_v9  ;;  %v543_v61 = vmul.f32 %v730_v16, %v542_v36  ;;  %vm1341_vm15 = vcmask 1043456   ;;  %v533_v23 = vsel %vm532_vm14, %v1218_v56, %v529_v35 }
 0x183   :  { %v657_v62 = vrot.slane %v494_v13, 4  ;;  %v524_v22 = vmul.f32 %v523_v15, %v1024_v53  ;;  %v509_v63 = vmul.f32 %v508_v28, %v1017_v47  ;;  %v537_v45 = vor.u32 1.1754944e-38, %v536_v40  ;;  %vm1342_vm4 = vmmov %vm1341_vm15 }
 0x184   :  { %v544_v8 = vadd.f32 %v730_v16, %v543_v61  ;;  %v552_v33 = vor.u32 1.1754944e-38, %v551_v42  ;;  %vm535_vm2 = vcmp.eq.f32.partialorder %v534_v17, 8.507059e+37  ;;  %vm550_vm3 = vcmp.eq.f32.partialorder %v549_v41, 8.507059e+37  ;;  %vm1343_vm5 = vmmov %vm1342_vm4 }
 0x185   :  { %v664_v0 = vsel %vm1341_vm15, %v479_v29, %v657_v62  ;;  %v658_v53 = vrot.slane %v524_v22, 4  ;;  %v538_v26 = vsel %vm535_vm2, %v537_v45, %v533_v23 }
 0x186   :  { %676 = vst [vmem:[%s1292_s2] sm:$0x77] %v664_v0  ;;  %v548_v37 = vsel %vm547_vm1, %v730_v16, %v544_v8  ;;  %v539_v14 = vmul.f32 %v538_v26, %v1030_v25 }
 0x187   :  { %v553_v19 = vsel %vm550_vm3, %v552_v33, %v548_v37  ;;  %v665_v55 = vsel %vm1342_vm4, %v509_v63, %v658_v53 }
 0x188   :  { %v554_v2 = vmul.f32 %v553_v19, %v1173_v34  ;;  %677 = vst [vmem:[%s1292_s2 + $0x8] sm:$0x77] %v665_v55 }
 0x18a   :  { %v659_v47 = vrot.slane %v554_v2, 4 }
 0x18c   :  { %v666_v18 = vsel %vm1343_vm5, %v539_v14, %v659_v47 }
 0x18d   :  { %678 = vst [vmem:[%s1292_s2 + $0x10] sm:$0x77] %v666_v18 }

// kernel: forward.17
= control target key start
LH: loop header
LB: loop body
LE: loop exit
PB: predicated region body
PF: predicated region fallthrough
CT: control target
= control target key end

     0   :  { %v750_v4 = vmov 0.0   ;;  %vm605_vm2 = vcmask 1040384   ;;  %vm48_vm3 = vcmask 1041408   ;;  %vm154_vm4 = vcmask 1045508   ;;  %s1030_s1 = inlined_call_operand.vmem [shape: s32[2,1,768], index: 1, kind: input, shape index: {}]   ;;  %s1031_s0 = inlined_call_operand.vmem [shape: f32[2,2,768], index: 0, kind: input, shape index: {}]   ;;  %s1032_s2 = inlined_call_operand.vmem [shape: f32[2,1,1], index: 2, kind: output, shape index: {}]  }
   0x1   :  { %v769_v0 = vld [vmem:[%s1030_s1] sm:$0x3f]  ;;  %v774_v1 = vld [vmem:[%s1030_s1 + $0x6] sm:$0x3f]  ;;  %v837_v29 = vld [vmem:[%s1031_s0 + $0xc] sm:$0xff]  ;;  %vm156_vm5 = vcmask 1043456  }
   0x2   :  { %v779_v2 = vld [vmem:[%s1031_s0] sm:$0xff]  ;;  %vm561_vm0 = vcmp.ge.s32.totalorder %v769_v0, 0  ;;  %vm562_vm1 = vcmp.ge.s32.totalorder %v774_v1, 0  ;;  %v786_v3 = vld [vmem:[%s1031_s0 + $0x8] sm:$0xf] }
   0x3   :  { %v789_v5 = vsel %vm561_vm0, 1.0, %v750_v4  ;;  %v792_v6 = vsel %vm562_vm1, 1.0, %v750_v4  ;;  %19 = vst [vmem:[#allocation1] ss:$4 sm:$0xff] %v779_v2  ;;  %v842_v30 = vld [vmem:[%s1031_s0 + $0x14] sm:$0xf] }
   0x4   :  { %v569_v7 = vperm.slane %v789_v5, 0  ;;  %v570_v8 = vperm.slane %v789_v5, 1  ;;  %v571_v9 = vperm.slane %v789_v5, 2  ;;  %v572_v10 = vperm.slane %v789_v5, 3  ;;  %21 = vst [vmem:[#allocation1 + $0x20] ss:$4 sm:$0xff] %v786_v3 }
   0x5   :  { %v573_v11 = vperm.slane %v789_v5, 4  ;;  %v574_v12 = vperm.slane %v789_v5, 5  ;;  %v575_v13 = vperm.slane %v792_v6, 0  ;;  %v576_v14 = vperm.slane %v792_v6, 1 }
   0x6   :  { %v632_v15 = vsel %vm605_vm2, %v569_v7, 0.0  ;;  %v633_v16 = vsel %vm605_vm2, %v570_v8, 0.0  ;;  %v635_v17 = vsel %vm605_vm2, %v571_v9, 0.0  ;;  %v637_v19 = vsel %vm605_vm2, %v572_v10, 0.0 }
   0x7   :  { %v634_v18 = vadd.f32 %v633_v16, %v632_v15  ;;  %v577_v20 = vperm.slane %v792_v6, 2  ;;  %v639_v21 = vsel %vm605_vm2, %v573_v11, 0.0  ;;  %v578_v22 = vperm.slane %v792_v6, 3 }
   0x8   :  { %v579_v23 = vperm.slane %v792_v6, 4  ;;  %v645_v24 = vsel %vm605_vm2, %v575_v13, 0.0  ;;  %v641_v26 = vsel %vm605_vm2, %v574_v12, 0.0  ;;  %v646_v27 = vsel %vm605_vm2, %v576_v14, 0.0 }
   0x9   :  { %v636_v25 = vadd.f32 %v635_v17, %v634_v18  ;;  %v648_v28 = vsel %vm605_vm2, %v577_v20, 0.0  ;;  %v580_v31 = vperm.slane %v792_v6, 5  ;;  %v647_v32 = vadd.f32 %v646_v27, %v645_v24 }
   0xa   :  { %v650_v33 = vsel %vm605_vm2, %v578_v22, 0.0  ;;  %v652_v34 = vsel %vm605_vm2, %v579_v23, 0.0  ;;  %v22_v35 = vld.sshfl [vmem:[#allocation1] sm:$0xff pattern:$0x73625140] }
   0xb   :  { %v638_v36 = vadd.f32 %v637_v19, %v636_v25  ;;  %v23_v37 = vld.sshfl [vmem:[#allocation1 + $0x8] sm:$0xff pattern:$0x73625140]  ;;  %v24_v38 = vld.sshfl [vmem:[#allocation1 + $0x10] sm:$0xff pattern:$0x73625140]  ;;  %v649_v39 = vadd.f32 %v648_v28, %v647_v32 }
   0xc   :  { %v25_v40 = vld.sshfl [vmem:[#allocation1 + $0x18] sm:$0xff pattern:$0x73625140]  ;;  %v26_v41 = vld.sshfl [vmem:[#allocation1 + $0x20] sm:$0xff pattern:$0x73625140] }
   0xd   :  { %v640_v42 = vadd.f32 %v639_v21, %v638_v36  ;;  %v27_v43 = vld.sshfl [vmem:[#allocation1 + $0x28] sm:$0xff pattern:$0x73625140]  ;;  %28 = vst [vmem:[#allocation1] ss:$4 sm:$0xff] %v837_v29  ;;  %v49_v44 = vsel %vm48_vm3, %v22_v35, -inf  ;;  %v651_v45 = vadd.f32 %v650_v33, %v649_v39 }
   0xe   :  { %29 = vst [vmem:[#allocation1 + $0x20] ss:$4 sm:$0xff] %v842_v30  ;;  %v50_v46 = vrot.slane %v49_v44, 4  ;;  %v56_v47 = vsel %vm48_vm3, %v23_v37, -inf  ;;  %v63_v48 = vsel %vm48_vm3, %v24_v38, -inf  ;;  %v70_v52 = vsel %vm48_vm3, %v25_v40, -inf }
   0xf   :  { %v642_v49 = vadd.f32 %v641_v26, %v640_v42  ;;  %v57_v50 = vrot.slane %v56_v47, 4  ;;  %v64_v51 = vrot.slane %v63_v48, 4  ;;  %v653_v53 = vadd.f32 %v652_v34, %v651_v45 }
  0x10   :  { %v51_v54 = vmax.f32 %v49_v44, %v50_v46  ;;  %v71_v55 = vrot.slane %v70_v52, 4  ;;  %v77_v56 = vsel %vm48_vm3, %v26_v41, -inf  ;;  %v84_v60 = vsel %vm48_vm3, %v27_v43, -inf }
  0x11   :  { %643 = vadd.xlane.f32.xlu0 %v642_v49  ;;  %v58_v57 = vmax.f32 %v56_v47, %v57_v50  ;;  %v65_v58 = vmax.f32 %v63_v48, %v64_v51  ;;  %v78_v59 = vrot.slane %v77_v56, 4  ;;  %v654_v61 = vsel %vm605_vm2, %v580_v31, 0.0 }
  0x12   :  { %v52_v62 = vrot.slane %v51_v54, 2  ;;  %v85_v63 = vrot.slane %v84_v60, 4  ;;  %v72_v17 = vmax.f32 %v70_v52, %v71_v55  ;;  %v655_v24 = vadd.f32 %v654_v61, %v653_v53 }
  0x13   :  { %v59_v15 = vrot.slane %v58_v57, 2  ;;  %v66_v16 = vrot.slane %v65_v58, 2  ;;  %v79_v19 = vmax.f32 %v77_v56, %v78_v59 }
  0x14   :  { %v53_v18 = vmax.f32 %v51_v54, %v52_v62  ;;  %v86_v21 = vmax.f32 %v84_v60, %v85_v63  ;;  %v30_v25 = vld.sshfl [vmem:[#allocation1] sm:$0xff pattern:$0x73625140]  ;;  %v31_v26 = vld.sshfl [vmem:[#allocation1 + $0x8] sm:$0xff pattern:$0x73625140] }
  0x15   :  { %v60_v27 = vmax.f32 %v58_v57, %v59_v15  ;;  %v67_v28 = vmax.f32 %v65_v58, %v66_v16  ;;  %v32_v32 = vld.sshfl [vmem:[#allocation1 + $0x10] sm:$0xff pattern:$0x73625140]  ;;  %v33_v33 = vld.sshfl [vmem:[#allocation1 + $0x18] sm:$0xff pattern:$0x73625140] }
  0x16   :  { %v34_v34 = vld.sshfl [vmem:[#allocation1 + $0x20] sm:$0xff pattern:$0x73625140]  ;;  %v54_v35 = vrot.slane %v53_v18, 1  ;;  %v73_v38 = vrot.slane %v72_v17, 2  ;;  %v80_v39 = vrot.slane %v79_v19, 2 }
  0x17   :  { %v61_v36 = vrot.slane %v60_v27, 1  ;;  %v68_v37 = vrot.slane %v67_v28, 1  ;;  %v87_v40 = vrot.slane %v86_v21, 2  ;;  %v91_v41 = vsel %vm48_vm3, %v30_v25, -inf }
  0x18   :  { %v98_v42 = vsel %vm48_vm3, %v31_v26, -inf  ;;  %v55_v43 = vmax.f32 %v53_v18, %v54_v35  ;;  %v74_v46 = vmax.f32 %v72_v17, %v73_v38  ;;  %v81_v47 = vmax.f32 %v79_v19, %v80_v39  ;;  %v35_v55 = vld.sshfl [vmem:[#allocation1 + $0x28] sm:$0xff pattern:$0x73625140] }
  0x19   :  { %656 = vadd.xlane.f32.xlu0 %v655_v24  ;;  %v62_v44 = vmax.f32 %v60_v27, %v61_v36  ;;  %v69_v45 = vmax.f32 %v67_v28, %v68_v37  ;;  %v88_v48 = vmax.f32 %v86_v21, %v87_v40  ;;  %v92_v49 = vrot.slane %v91_v41, 4 }
  0x1a   :  { %v99_v50 = vrot.slane %v98_v42, 4  ;;  %v75_v51 = vrot.slane %v74_v46, 1  ;;  %v105_v52 = vsel %vm48_vm3, %v32_v32, -inf  ;;  %v112_v53 = vsel %vm48_vm3, %v33_v33, -inf }
  0x1b   :  { %v119_v54 = vsel %vm48_vm3, %v34_v34, -inf  ;;  %v82_v56 = vrot.slane %v81_v47, 1  ;;  %v89_v57 = vrot.slane %v88_v48, 1  ;;  %v93_v58 = vmax.f32 %v91_v41, %v92_v49 }
  0x1c   :  { %v100_v59 = vmax.f32 %v98_v42, %v99_v50  ;;  %v76_v60 = vmax.f32 %v74_v46, %v75_v51  ;;  %v106_v61 = vrot.slane %v105_v52, 4  ;;  %v113_v62 = vrot.slane %v112_v53, 4 }
  0x1d   :  { %v120_v63 = vrot.slane %v119_v54, 4  ;;  %v83_v15 = vmax.f32 %v81_v47, %v82_v56  ;;  %v90_v16 = vmax.f32 %v88_v48, %v89_v57  ;;  %v94_v17 = vrot.slane %v93_v58, 2 }
  0x1e   :  { %v101_v18 = vrot.slane %v100_v59, 2  ;;  %v107_v19 = vmax.f32 %v105_v52, %v106_v61  ;;  %v114_v21 = vmax.f32 %v112_v53, %v113_v62  ;;  %v126_v25 = vsel %vm48_vm3, %v35_v55, -inf }
  0x1f   :  { %v121_v24 = vmax.f32 %v119_v54, %v120_v63  ;;  %v95_v26 = vmax.f32 %v93_v58, %v94_v17  ;;  %v127_v28 = vrot.slane %v126_v25, 4  ;;  %v145_v32 = vrot.slane %v62_v44, 6 }
  0x20   :  { %v102_v27 = vmax.f32 %v100_v59, %v101_v18  ;;  %v108_v33 = vrot.slane %v107_v19, 2  ;;  %v115_v34 = vrot.slane %v114_v21, 2  ;;  %v146_v36 = vrot.slane %v69_v45, 4 }
  0x21   :  { %v122_v35 = vrot.slane %v121_v24, 2  ;;  %v96_v37 = vrot.slane %v95_v26, 1  ;;  %v128_v39 = vmax.f32 %v126_v25, %v127_v28  ;;  %v147_v40 = vrot.slane %v76_v60, 2 }
  0x22   :  { %v103_v38 = vrot.slane %v102_v27, 1  ;;  %v109_v41 = vmax.f32 %v107_v19, %v108_v33  ;;  %v116_v42 = vmax.f32 %v114_v21, %v115_v34  ;;  %v148_v47 = vrot.slane %v90_v16, 6 }
  0x23   :  { %v123_v46 = vmax.f32 %v121_v24, %v122_v35  ;;  %v97_v48 = vmax.f32 %v95_v26, %v96_v37  ;;  %v129_v50 = vrot.slane %v128_v39, 2  ;;  %v153_v51 = vsel %vm48_vm3, %v55_v43, %v145_v32 }
  0x24   :  { %v104_v49 = vmax.f32 %v102_v27, %v103_v38  ;;  %v110_v52 = vrot.slane %v109_v41, 1  ;;  %v117_v53 = vrot.slane %v116_v42, 1  ;;  %v155_v54 = vsel %vm154_vm4, %v146_v36, %v147_v40 }
  0x25   :  { %v124_v44 = vrot.slane %v123_v46, 1  ;;  %v130_v55 = vmax.f32 %v128_v39, %v129_v50  ;;  %v157_v56 = vsel %vm156_vm5, %v153_v51, %v155_v54  ;;  %v158_v57 = vsel %vm48_vm3, %v83_v15, %v148_v47 }
  0x26   :  { %v149_v45 = vrot.slane %v104_v49, 6  ;;  %v111_v58 = vmax.f32 %v109_v41, %v110_v52  ;;  %v118_v59 = vmax.f32 %v116_v42, %v117_v53  ;;  %v873_v60 = vsub.f32 %v779_v2, %v157_v56 }
  0x27   :  { %v131_v61 = vrot.slane %v130_v55, 1  ;;  %v876_v62 = vsub.f32 %v786_v3, %v158_v57  ;;  %v125_v18 = vmax.f32 %v123_v46, %v124_v44  ;;  %v358_v34 = vlaneseq }
  0x28   :  { %v150_v43 = vrot.slane %v111_v58, 4  ;;  %v151_v63 = vrot.slane %v118_v59, 2  ;;  %v159_v16 = vsel %vm48_vm3, %v97_v48, %v149_v45  ;;  %v171_v17 = vmul.f32 1.442695, %v873_v60 }
  0x29   :  { %v132_v19 = vmax.f32 %v130_v55, %v131_v61  ;;  %v173_v21 = vmul.f32 1.442695, %v876_v62  ;;  %v892_v35 = vshrl.u32 %v358_v34, 7  ;;  %v362_v36 = vperm.slane %v769_v0, 2 }
  0x2a   :  { %v160_v15 = vsel %vm154_vm4, %v150_v43, %v151_v63  ;;  %714 = vpow2.f32 %v171_v17  ;;  %v360_v37 = vperm.slane %v769_v0, 0 }
  0x2b   :  { %v152_v24 = vrot.slane %v132_v19, 6  ;;  %v161_v2 = vsel %vm156_vm5, %v159_v16, %v160_v15  ;;  %716 = vpow2.f32 %v173_v21  ;;  %vm374_vm7 = vcmp.eq.s32.totalorder %v892_v35, %v362_v36 }
  0x2c   :  { %v884_v3 = vsub.f32 %v837_v29, %v161_v2  ;;  %v361_v29 = vperm.slane %v769_v0, 1  ;;  %v701_v39 = vsel %vm374_vm7, 1.0, %v750_v4  ;;  %vm905_vm9 = vcmp.eq.s32.totalorder %v892_v35, %v360_v37 }
  0x2d   :  { %v162_v25 = vsel %vm48_vm3, %v125_v18, %v152_v24  ;;  %v421_v46 = vrot.slane %v701_v39, 4  ;;  %v364_v16 = vperm.slane %v769_v0, 4  ;;  %v699_v36 = vsel %vm905_vm9, 1.0, %v750_v4 }
  0x2e   :  { %v888_v26 = vsub.f32 %v842_v30, %v162_v25  ;;  %v175_v27 = vmul.f32 1.442695, %v884_v3  ;;  %v363_v30 = vperm.slane %v769_v0, 3  ;;  %vm373_vm6 = vcmp.eq.s32.totalorder %v892_v35, %v361_v29 }
  0x2f   :  { %v700_v38 = vsel %vm373_vm6, 1.0, %v750_v4  ;;  %v365_v25 = vperm.slane %v769_v0, 5  ;;  %vm376_vm10 = vcmp.eq.s32.totalorder %v892_v35, %v364_v16  ;;  %vm692_vm6 = vcmask 0  }
  0x30   :  { %v715_v28 = vpop.eup %714  ;;  %v177_v32 = vmul.f32 1.442695, %v888_v26  ;;  %718 = vpow2.f32 %v175_v27  ;;  %vm375_vm8 = vcmp.eq.s32.totalorder %v892_v35, %v363_v30  ;;  %v420_v42 = vrot.slane %v700_v38, 6 }
  0x31   :  { %v717_v33 = vpop.eup %716  ;;  %183 = vst [vmem:[#allocation1] ss:$4 sm:$0xff] %v715_v28  ;;  %v702_v41 = vsel %vm375_vm8, 1.0, %v750_v4  ;;  %vm377_vm11 = vcmp.eq.s32.totalorder %v892_v35, %v365_v25  ;;  %v703_v0 = vsel %vm376_vm10, 1.0, %v750_v4 }
  0x32   :  { %720 = vpow2.f32 %v177_v32  ;;  %185 = vst [vmem:[#allocation1 + $0x20] ss:$4 sm:$0xff] %v717_v33  ;;  %v422_v17 = vrot.slane %v702_v41, 2 }
  0x34   :  { %v429_v30 = vsel %vm154_vm4, %v421_v46, %v422_v17 }
  0x36   :  { %v719_v40 = vpop.eup %718 }
  0x38   :  { %v721_v47 = vpop.eup %720  ;;  %v186_v48 = vld.sshfl [vmem:[#allocation1] sm:$0xff pattern:$0x73625140]  ;;  %v187_v49 = vld.sshfl [vmem:[#allocation1 + $0x8] sm:$0xff pattern:$0x73625140] }
  0x39   :  { %v188_v50 = vld.sshfl [vmem:[#allocation1 + $0x10] sm:$0xff pattern:$0x73625140]  ;;  %v189_v51 = vld.sshfl [vmem:[#allocation1 + $0x18] sm:$0xff pattern:$0x73625140] }
  0x3a   :  { %v190_v52 = vld.sshfl [vmem:[#allocation1 + $0x20] sm:$0xff pattern:$0x73625140]  ;;  %v191_v53 = vld.sshfl [vmem:[#allocation1 + $0x28] sm:$0xff pattern:$0x73625140] }
  0x3b   :  { %192 = vst [vmem:[#allocation1] ss:$4 sm:$0xff] %v719_v40  ;;  %v212_v54 = vsel %vm48_vm3, %v186_v48, 0.0  ;;  %v219_v55 = vsel %vm48_vm3, %v187_v49, 0.0  ;;  %v226_v45 = vsel %vm48_vm3, %v188_v50, 0.0  ;;  %v233_v56 = vsel %vm48_vm3, %v189_v51, 0.0 }
  0x3c   :  { %193 = vst [vmem:[#allocation1 + $0x20] ss:$4 sm:$0xff] %v721_v47  ;;  %v213_v57 = vrot.slane %v212_v54, 4  ;;  %v220_v58 = vrot.slane %v219_v55, 4  ;;  %v227_v59 = vrot.slane %v226_v45, 4  ;;  %v234_v61 = vrot.slane %v233_v56, 4 }
  0x3d   :  { %v240_v43 = vsel %vm48_vm3, %v190_v52, 0.0  ;;  %v247_v63 = vsel %vm48_vm3, %v191_v53, 0.0  ;;  %v428_v47 = vsel %vm48_vm3, %v699_v36, %v420_v42 }
  0x3e   :  { %v214_v18 = vadd.f32 %v213_v57, %v212_v54  ;;  %v221_v19 = vadd.f32 %v220_v58, %v219_v55  ;;  %v228_v21 = vadd.f32 %v227_v59, %v226_v45  ;;  %v235_v15 = vadd.f32 %v234_v61, %v233_v56 }
  0x3f   :  { %v241_v24 = vrot.slane %v240_v43, 4  ;;  %v248_v2 = vrot.slane %v247_v63, 4  ;;  %v926_v51 = vsel %vm156_vm5, %v428_v47, %v429_v30  ;;  %v704_v45 = vsel %vm377_vm11, 1.0, %v750_v4 }
  0x40   :  { %v215_v27 = vrot.slane %v214_v18, 2  ;;  %v222_v28 = vrot.slane %v221_v19, 2  ;;  %v229_v32 = vrot.slane %v228_v21, 2  ;;  %v236_v33 = vrot.slane %v235_v15, 2 }
  0x41   :  { %v242_v34 = vadd.f32 %v241_v24, %v240_v43  ;;  %v249_v29 = vadd.f32 %v248_v2, %v247_v63  ;;  %v423_v63 = vrot.slane %v704_v45, 6 }
  0x42   :  { %v216_v37 = vadd.f32 %v215_v27, %v214_v18  ;;  %v223_v38 = vadd.f32 %v222_v28, %v221_v19  ;;  %v230_v39 = vadd.f32 %v229_v32, %v228_v21  ;;  %v237_v40 = vadd.f32 %v236_v33, %v235_v15  ;;  %v194_v41 = vld.sshfl [vmem:[#allocation1] sm:$0xff pattern:$0x73625140]  ;;  %v195_v48 = vld.sshfl [vmem:[#allocation1 + $0x8] sm:$0xff pattern:$0x73625140] }
  0x43   :  { %v196_v49 = vld.sshfl [vmem:[#allocation1 + $0x10] sm:$0xff pattern:$0x73625140]  ;;  %v197_v50 = vld.sshfl [vmem:[#allocation1 + $0x18] sm:$0xff pattern:$0x73625140]  ;;  %v934_v2 = vsel %vm48_vm3, %v703_v0, %v423_v63 }
  0x44   :  { %v217_v52 = vrot.slane %v216_v37, 1  ;;  %v224_v53 = vrot.slane %v223_v38, 1  ;;  %v231_v46 = vrot.slane %v230_v39, 1  ;;  %v238_v44 = vrot.slane %v237_v40, 1 }
  0x45   :  { %v243_v54 = vrot.slane %v242_v34, 2  ;;  %v250_v55 = vrot.slane %v249_v29, 2  ;;  %v254_v56 = vsel %vm48_vm3, %v194_v41, 0.0  ;;  %v261_v17 = vsel %vm48_vm3, %v195_v48, 0.0 }
  0x46   :  { %v218_v57 = vadd.f32 %v217_v52, %v216_v37  ;;  %v225_v58 = vadd.f32 %v224_v53, %v223_v38  ;;  %v232_v59 = vadd.f32 %v231_v46, %v230_v39  ;;  %v239_v42 = vadd.f32 %v238_v44, %v237_v40  ;;  %v198_v21 = vld.sshfl [vmem:[#allocation1 + $0x20] sm:$0xff pattern:$0x73625140]  ;;  %v199_v25 = vld.sshfl [vmem:[#allocation1 + $0x28] sm:$0xff pattern:$0x73625140] }
  0x47   :  { %v244_v61 = vadd.f32 %v243_v54, %v242_v34  ;;  %v251_v43 = vadd.f32 %v250_v55, %v249_v29  ;;  %v255_v16 = vrot.slane %v254_v56, 4  ;;  %v268_v18 = vsel %vm48_vm3, %v196_v49, 0.0 }
  0x48   :  { %722 = vlog2.f32 %v218_v57  ;;  %v275_v19 = vsel %vm48_vm3, %v197_v50, 0.0  ;;  %v262_v28 = vrot.slane %v261_v17, 4  ;;  %v269_v32 = vrot.slane %v268_v18, 4 }
  0x49   :  { %v245_v15 = vrot.slane %v244_v61, 1  ;;  %v252_v24 = vrot.slane %v251_v43, 1  ;;  %724 = vlog2.f32 %v225_v58  ;;  %v256_v27 = vadd.f32 %v255_v16, %v254_v56 }
  0x4a   :  { %726 = vlog2.f32 %v232_v59  ;;  %v276_v29 = vrot.slane %v275_v19, 4  ;;  %v263_v30 = vadd.f32 %v262_v28, %v261_v17  ;;  %v270_v37 = vadd.f32 %v269_v32, %v268_v18 }
  0x4b   :  { %v246_v33 = vadd.f32 %v245_v15, %v244_v61  ;;  %v253_v34 = vadd.f32 %v252_v24, %v251_v43  ;;  %728 = vlog2.f32 %v239_v42  ;;  %v257_v36 = vrot.slane %v256_v27, 2 }
  0x4c   :  { %v282_v38 = vsel %vm48_vm3, %v198_v21, 0.0  ;;  %v277_v39 = vadd.f32 %v276_v29, %v275_v19  ;;  %v289_v41 = vsel %vm48_vm3, %v199_v25, 0.0  ;;  %v264_v48 = vrot.slane %v263_v30, 2 }
  0x4d   :  { %730 = vlog2.f32 %v246_v33  ;;  %v283_v40 = vrot.slane %v282_v38, 4  ;;  %v258_v47 = vadd.f32 %v257_v36, %v256_v27  ;;  %v271_v49 = vrot.slane %v270_v37, 2 }
  0x4e   :  { %v723_v0 = vpop.eup %722  ;;  %732 = vlog2.f32 %v253_v34  ;;  %v278_v53 = vrot.slane %v277_v39, 2  ;;  %v290_v44 = vrot.slane %v289_v41, 4  ;;  %v265_v56 = vadd.f32 %v264_v48, %v263_v30 }
  0x4f   :  { %v725_v50 = vpop.eup %724  ;;  %v297_v52 = vmul.f32 0.6931472, %v723_v0  ;;  %v284_v46 = vadd.f32 %v283_v40, %v282_v38  ;;  %v259_v45 = vrot.slane %v258_v47, 1  ;;  %v272_v57 = vadd.f32 %v271_v49, %v270_v37 }
  0x50   :  { %v727_v54 = vpop.eup %726  ;;  %v299_v55 = vmul.f32 0.6931472, %v725_v50  ;;  %v279_v42 = vadd.f32 %v278_v53, %v277_v39  ;;  %v291_v43 = vadd.f32 %v290_v44, %v289_v41  ;;  %v266_v18 = vrot.slane %v265_v56, 1 }
  0x51   :  { %v729_v58 = vpop.eup %728  ;;  %v301_v59 = vmul.f32 0.6931472, %v727_v54  ;;  %v285_v61 = vrot.slane %v284_v46, 2  ;;  %v260_v17 = vadd.f32 %v259_v45, %v258_v47  ;;  %v273_v15 = vrot.slane %v272_v57, 1 }
  0x52   :  { %v303_v63 = vmul.f32 0.6931472, %v729_v58  ;;  %v332_v16 = vrot.slane %v299_v55, 6  ;;  %v280_v24 = vrot.slane %v279_v42, 1  ;;  %v267_v34 = vadd.f32 %v266_v18, %v265_v56 }
  0x53   :  { %v731_v19 = vpop.eup %730  ;;  %v333_v21 = vrot.slane %v301_v59, 4  ;;  %v286_v25 = vadd.f32 %v285_v61, %v284_v46  ;;  %v274_v36 = vadd.f32 %v273_v15, %v272_v57  ;;  %v292_v39 = vrot.slane %v291_v43, 2 }
  0x54   :  { %v733_v27 = vpop.eup %732  ;;  %v305_v28 = vmul.f32 0.6931472, %v731_v19  ;;  %v334_v32 = vrot.slane %v303_v63, 2  ;;  %v340_v33 = vsel %vm48_vm3, %v297_v52, %v332_v16  ;;  %v281_v30 = vadd.f32 %v280_v24, %v279_v42 }
  0x55   :  { %v307_v29 = vmul.f32 0.6931472, %v733_v27  ;;  %v287_v37 = vrot.slane %v286_v25, 1  ;;  %734 = vlog2.f32 %v260_v17  ;;  %v366_v40 = vperm.slane %v774_v1, 0 }
  0x56   :  { %v341_v38 = vsel %vm154_vm4, %v333_v21, %v334_v32  ;;  %736 = vlog2.f32 %v267_v34  ;;  %v293_v49 = vadd.f32 %v292_v39, %v291_v43  ;;  %v367_v50 = vperm.slane %v774_v1, 1 }
  0x57   :  { %v335_v41 = vrot.slane %v307_v29, 6  ;;  %v342_v0 = vsel %vm156_vm5, %v340_v33, %v341_v38  ;;  %v288_v47 = vadd.f32 %v287_v37, %v286_v25  ;;  %738 = vlog2.f32 %v274_v36 }
  0x58   :  { %v352_v48 = vsub.f32 %v873_v60, %v342_v0  ;;  %740 = vlog2.f32 %v281_v30  ;;  %v368_v53 = vperm.slane %v774_v1, 2  ;;  %v369_v46 = vperm.slane %v774_v1, 3 }
  0x59   :  { %v343_v52 = vsel %vm48_vm3, %v305_v28, %v335_v41  ;;  %v294_v55 = vrot.slane %v293_v49, 1  ;;  %742 = vlog2.f32 %v288_v47  ;;  %v370_v45 = vperm.slane %v774_v1, 4 }
  0x5a   :  { %v353_v44 = vsub.f32 %v876_v62, %v343_v52  ;;  %v440_v54 = vmul.f32 %v926_v51, %v352_v48  ;;  %v371_v60 = vperm.slane %v774_v1, 5  ;;  %vm378_vm12 = vcmp.eq.s32.totalorder %v892_v35, %v366_v40 }
  0x5b   :  { %vm379_vm13 = vcmp.eq.s32.totalorder %v892_v35, %v367_v50  ;;  %v735_v56 = vpop.eup %734  ;;  %v295_v58 = vadd.f32 %v294_v55, %v293_v49  ;;  %vm380_vm14 = vcmp.eq.s32.totalorder %v892_v35, %v368_v53  ;;  %vm381_vm15 = vcmp.eq.s32.totalorder %v892_v35, %v369_v46 }
  0x5c   :  { %v441_v57 = vmul.f32 %v934_v2, %v353_v44  ;;  %448 = vst [vmem:[#allocation1] ss:$4 sm:$0xff] %v440_v54  ;;  %v737_v62 = vpop.eup %736  ;;  %v309_v51 = vmul.f32 0.6931472, %v735_v56  ;;  %vm383_vm0 = vcmp.eq.s32.totalorder %v892_v35, %v371_v60  ;;  %v705_v59 = vsel %vm378_vm12, 1.0, %v750_v4 }
  0x5d   :  { %v739_v1 = vpop.eup %738  ;;  %v311_v42 = vmul.f32 0.6931472, %v737_v62  ;;  %vm382_vm1 = vcmp.eq.s32.totalorder %v892_v35, %v370_v45  ;;  %v706_v61 = vsel %vm379_vm13, 1.0, %v750_v4  ;;  %v707_v2 = vsel %vm380_vm14, 1.0, %v750_v4 }
  0x5e   :  { %450 = vst [vmem:[#allocation1 + $0x20] ss:$4 sm:$0xff] %v441_v57  ;;  %v741_v43 = vpop.eup %740  ;;  %v313_v63 = vmul.f32 0.6931472, %v739_v1  ;;  %744 = vlog2.f32 %v295_v58  ;;  %v708_v16 = vsel %vm381_vm15, 1.0, %v750_v4  ;;  %v710_v17 = vsel %vm383_vm0, 1.0, %v750_v4 }
  0x5f   :  { %v743_v18 = vpop.eup %742  ;;  %v315_v19 = vmul.f32 0.6931472, %v741_v43  ;;  %v336_v21 = vrot.slane %v311_v42, 6  ;;  %v424_v15 = vrot.slane %v706_v61, 6  ;;  %v425_v24 = vrot.slane %v707_v2, 4 }
  0x60   :  { %v317_v25 = vmul.f32 0.6931472, %v743_v18  ;;  %v337_v27 = vrot.slane %v313_v63, 4  ;;  %v709_v35 = vsel %vm382_vm1, 1.0, %v750_v4  ;;  %v426_v28 = vrot.slane %v708_v16, 2 }
  0x61   :  { %v338_v32 = vrot.slane %v315_v19, 2  ;;  %v344_v33 = vsel %vm48_vm3, %v309_v51, %v336_v21  ;;  %v427_v34 = vrot.slane %v710_v17, 6  ;;  %v432_v29 = vsel %vm48_vm3, %v705_v59, %v424_v15 }
  0x62   :  { %v433_v37 = vsel %vm154_vm4, %v425_v24, %v426_v28 }
  0x63   :  { %v451_v36 = vld.sshfl [vmem:[#allocation1] sm:$0xff pattern:$0x73625140]  ;;  %v452_v30 = vld.sshfl [vmem:[#allocation1 + $0x8] sm:$0xff pattern:$0x73625140]  ;;  %v345_v40 = vsel %vm154_vm4, %v337_v27, %v338_v32  ;;  %v434_v48 = vsel %vm156_vm5, %v432_v29, %v433_v37  ;;  %v435_v15 = vsel %vm48_vm3, %v709_v35, %v427_v34 }
  0x64   :  { %v453_v38 = vld.sshfl [vmem:[#allocation1 + $0x10] sm:$0xff pattern:$0x73625140]  ;;  %v454_v39 = vld.sshfl [vmem:[#allocation1 + $0x18] sm:$0xff pattern:$0x73625140]  ;;  %v745_v41 = vpop.eup %744  ;;  %v346_v4 = vsel %vm156_vm5, %v344_v33, %v345_v40 }
  0x65   :  { %v455_v0 = vld.sshfl [vmem:[#allocation1 + $0x20] sm:$0xff pattern:$0x73625140]  ;;  %v456_v47 = vld.sshfl [vmem:[#allocation1 + $0x28] sm:$0xff pattern:$0x73625140]  ;;  %v354_v57 = vsub.f32 %v884_v3, %v346_v4 }
  0x66   :  { %v477_v49 = vsel %vm48_vm3, %v451_v36, 0.0  ;;  %v484_v50 = vsel %vm48_vm3, %v452_v30, 0.0  ;;  %v491_v52 = vsel %vm48_vm3, %v453_v38, 0.0  ;;  %v498_v53 = vsel %vm48_vm3, %v454_v39, 0.0 }
  0x67   :  { %v478_v46 = vrot.slane %v477_v49, 4  ;;  %v485_v44 = vrot.slane %v484_v50, 4  ;;  %v492_v54 = vrot.slane %v491_v52, 4  ;;  %v499_v55 = vrot.slane %v498_v53, 4 }
  0x68   :  { %v505_v45 = vsel %vm48_vm3, %v455_v0, 0.0  ;;  %v512_v60 = vsel %vm48_vm3, %v456_v47, 0.0  ;;  %v319_v56 = vmul.f32 0.6931472, %v745_v41  ;;  %v442_v2 = vmul.f32 %v434_v48, %v354_v57 }
  0x69   :  { %v479_v58 = vadd.f32 %v478_v46, %v477_v49  ;;  %v486_v62 = vadd.f32 %v485_v44, %v484_v50  ;;  %v493_v51 = vadd.f32 %v492_v54, %v491_v52  ;;  %v500_v59 = vadd.f32 %v499_v55, %v498_v53 }
  0x6a   :  { %v506_v1 = vrot.slane %v505_v45, 4  ;;  %v513_v42 = vrot.slane %v512_v60, 4  ;;  %v339_v61 = vrot.slane %v319_v56, 6  ;;  %457 = vst [vmem:[#allocation1] ss:$4 sm:$0xff] %v442_v2 }
  0x6b   :  { %v480_v43 = vrot.slane %v479_v58, 2  ;;  %v487_v63 = vrot.slane %v486_v62, 2  ;;  %v494_v16 = vrot.slane %v493_v51, 2  ;;  %v501_v17 = vrot.slane %v500_v59, 2 }
  0x6c   :  { %v507_v18 = vadd.f32 %v506_v1, %v505_v45  ;;  %v514_v19 = vadd.f32 %v513_v42, %v512_v60  ;;  %v347_v21 = vsel %vm48_vm3, %v317_v25, %v339_v61 }
  0x6d   :  { %v481_v3 = vadd.f32 %v480_v43, %v479_v58  ;;  %v488_v24 = vadd.f32 %v487_v63, %v486_v62  ;;  %v495_v27 = vadd.f32 %v494_v16, %v493_v51  ;;  %v502_v28 = vadd.f32 %v501_v17, %v500_v59 }
  0x6e   :  { %v508_v32 = vrot.slane %v507_v18, 2  ;;  %v515_v33 = vrot.slane %v514_v19, 2  ;;  %v355_v29 = vsub.f32 %v888_v26, %v347_v21 }
  0x6f   :  { %v482_v36 = vrot.slane %v481_v3, 1  ;;  %v489_v30 = vrot.slane %v488_v24, 1  ;;  %v496_v37 = vrot.slane %v495_v27, 1  ;;  %v503_v38 = vrot.slane %v502_v28, 1 }
  0x70   :  { %v509_v39 = vadd.f32 %v508_v32, %v507_v18  ;;  %v516_v40 = vadd.f32 %v515_v33, %v514_v19  ;;  %v443_v41 = vmul.f32 %v435_v15, %v355_v29 }
  0x71   :  { %v483_v0 = vadd.f32 %v482_v36, %v481_v3  ;;  %v490_v25 = vadd.f32 %v489_v30, %v488_v24  ;;  %v497_v47 = vadd.f32 %v496_v37, %v495_v27  ;;  %v504_v35 = vadd.f32 %v503_v38, %v502_v28  ;;  %v459_v52 = vld.sshfl [vmem:[#allocation1] sm:$0xff pattern:$0x73625140]  ;;  %v460_v53 = vld.sshfl [vmem:[#allocation1 + $0x8] sm:$0xff pattern:$0x73625140] }
  0x72   :  { %v510_v34 = vrot.slane %v509_v39, 1  ;;  %v517_v4 = vrot.slane %v516_v40, 1  ;;  %458 = vst [vmem:[#allocation1 + $0x20] ss:$4 sm:$0xff] %v443_v41  ;;  %v519_v57 = vsel %vm48_vm3, %v459_v52, 0.0  ;;  %v526_v62 = vsel %vm48_vm3, %v460_v53, 0.0 }
  0x73   :  { %v593_v48 = vmul.f32 %v569_v7, %v483_v0  ;;  %v594_v26 = vmul.f32 %v570_v8, %v490_v25  ;;  %v595_v49 = vmul.f32 %v571_v9, %v497_v47  ;;  %v596_v50 = vmul.f32 %v572_v10, %v504_v35  ;;  %v461_v54 = vld.sshfl [vmem:[#allocation1 + $0x10] sm:$0xff pattern:$0x73625140]  ;;  %v462_v55 = vld.sshfl [vmem:[#allocation1 + $0x18] sm:$0xff pattern:$0x73625140] }
  0x74   :  { %v511_v46 = vadd.f32 %v510_v34, %v509_v39  ;;  %v518_v44 = vadd.f32 %v517_v4, %v516_v40  ;;  %v520_v58 = vrot.slane %v519_v57, 4  ;;  %v533_v51 = vsel %vm48_vm3, %v461_v54, 0.0 }
  0x75   :  { %v606_v45 = vsel %vm605_vm2, %v593_v48, 0.0  ;;  %v607_v60 = vsel %vm605_vm2, %v594_v26, 0.0  ;;  %v609_v7 = vsel %vm605_vm2, %v595_v49, 0.0  ;;  %v611_v8 = vsel %vm605_vm2, %v596_v50, 0.0 }
  0x76   :  { %v597_v9 = vmul.f32 %v573_v11, %v511_v46  ;;  %v598_v10 = vmul.f32 %v574_v12, %v518_v44  ;;  %v608_v56 = vadd.f32 %v607_v60, %v606_v45  ;;  %v540_v59 = vsel %vm48_vm3, %v462_v55, 0.0 }
  0x77   :  { %v527_v61 = vrot.slane %v526_v62, 4  ;;  %v521_v11 = vadd.f32 %v520_v58, %v519_v57  ;;  %v534_v12 = vrot.slane %v533_v51, 4  ;;  %v541_v16 = vrot.slane %v540_v59, 4 }
  0x78   :  { %v610_v1 = vadd.f32 %v609_v7, %v608_v56  ;;  %v613_v42 = vsel %vm605_vm2, %v597_v9, 0.0  ;;  %v615_v17 = vsel %vm605_vm2, %v598_v10, 0.0 }
  0x79   :  { %v463_v2 = vld.sshfl [vmem:[#allocation1 + $0x20] sm:$0xff pattern:$0x73625140]  ;;  %v464_v43 = vld.sshfl [vmem:[#allocation1 + $0x28] sm:$0xff pattern:$0x73625140]  ;;  %v528_v5 = vadd.f32 %v527_v61, %v526_v62  ;;  %v535_v24 = vadd.f32 %v534_v12, %v533_v51  ;;  %v542_v27 = vadd.f32 %v541_v16, %v540_v59 }
  0x7a   :  { %v612_v63 = vadd.f32 %v611_v8, %v610_v1  ;;  %v522_v18 = vrot.slane %v521_v11, 2  ;;  %v547_v19 = vsel %vm48_vm3, %v463_v2, 0.0  ;;  %v554_v21 = vsel %vm48_vm3, %v464_v43, 0.0 }
  0x7b   :  { %v529_v3 = vrot.slane %v528_v5, 2  ;;  %v548_v32 = vrot.slane %v547_v19, 4  ;;  %v555_v33 = vrot.slane %v554_v21, 4  ;;  %v536_v30 = vrot.slane %v535_v24, 2 }
  0x7c   :  { %v614_v15 = vadd.f32 %v613_v42, %v612_v63  ;;  %v523_v28 = vadd.f32 %v522_v18, %v521_v11  ;;  %v543_v37 = vrot.slane %v542_v27, 2 }
  0x7d   :  { %v530_v36 = vadd.f32 %v529_v3, %v528_v5  ;;  %v549_v39 = vadd.f32 %v548_v32, %v547_v19  ;;  %v556_v40 = vadd.f32 %v555_v33, %v554_v21  ;;  %v537_v0 = vadd.f32 %v536_v30, %v535_v24 }
  0x7e   :  { %v616_v29 = vadd.f32 %v615_v17, %v614_v15  ;;  %v524_v38 = vrot.slane %v523_v28, 1  ;;  %v544_v25 = vadd.f32 %v543_v37, %v542_v27 }
  0x7f   :  { %v531_v41 = vrot.slane %v530_v36, 1  ;;  %v550_v35 = vrot.slane %v549_v39, 2  ;;  %v557_v34 = vrot.slane %v556_v40, 2  ;;  %v538_v48 = vrot.slane %v537_v0, 1 }
  0x80   :  { %617 = vadd.xlane.f32.xlu1 %v616_v29  ;;  %v525_v47 = vadd.f32 %v524_v38, %v523_v28  ;;  %v545_v26 = vrot.slane %v544_v25, 1 }
  0x81   :  { %v532_v4 = vadd.f32 %v531_v41, %v530_v36  ;;  %v551_v49 = vadd.f32 %v550_v35, %v549_v39  ;;  %v558_v50 = vadd.f32 %v557_v34, %v556_v40  ;;  %v539_v53 = vadd.f32 %v538_v48, %v537_v0 }
  0x82   :  { %v599_v52 = vmul.f32 %v575_v13, %v525_v47  ;;  %v546_v46 = vadd.f32 %v545_v26, %v544_v25 }
  0x83   :  { %v600_v44 = vmul.f32 %v576_v14, %v532_v4  ;;  %v552_v54 = vrot.slane %v551_v49, 1  ;;  %v559_v55 = vrot.slane %v558_v50, 1  ;;  %v601_v60 = vmul.f32 %v577_v20, %v539_v53 }
  0x84   :  { %v619_v45 = vsel %vm605_vm2, %v599_v52, 0.0  ;;  %v602_v7 = vmul.f32 %v578_v22, %v546_v46  ;;  %v644_v42 = vpop.xlane.xlu0 %643 }
  0x85   :  { %v620_v8 = vsel %vm605_vm2, %v600_v44, 0.0  ;;  %v553_v9 = vadd.f32 %v552_v54, %v551_v49  ;;  %v560_v10 = vadd.f32 %v559_v55, %v558_v50  ;;  %v622_v56 = vsel %vm605_vm2, %v601_v60, 0.0 }
  0x86   :  { %v621_v13 = vadd.f32 %v620_v8, %v619_v45  ;;  %v624_v57 = vsel %vm605_vm2, %v602_v7, 0.0  ;;  %v660_v61 = vmax.f32 %v644_v42, 1.0 }
  0x87   :  { %v603_v14 = vmul.f32 %v579_v23, %v553_v9  ;;  %v604_v58 = vmul.f32 %v580_v31, %v560_v10 }
  0x88   :  { %v623_v62 = vadd.f32 %v622_v56, %v621_v13  ;;  %746 = vrcp.f32 %v660_v61  ;;  %vm667_vm3 = vweird.f32 %v660_v61  ;;  %v673_v6 = vand.u32 2147483648, %v660_v61 }
  0x89   :  { %v626_v51 = vsel %vm605_vm2, %v603_v14, 0.0  ;;  %v628_v22 = vsel %vm605_vm2, %v604_v58, 0.0  ;;  %v671_v12 = vand.u32 2147483647, %v660_v61 }
  0x8a   :  { %v625_v20 = vadd.f32 %v624_v57, %v623_v62  ;;  %v674_v17 = vor.u32 1.1754944e-38, %v673_v6 }
  0x8b   :  { %vm672_vm2 = vcmp.eq.f32.partialorder %v671_v12, 8.507059e+37 }
  0x8c   :  { %v627_v59 = vadd.f32 %v626_v51, %v625_v20  ;;  %v657_v11 = vpop.xlane.xlu0 %656 }
  0x8d   :  { %v661_v63 = vmax.f32 %v657_v11, 1.0 }
  0x8e   :  { %v629_v1 = vadd.f32 %v628_v22, %v627_v59  ;;  %v747_v2 = vpop.eup %746 }
  0x8f   :  { %v663_v43 = vmul.f32 %v747_v2, %v660_v61  ;;  %748 = vrcp.f32 %v661_v63  ;;  %vm668_vm4 = vweird.f32 %v747_v2  ;;  %vm682_vm7 = vweird.f32 %v661_v63 }
  0x90   :  { %630 = vadd.xlane.f32.xlu1 %v629_v1  ;;  %vm669_vm5 = vmor %vm667_vm3, %vm668_vm4  ;;  %v688_v32 = vand.u32 2147483648, %v661_v63  ;;  %v686_v29 = vand.u32 2147483647, %v661_v63 }
  0x91   :  { %v664_v23 = vsub.f32 1.0, %v663_v43 }
  0x92   :  { %v689_v36 = vor.u32 1.1754944e-38, %v688_v32  ;;  %vm687_vm10 = vcmp.eq.f32.partialorder %v686_v29, 8.507059e+37 }
  0x93   :  { %v665_v5 = vmul.f32 %v747_v2, %v664_v23 }
  0x95   :  { %v666_v31 = vadd.f32 %v747_v2, %v665_v5  ;;  %v749_v16 = vpop.eup %748 }
  0x96   :  { %v678_v21 = vmul.f32 %v749_v16, %v661_v63  ;;  %vm683_vm8 = vweird.f32 %v749_v16 }
  0x97   :  { %v670_v18 = vsel %vm669_vm5, %v747_v2, %v666_v31  ;;  %vm684_vm9 = vmor %vm682_vm7, %vm683_vm8 }
  0x98   :  { %v675_v3 = vsel %vm672_vm2, %v674_v17, %v670_v18  ;;  %v679_v27 = vsub.f32 1.0, %v678_v21 }
  0x9a   :  { %v680_v28 = vmul.f32 %v749_v16, %v679_v27 }
  0x9c   :  { %v681_v33 = vadd.f32 %v749_v16, %v680_v28 }
  0x9e   :  { %v685_v30 = vsel %vm684_vm9, %v749_v16, %v681_v33 }
  0x9f   :  { %v690_v39 = vsel %vm687_vm10, %v689_v36, %v685_v30 }
  0xf3   :  { %v618_v19 = vpop.xlane.xlu1 %617 }
  0xf4   :  { %v658_v15 = vsub.f32 0.0, %v618_v19 }
  0xf6   :  { %v676_v24 = vmul.f32 %v675_v3, %v658_v15 }
  0xf8   :  { %693 = vst.msk [vmem:[%s1032_s2] sm:$0x1] %vm692_vm6, %v676_v24 }
 0x103   :  { %v631_v37 = vpop.xlane.xlu1 %630 }
 0x104   :  { %v659_v38 = vsub.f32 0.0, %v631_v37 }
 0x106   :  { %v691_v40 = vmul.f32 %v690_v39, %v659_v38 }
 0x108   :  { %694 = vst.msk [vmem:[%s1032_s2 + $0x1] sm:$0x1] %vm692_vm6, %v691_v40 }

// kernel: forward.16
= control target key start
LH: loop header
LB: loop body
LE: loop exit
PB: predicated region body
PF: predicated region fallthrough
CT: control target
= control target key end

     0   :  { %vm141_vm6 = vcmask 1041408   ;;  %vm318_vm11 = vcmask 1024   ;;  %s526_s0 = inlined_call_operand.vmem [shape: f32[2,3072], index: 0, kind: input, shape index: {}]   ;;  %s527_s1 = inlined_call_operand.vmem [shape: f32[2,3072], index: 1, kind: input, shape index: {}]   ;;  %s528_s2 = inlined_call_operand.vmem [shape: f32[2,3072], index: 2, kind: input, shape index: {}]   ;;  %s529_s3 = inlined_call_operand.vmem [shape: f32[2,1], index: 3, kind: output, shape index: {}]  }
   0x1   :  { %v14_v0 = vld [vmem:[%s527_s1] sm:$0xff]  ;;  %v15_v1 = vld [vmem:[%s527_s1 + $0x8] sm:$0xff]  ;;  %v16_v2 = vld [vmem:[%s527_s1 + $0x10] sm:$0xff] }
   0x2   :  { %v17_v3 = vld [vmem:[%s527_s1 + $0x18] sm:$0xff]  ;;  %v20_v4 = vld [vmem:[%s526_s0] sm:$0xff]  ;;  %v21_v5 = vld [vmem:[%s526_s0 + $0x8] sm:$0xff] }
   0x3   :  { %v22_v6 = vld [vmem:[%s526_s0 + $0x10] sm:$0xff]  ;;  %v23_v7 = vld [vmem:[%s526_s0 + $0x18] sm:$0xff]  ;;  %v26_v8 = vsub.f32 %v14_v0, %v20_v4  ;;  %v27_v9 = vsub.f32 %v15_v1, %v21_v5  ;;  %v18_v22 = vld [vmem:[%s527_s1 + $0x20] sm:$0xff] }
   0x4   :  { %v28_v10 = vsub.f32 %v16_v2, %v22_v6  ;;  %v29_v11 = vsub.f32 %v17_v3, %v23_v7  ;;  %v19_v23 = vld [vmem:[%s527_s1 + $0x28] sm:$0xff]  ;;  %v24_v24 = vld [vmem:[%s526_s0 + $0x20] sm:$0xff]  ;;  %v403_v43 = vld [vmem:[%s528_s2 + $0x10] sm:$0xff] }
   0x5   :  { %v32_v12 = vand.u32 2147483647, %v26_v8  ;;  %v33_v13 = vand.u32 2147483647, %v27_v9  ;;  %v25_v25 = vld [vmem:[%s526_s0 + $0x28] sm:$0xff]  ;;  %v391_v26 = vld [vmem:[%s528_s2] sm:$0xff]  ;;  %v30_v32 = vsub.f32 %v18_v22, %v24_v24 }
   0x6   :  { %v34_v16 = vand.u32 2147483647, %v28_v10  ;;  %v35_v17 = vand.u32 2147483647, %v29_v11  ;;  %v396_v27 = vld [vmem:[%s528_s2 + $0x8] sm:$0xff]  ;;  %v31_v33 = vsub.f32 %v19_v23, %v25_v25  ;;  %v408_v45 = vld [vmem:[%s528_s2 + $0x18] sm:$0xff] }
   0x7   :  { %v44_v14 = vmul.f32 0.5, %v32_v12  ;;  %v45_v15 = vmul.f32 0.5, %v33_v13  ;;  %vm38_vm0 = vcmp.lt.f32.partialorder %v32_v12, 1.0  ;;  %vm39_vm1 = vcmp.lt.f32.partialorder %v33_v13, 1.0  ;;  %v417_v63 = vld [vmem:[%s528_s2 + $0x20] sm:$0xff]  ;;  %v422_v1 = vld [vmem:[%s528_s2 + $0x28] sm:$0xff] }
   0x8   :  { %v324_v20 = vadd.f32 -0.5, %v32_v12  ;;  %v325_v21 = vadd.f32 -0.5, %v33_v13  ;;  %v46_v28 = vmul.f32 0.5, %v34_v16  ;;  %v47_v31 = vmul.f32 0.5, %v35_v17 }
   0x9   :  { %v50_v18 = vmul.f32 %v44_v14, %v32_v12  ;;  %v51_v19 = vmul.f32 %v45_v15, %v33_v13  ;;  %v326_v37 = vadd.f32 -0.5, %v34_v16  ;;  %vm40_vm2 = vcmp.lt.f32.partialorder %v34_v16, 1.0 }
   0xa   :  { %v52_v36 = vmul.f32 %v46_v28, %v34_v16  ;;  %v53_v38 = vmul.f32 %v47_v31, %v35_v17  ;;  %v327_v39 = vadd.f32 -0.5, %v35_v17  ;;  %v36_v40 = vand.u32 2147483647, %v30_v32 }
   0xb   :  { %v62_v29 = vsel %vm38_vm0, %v50_v18, %v324_v20  ;;  %v63_v30 = vsel %vm39_vm1, %v51_v19, %v325_v21  ;;  %v37_v41 = vand.u32 2147483647, %v31_v33  ;;  %vm41_vm3 = vcmp.lt.f32.partialorder %v35_v17, 1.0 }
   0xc   :  { %v74_v34 = vmul.f32 %v391_v26, %v62_v29  ;;  %v75_v35 = vmul.f32 %v396_v27, %v63_v30  ;;  %v64_v42 = vsel %vm40_vm2, %v52_v36, %v326_v37  ;;  %v65_v44 = vsel %vm41_vm3, %v53_v38, %v327_v39 }
   0xd   :  { %v48_v46 = vmul.f32 0.5, %v36_v40  ;;  %v49_v47 = vmul.f32 0.5, %v37_v41  ;;  %v76_v48 = vmul.f32 %v403_v43, %v64_v42  ;;  %v77_v51 = vmul.f32 %v408_v45, %v65_v44 }
   0xe   :  { %86 = vst [vmem:[#allocation1] ss:$4 sm:$0xff] %v74_v34  ;;  %v328_v59 = vadd.f32 -0.5, %v36_v40  ;;  %vm42_vm4 = vcmp.lt.f32.partialorder %v36_v40, 1.0  ;;  %v329_v61 = vadd.f32 -0.5, %v37_v41  ;;  %vm43_vm5 = vcmp.lt.f32.partialorder %v37_v41, 1.0 }
   0xf   :  { %88 = vst [vmem:[#allocation1 + $0x20] ss:$4 sm:$0xff] %v75_v35  ;;  %v54_v58 = vmul.f32 %v48_v46, %v36_v40  ;;  %v55_v60 = vmul.f32 %v49_v47, %v37_v41 }
  0x11   :  { %v66_v62 = vsel %vm42_vm4, %v54_v58, %v328_v59  ;;  %v67_v0 = vsel %vm43_vm5, %v55_v60, %v329_v61 }
  0x12   :  { %v78_v2 = vmul.f32 %v417_v63, %v66_v62  ;;  %v79_v5 = vmul.f32 %v422_v1, %v67_v0 }
  0x15   :  { %v89_v49 = vld.sshfl [vmem:[#allocation1] sm:$0xff pattern:$0x73625140]  ;;  %v90_v50 = vld.sshfl [vmem:[#allocation1 + $0x8] sm:$0xff pattern:$0x73625140] }
  0x16   :  { %v91_v52 = vld.sshfl [vmem:[#allocation1 + $0x10] sm:$0xff pattern:$0x73625140]  ;;  %v92_v53 = vld.sshfl [vmem:[#allocation1 + $0x18] sm:$0xff pattern:$0x73625140] }
  0x17   :  { %v93_v54 = vld.sshfl [vmem:[#allocation1 + $0x20] sm:$0xff pattern:$0x73625140]  ;;  %v94_v55 = vld.sshfl [vmem:[#allocation1 + $0x28] sm:$0xff pattern:$0x73625140] }
  0x18   :  { %v95_v56 = vld.sshfl [vmem:[#allocation1 + $0x30] sm:$0xff pattern:$0x73625140]  ;;  %v412_v57 = vld.sshfl [vmem:[#allocation1 + $0x38] sm:$0xff pattern:$0x73625140] }
  0x19   :  { %97 = vst [vmem:[#allocation1] ss:$4 sm:$0xff] %v76_v48  ;;  %v142_v20 = vsel %vm141_vm6, %v89_v49, 0.0  ;;  %v143_v21 = vsel %vm141_vm6, %v90_v50, 0.0  ;;  %v145_v23 = vsel %vm141_vm6, %v91_v52, 0.0  ;;  %v147_v25 = vsel %vm141_vm6, %v92_v53, 0.0 }
  0x1a   :  { %98 = vst [vmem:[#allocation1 + $0x20] ss:$4 sm:$0xff] %v77_v51  ;;  %v144_v22 = vadd.f32 %v143_v21, %v142_v20  ;;  %v149_v29 = vsel %vm141_vm6, %v93_v54, 0.0  ;;  %v151_v42 = vsel %vm141_vm6, %v94_v55, 0.0  ;;  %v153_v44 = vsel %vm141_vm6, %v95_v56, 0.0 }
  0x1c   :  { %v146_v24 = vadd.f32 %v145_v23, %v144_v22 }
  0x1e   :  { %v148_v28 = vadd.f32 %v147_v25, %v146_v24 }
  0x20   :  { %v99_v3 = vld.sshfl [vmem:[#allocation1] sm:$0xff pattern:$0x73625140]  ;;  %v100_v4 = vld.sshfl [vmem:[#allocation1 + $0x8] sm:$0xff pattern:$0x73625140]  ;;  %v150_v37 = vadd.f32 %v149_v29, %v148_v28 }
  0x21   :  { %v426_v6 = vld.sshfl [vmem:[#allocation1 + $0x10] sm:$0xff pattern:$0x73625140]  ;;  %v428_v7 = vld.sshfl [vmem:[#allocation1 + $0x18] sm:$0xff pattern:$0x73625140] }
  0x22   :  { %v430_v8 = vld.sshfl [vmem:[#allocation1 + $0x20] sm:$0xff pattern:$0x73625140]  ;;  %v432_v9 = vld.sshfl [vmem:[#allocation1 + $0x28] sm:$0xff pattern:$0x73625140]  ;;  %v152_v47 = vadd.f32 %v151_v42, %v150_v37 }
  0x23   :  { %v434_v10 = vld.sshfl [vmem:[#allocation1 + $0x30] sm:$0xff pattern:$0x73625140]  ;;  %v436_v11 = vld.sshfl [vmem:[#allocation1 + $0x38] sm:$0xff pattern:$0x73625140] }
  0x24   :  { %107 = vst [vmem:[#allocation1] ss:$4 sm:$0xff] %v78_v2  ;;  %v154_v50 = vadd.f32 %v153_v44, %v152_v47  ;;  %v157_v52 = vsel %vm141_vm6, %v99_v3, 0.0  ;;  %v159_v58 = vsel %vm141_vm6, %v100_v4, 0.0  ;;  %v161_v4 = vsel %vm141_vm6, %v426_v6, 0.0 }
  0x25   :  { %108 = vst [vmem:[#allocation1 + $0x20] ss:$4 sm:$0xff] %v79_v5  ;;  %v163_v25 = vsel %vm141_vm6, %v428_v7, 0.0 }
  0x2b   :  { %v438_v12 = vld.sshfl [vmem:[#allocation1] sm:$0xff pattern:$0x73625140]  ;;  %v440_v13 = vld.sshfl [vmem:[#allocation1 + $0x8] sm:$0xff pattern:$0x73625140] }
  0x2c   :  { %v442_v14 = vld.sshfl [vmem:[#allocation1 + $0x10] sm:$0xff pattern:$0x73625140]  ;;  %v444_v15 = vld.sshfl [vmem:[#allocation1 + $0x18] sm:$0xff pattern:$0x73625140] }
  0x2d   :  { %v446_v16 = vld.sshfl [vmem:[#allocation1 + $0x20] sm:$0xff pattern:$0x73625140]  ;;  %v448_v17 = vld.sshfl [vmem:[#allocation1 + $0x28] sm:$0xff pattern:$0x73625140] }
  0x2e   :  { %v450_v18 = vld.sshfl [vmem:[#allocation1 + $0x30] sm:$0xff pattern:$0x73625140]  ;;  %v452_v19 = vld.sshfl [vmem:[#allocation1 + $0x38] sm:$0xff pattern:$0x73625140] }
  0x2f   :  { %197 = vst [vmem:[#allocation1] ss:$4 sm:$0xff] %v391_v26 }
  0x30   :  { %199 = vst [vmem:[#allocation1 + $0x20] ss:$4 sm:$0xff] %v396_v27 }
  0x36   :  { %v200_v30 = vld.sshfl [vmem:[#allocation1] sm:$0xff pattern:$0x73625140]  ;;  %v201_v31 = vld.sshfl [vmem:[#allocation1 + $0x8] sm:$0xff pattern:$0x73625140] }
  0x37   :  { %v202_v32 = vld.sshfl [vmem:[#allocation1 + $0x10] sm:$0xff pattern:$0x73625140]  ;;  %v203_v33 = vld.sshfl [vmem:[#allocation1 + $0x18] sm:$0xff pattern:$0x73625140] }
  0x38   :  { %v204_v26 = vld.sshfl [vmem:[#allocation1 + $0x20] sm:$0xff pattern:$0x73625140]  ;;  %v205_v34 = vld.sshfl [vmem:[#allocation1 + $0x28] sm:$0xff pattern:$0x73625140] }
  0x39   :  { %v206_v35 = vld.sshfl [vmem:[#allocation1 + $0x30] sm:$0xff pattern:$0x73625140]  ;;  %v207_v36 = vld.sshfl [vmem:[#allocation1 + $0x38] sm:$0xff pattern:$0x73625140] }
  0x3a   :  { %208 = vst [vmem:[#allocation1] ss:$4 sm:$0xff] %v403_v43  ;;  %v252_v27 = vsel %vm141_vm6, %v200_v30, 0.0  ;;  %v253_v38 = vsel %vm141_vm6, %v201_v31, 0.0  ;;  %v255_v39 = vsel %vm141_vm6, %v202_v32, 0.0  ;;  %v257_v41 = vsel %vm141_vm6, %v203_v33, 0.0 }
  0x3b   :  { %209 = vst [vmem:[#allocation1 + $0x20] ss:$4 sm:$0xff] %v408_v45  ;;  %v254_v40 = vadd.f32 %v253_v38, %v252_v27  ;;  %v259_v48 = vsel %vm141_vm6, %v204_v26, 0.0  ;;  %v155_v43 = vsel %vm141_vm6, %v412_v57, 0.0  ;;  %v261_v51 = vsel %vm141_vm6, %v205_v34, 0.0 }
  0x3c   :  { %v263_v45 = vsel %vm141_vm6, %v206_v35, 0.0  ;;  %v265_v55 = vsel %vm141_vm6, %v207_v36, 0.0  ;;  %v156_v56 = vadd.f32 %v155_v43, %v154_v50  ;;  %v167_v33 = vsel %vm141_vm6, %v432_v9, 0.0 }
  0x3d   :  { %v256_v46 = vadd.f32 %v255_v39, %v254_v40  ;;  %v169_v36 = vsel %vm141_vm6, %v434_v10, 0.0  ;;  %v175_v10 = vsel %vm141_vm6, %v440_v13, 0.0  ;;  %v177_v50 = vsel %vm141_vm6, %v442_v14, 0.0 }
  0x3e   :  { %v158_v0 = vadd.f32 %v157_v52, %v156_v56 }
  0x3f   :  { %v258_v49 = vadd.f32 %v257_v41, %v256_v46  ;;  %v173_v41 = vsel %vm141_vm6, %v438_v12, 0.0 }
  0x40   :  { %v160_v23 = vadd.f32 %v159_v58, %v158_v0 }
  0x41   :  { %v210_v53 = vld.sshfl [vmem:[#allocation1] sm:$0xff pattern:$0x73625140]  ;;  %v260_v54 = vadd.f32 %v259_v48, %v258_v49  ;;  %v211_v59 = vld.sshfl [vmem:[#allocation1 + $0x8] sm:$0xff pattern:$0x73625140] }
  0x42   :  { %v212_v60 = vld.sshfl [vmem:[#allocation1 + $0x10] sm:$0xff pattern:$0x73625140]  ;;  %v213_v61 = vld.sshfl [vmem:[#allocation1 + $0x18] sm:$0xff pattern:$0x73625140]  ;;  %v162_v29 = vadd.f32 %v161_v4, %v160_v23 }
  0x43   :  { %v214_v62 = vld.sshfl [vmem:[#allocation1 + $0x20] sm:$0xff pattern:$0x73625140]  ;;  %v262_v57 = vadd.f32 %v261_v51, %v260_v54  ;;  %v215_v2 = vld.sshfl [vmem:[#allocation1 + $0x28] sm:$0xff pattern:$0x73625140] }
  0x44   :  { %v216_v5 = vld.sshfl [vmem:[#allocation1 + $0x30] sm:$0xff pattern:$0x73625140]  ;;  %v217_v20 = vld.sshfl [vmem:[#allocation1 + $0x38] sm:$0xff pattern:$0x73625140]  ;;  %v164_v31 = vadd.f32 %v163_v25, %v162_v29 }
  0x45   :  { %218 = vst [vmem:[#allocation1] ss:$4 sm:$0xff] %v417_v63  ;;  %v264_v21 = vadd.f32 %v263_v45, %v262_v57  ;;  %v267_v3 = vsel %vm141_vm6, %v210_v53, 0.0  ;;  %v269_v24 = vsel %vm141_vm6, %v211_v59, 0.0  ;;  %v271_v30 = vsel %vm141_vm6, %v212_v60, 0.0 }
  0x46   :  { %219 = vst [vmem:[#allocation1 + $0x20] ss:$4 sm:$0xff] %v422_v1  ;;  %v165_v63 = vsel %vm141_vm6, %v430_v8, 0.0  ;;  %v273_v32 = vsel %vm141_vm6, %v213_v61, 0.0  ;;  %v275_v34 = vsel %vm141_vm6, %v214_v62, 0.0  ;;  %v277_v37 = vsel %vm141_vm6, %v215_v2, 0.0 }
  0x47   :  { %v266_v22 = vadd.f32 %v265_v55, %v264_v21  ;;  %v166_v26 = vadd.f32 %v165_v63, %v164_v31  ;;  %v171_v8 = vsel %vm141_vm6, %v436_v11, 0.0  ;;  %v279_v38 = vsel %vm141_vm6, %v216_v5, 0.0 }
  0x48   :  { %v281_v42 = vsel %vm141_vm6, %v217_v20, 0.0  ;;  %v179_v55 = vsel %vm141_vm6, %v444_v15, 0.0  ;;  %v181_v62 = vsel %vm141_vm6, %v446_v16, 0.0  ;;  %v185_v16 = vsel %vm141_vm6, %v450_v18, 0.0 }
  0x49   :  { %v268_v28 = vadd.f32 %v267_v3, %v266_v22  ;;  %v168_v7 = vadd.f32 %v167_v33, %v166_v26  ;;  %v183_v3 = vsel %vm141_vm6, %v448_v17, 0.0  ;;  %v187_v29 = vsel %vm141_vm6, %v452_v19, 0.0 }
  0x4b   :  { %v270_v1 = vadd.f32 %v269_v24, %v268_v28  ;;  %v170_v39 = vadd.f32 %v169_v36, %v168_v7 }
  0x4c   :  { %v220_v40 = vld.sshfl [vmem:[#allocation1] sm:$0xff pattern:$0x73625140]  ;;  %v221_v46 = vld.sshfl [vmem:[#allocation1 + $0x8] sm:$0xff pattern:$0x73625140] }
  0x4d   :  { %v272_v6 = vadd.f32 %v271_v30, %v270_v1  ;;  %v172_v44 = vadd.f32 %v171_v8, %v170_v39  ;;  %v283_v48 = vsel %vm141_vm6, %v220_v40, 0.0  ;;  %v222_v11 = vld.sshfl [vmem:[#allocation1 + $0x10] sm:$0xff pattern:$0x73625140]  ;;  %v285_v51 = vsel %vm141_vm6, %v221_v46, 0.0 }
  0x4e   :  { %v223_v12 = vld.sshfl [vmem:[#allocation1 + $0x18] sm:$0xff pattern:$0x73625140]  ;;  %v287_v53 = vsel %vm141_vm6, %v222_v11, 0.0 }
  0x4f   :  { %v274_v35 = vadd.f32 %v273_v32, %v272_v6  ;;  %v174_v43 = vadd.f32 %v173_v41, %v172_v44  ;;  %v224_v13 = vld.sshfl [vmem:[#allocation1 + $0x20] sm:$0xff pattern:$0x73625140]  ;;  %v289_v58 = vsel %vm141_vm6, %v223_v12, 0.0 }
  0x50   :  { %v225_v59 = vld.sshfl [vmem:[#allocation1 + $0x28] sm:$0xff pattern:$0x73625140]  ;;  %v291_v14 = vsel %vm141_vm6, %v224_v13, 0.0 }
  0x51   :  { %v276_v27 = vadd.f32 %v275_v34, %v274_v35  ;;  %v176_v45 = vadd.f32 %v175_v10, %v174_v43  ;;  %v226_v57 = vld.sshfl [vmem:[#allocation1 + $0x30] sm:$0xff pattern:$0x73625140]  ;;  %v293_v2 = vsel %vm141_vm6, %v225_v59, 0.0 }
  0x52   :  { %v227_v5 = vld.sshfl [vmem:[#allocation1 + $0x38] sm:$0xff pattern:$0x73625140]  ;;  %v295_v15 = vsel %vm141_vm6, %v226_v57, 0.0 }
  0x53   :  { %v278_v9 = vadd.f32 %v277_v37, %v276_v27  ;;  %v178_v54 = vadd.f32 %v177_v50, %v176_v45  ;;  %v297_v23 = vsel %vm141_vm6, %v227_v5, 0.0 }
  0x55   :  { %v280_v47 = vadd.f32 %v279_v38, %v278_v9  ;;  %v180_v61 = vadd.f32 %v179_v55, %v178_v54 }
  0x57   :  { %v282_v49 = vadd.f32 %v281_v42, %v280_v47  ;;  %v182_v21 = vadd.f32 %v181_v62, %v180_v61 }
  0x59   :  { %v284_v52 = vadd.f32 %v283_v48, %v282_v49  ;;  %v184_v24 = vadd.f32 %v183_v3, %v182_v21 }
  0x5b   :  { %v286_v56 = vadd.f32 %v285_v51, %v284_v52  ;;  %v186_v28 = vadd.f32 %v185_v16, %v184_v24 }
  0x5d   :  { %v288_v60 = vadd.f32 %v287_v53, %v286_v56  ;;  %v188_v30 = vadd.f32 %v187_v29, %v186_v28 }
  0x5f   :  { %v290_v0 = vadd.f32 %v289_v58, %v288_v60 }
  0x61   :  { %v292_v20 = vadd.f32 %v291_v14, %v290_v0 }
  0x63   :  { %v294_v22 = vadd.f32 %v293_v2, %v292_v20 }
  0x65   :  { %v296_v4 = vadd.f32 %v295_v15, %v294_v22 }
  0x67   :  { %v298_v25 = vadd.f32 %v297_v23, %v296_v4 }
  0x69   :  { %299 = vadd.xlane.f32.xlu0 %v298_v25 }
  0x71   :  { %189 = vadd.xlane.f32.xlu0 %v188_v30 }
  0xdc   :  { %v300_v63 = vpop.xlane.xlu0 %299 }
  0xdd   :  { %v301_v1 = vmul.f32 0.25, %v300_v63 }
  0xdf   :  { %v302_v31 = vmax.f32 %v301_v1, 1.0 }
  0xe1   :  { %330 = vrcp.f32 %v302_v31  ;;  %v314_v6 = vand.u32 2147483648, %v302_v31  ;;  %v312_v34 = vand.u32 2147483647, %v302_v31  ;;  %vm308_vm8 = vweird.f32 %v302_v31 }
  0xe3   :  { %v315_v35 = vor.u32 1.1754944e-38, %v314_v6  ;;  %vm313_vm10 = vcmp.eq.f32.partialorder %v312_v34, 8.507059e+37 }
  0xe4   :  { %v190_v7 = vpop.xlane.xlu0 %189 }
  0xe7   :  { %v331_v17 = vpop.eup %330 }
  0xe8   :  { %v304_v32 = vmul.f32 %v331_v17, %v302_v31  ;;  %vm309_vm7 = vweird.f32 %v331_v17 }
  0xe9   :  { %vm310_vm9 = vmor %vm308_vm8, %vm309_vm7 }
  0xea   :  { %v305_v33 = vsub.f32 1.0, %v304_v32 }
  0xec   :  { %v306_v26 = vmul.f32 %v331_v17, %v305_v33 }
  0xee   :  { %v307_v18 = vadd.f32 %v331_v17, %v306_v26 }
  0xf0   :  { %v311_v36 = vsel %vm310_vm9, %v331_v17, %v307_v18 }
  0xf1   :  { %v316_v19 = vsel %vm313_vm10, %v315_v35, %v311_v36 }
  0xf2   :  { %v317_v37 = vmul.f32 %v316_v19, %v190_v7 }
  0xf4   :  { %319 = vst.msk [vmem:[%s529_s3] sm:$0x3] %vm318_vm11, %v317_v37 }

// kernel: forward.18
= control target key start
LH: loop header
LB: loop body
LE: loop exit
PB: predicated region body
PF: predicated region fallthrough
CT: control target
= control target key end

     0   :  { %s183_s11 = smov 2   ;;  %v184_v2 = vmov 1   ;;  %v185_v3 = vmov 0   ;;  %v186_v4 = vmov 3   ;;  %v187_v5 = vmov 2   ;;  %s188_s14 = smov 127   ;;  %s224_s0 = inlined_call_operand.vmem [shape: f32[2,3,4], index: 0, kind: input, shape index: {}]   ;;  %s225_s1 = inlined_call_operand.vmem [shape: f32[2,4,35], index: 1, kind: input, shape index: {}]   ;;  %s226_s2 = inlined_call_operand.vmem [shape: f32[2,3,35], index: 2, kind: output, shape index: {}]  }
   0x1   :  { %v11_v0 = vld [vmem:[%s224_s0] sm:$0x7]  ;;  %v12_v1 = vld [vmem:[%s224_s0 + $0x4] sm:$0x7]  ;;  %172 = vset.pattern.permute.xlu1 %v184_v2  ;;  %171 = vset.pattern.permute.xlu0 %v184_v2  ;;  %vm157_vm4 = vcmask 280576  }
   0x2   :  { %75 = vrot.lane.b32.xlu0 %v11_v0, %s183_s11  ;;  %170 = vset.pattern.permute.xlu2 %v185_v3  ;;  %v14_v18 = vld [vmem:[%s225_s1 + $0x4] sm:$0xf]  ;;  %v13_v37 = vld [vmem:[%s225_s1] sm:$0xf] }
   0x3   :  { %17 = vperm.xlu2 %170, %v11_v0   ;;  %v96_v19 = vrot.slane %v14_v18, 6  ;;  %v26_v21 = vperm.slane %v14_v18, 0  ;;  %v38_v22 = vperm.slane %v14_v18, 1  ;;  %v50_v23 = vperm.slane %v14_v18, 2 }
   0x4   :  { %v62_v24 = vperm.slane %v14_v18, 3  ;;  %v95_v41 = vrot.slane %v13_v37, 6  ;;  %v25_v42 = vperm.slane %v13_v37, 0  ;;  %v49_v43 = vperm.slane %v13_v37, 2 }
   0x5   :  { %v100_v25 = vsub.f32 %v14_v18, %v96_v19  ;;  %v37_v44 = vperm.slane %v13_v37, 1  ;;  %v61_v46 = vperm.slane %v13_v37, 3 }
   0x6   :  { %v99_v49 = vsub.f32 %v13_v37, %v95_v41 }
   0x7   :  { %v104_v32 = vrot.slane %v100_v25, 1 }
   0x8   :  { %v103_v56 = vrot.slane %v99_v49, 1 }
   0x9   :  { %v108_v36 = vmul.f32 %v104_v32, %v100_v25 }
   0xa   :  { %77 = vrot.lane.b32.xlu0 %v12_v1, %s183_s11  ;;  %v107_v59 = vmul.f32 %v103_v56, %v99_v49 }
   0xb   :  { %22 = vperm.xlu2 %170, %v12_v1   ;;  %v120_v40 = vperm.slane %v108_v36, 2 }
   0xc   :  { %v119_v63 = vperm.slane %v107_v59, 2 }
  0x12   :  { %30 = vperm.xlu0 %171, %v11_v0  }
  0x13   :  { %173 = vset.pattern.permute.xlu2 %v187_v5 }
  0x14   :  { %42 = vperm.xlu2 %173, %v11_v0  }
  0x1a   :  { %176 = vset.pattern.permute.xlu0 %v186_v4 }
  0x1b   :  { %58 = vperm.xlu0 %176, %v12_v1  }
  0x1c   :  { %175 = vset.pattern.permute.xlu2 %v186_v4 }
  0x1d   :  { %54 = vperm.xlu2 %175, %v11_v0  }
  0x23   :  { %178 = vset.pattern.permute.xlu0 %v187_v5 }
  0x25   :  { %177 = vset.pattern.permute.xlu2 %v187_v5 }
  0x5d   :  { %v18_v14 = vpop.permute.xlu2 %17 }
  0x5e   :  { %v27_v51 = vmax.f32 %v18_v14, %v25_v42 }
  0x65   :  { %v23_v15 = vpop.permute.xlu2 %22 }
  0x66   :  { %v28_v28 = vmax.f32 %v23_v15, %v26_v21 }
  0x6e   :  { %v43_v20 = vpop.permute.xlu2 %42 }
  0x6f   :  { %v51_v53 = vmin.f32 %v43_v20, %v49_v43 }
  0x71   :  { %v65_v57 = vsub.f32 %v51_v53, %v27_v51 }
  0x73   :  { %v67_v61 = vmax.f32 %v65_v57, 0.0 }
  0x74   :  { %v76_v6 = vpop.permute.xlu0 %75 }
  0x75   :  { %v81_v7 = vsub.f32 %v11_v0, %v76_v6 }
  0x77   :  { %85 = vrot.lane.b32.xlu1 %v81_v7, %s188_s14  ;;  %v55_v33 = vpop.permute.xlu2 %54 }
  0x78   :  { %v63_v54 = vmin.f32 %v55_v33, %v61_v46 }
  0x7c   :  { %v78_v8 = vpop.permute.xlu0 %77 }
  0x7d   :  { %v82_v9 = vsub.f32 %v12_v1, %v78_v8 }
  0x7f   :  { %87 = vrot.lane.b32.xlu1 %v82_v9, %s188_s14 }
  0x84   :  { %v31_v17 = vpop.permute.xlu0 %30 }
  0x85   :  { %v39_v52 = vmax.f32 %v31_v17, %v37_v44 }
  0x87   :  { %34 = vperm.xlu1 %172, %v12_v1   ;;  %v69_v58 = vsub.f32 %v63_v54, %v39_v52 }
  0x89   :  { %v71_v62 = vmax.f32 %v69_v58, 0.0 }
  0x8b   :  { %v73_v4 = vmul.f32 %v71_v62, %v67_v61 }
  0x8d   :  { %v59_v27 = vpop.permute.xlu0 %58 }
  0x8e   :  { %v64_v31 = vmin.f32 %v59_v27, %v62_v24 }
  0x8f   :  { %174 = vset.pattern.permute.xlu1 %v187_v5 }
  0x90   :  { %46 = vperm.xlu1 %174, %v12_v1  }
  0xe9   :  { %v86_v10 = vpop.permute.xlu1 %85 }
  0xea   :  { %v91_v11 = vmul.f32 %v86_v10, %v81_v7 }
  0xec   :  { %111 = vperm.xlu1 %174, %v91_v11  }
  0xf1   :  { %v88_v12 = vpop.permute.xlu1 %87 }
  0xf2   :  { %v92_v13 = vmul.f32 %v88_v12, %v82_v9 }
  0xf4   :  { %116 = vperm.xlu2 %177, %v92_v13  }
  0xf9   :  { %v35_v16 = vpop.permute.xlu1 %34 }
  0xfa   :  { %v40_v29 = vmax.f32 %v35_v16, %v38_v22 }
  0xfc   :  { %v70_v35 = vsub.f32 %v64_v31, %v40_v29 }
  0xfe   :  { %v72_v39 = vmax.f32 %v70_v35, 0.0 }
 0x102   :  { %v47_v26 = vpop.permute.xlu1 %46 }
 0x103   :  { %v52_v30 = vmin.f32 %v47_v26, %v50_v23 }
 0x105   :  { %v66_v34 = vsub.f32 %v52_v30, %v28_v28 }
 0x107   :  { %v68_v38 = vmax.f32 %v66_v34, 0.0 }
 0x109   :  { %v74_v47 = vmul.f32 %v72_v39, %v68_v38 }
 0x14e   :  { %v117_v45 = vpop.permute.xlu2 %116 }
 0x14f   :  { %v122_v48 = vadd.f32 %v120_v40, %v117_v45 }
 0x151   :  { %v124_v50 = vsub.f32 %v122_v48, %v74_v47 }
 0x153   :  { %v126_v55 = vmax.f32 %v124_v50, 1e-09 }
 0x155   :  { %179 = vrcp.f32 %v126_v55  ;;  %v153_v3 = vand.u32 2147483648, %v126_v55  ;;  %v151_v7 = vand.u32 2147483647, %v126_v55  ;;  %vm147_vm1 = vweird.f32 %v126_v55 }
 0x157   :  { %v154_v10 = vor.u32 1.1754944e-38, %v153_v3  ;;  %vm152_vm3 = vcmp.eq.f32.partialorder %v151_v7, 8.507059e+37 }
 0x15b   :  { %v180_v60 = vpop.eup %179 }
 0x15c   :  { %v143_v0 = vmul.f32 %v180_v60, %v126_v55  ;;  %vm148_vm0 = vweird.f32 %v180_v60 }
 0x15d   :  { %vm149_vm2 = vmor %vm147_vm1, %vm148_vm0 }
 0x15e   :  { %v144_v1 = vsub.f32 1.0, %v143_v0  ;;  %v112_v2 = vpop.permute.xlu1 %111 }
 0x15f   :  { %v121_v5 = vadd.f32 %v119_v63, %v112_v2 }
 0x160   :  { %v145_v6 = vmul.f32 %v180_v60, %v144_v1 }
 0x161   :  { %v123_v8 = vsub.f32 %v121_v5, %v73_v4 }
 0x162   :  { %v146_v9 = vadd.f32 %v180_v60, %v145_v6 }
 0x163   :  { %v125_v11 = vmax.f32 %v123_v8, 1e-09 }
 0x164   :  { %v150_v12 = vsel %vm149_vm2, %v180_v60, %v146_v9 }
 0x165   :  { %v155_v13 = vsel %vm152_vm3, %v154_v10, %v150_v12  ;;  %181 = vrcp.f32 %v125_v11  ;;  %v138_v18 = vand.u32 2147483648, %v125_v11  ;;  %v136_v20 = vand.u32 2147483647, %v125_v11 }
 0x166   :  { %v156_v14 = vmul.f32 %v155_v13, %v74_v47  ;;  %vm132_vm6 = vweird.f32 %v125_v11 }
 0x167   :  { %v139_v22 = vor.u32 1.1754944e-38, %v138_v18  ;;  %vm137_vm8 = vcmp.eq.f32.partialorder %v136_v20, 8.507059e+37 }
 0x168   :  { %159 = vst.msk [vmem:[%s226_s2 + $0x4] sm:$0x7] %vm157_vm4, %v156_v14 }
 0x16b   :  { %v182_v15 = vpop.eup %181 }
 0x16c   :  { %v128_v16 = vmul.f32 %v182_v15, %v125_v11  ;;  %vm133_vm5 = vweird.f32 %v182_v15 }
 0x16d   :  { %vm134_vm7 = vmor %vm132_vm6, %vm133_vm5 }
 0x16e   :  { %v129_v17 = vsub.f32 1.0, %v128_v16 }
 0x170   :  { %v130_v19 = vmul.f32 %v182_v15, %v129_v17 }
 0x172   :  { %v131_v21 = vadd.f32 %v182_v15, %v130_v19 }
 0x174   :  { %v135_v23 = vsel %vm134_vm7, %v182_v15, %v131_v21 }
 0x175   :  { %v140_v24 = vsel %vm137_vm8, %v139_v22, %v135_v23 }
 0x176   :  { %v141_v25 = vmul.f32 %v140_v24, %v73_v4 }
 0x178   :  { %158 = vst.msk [vmem:[%s226_s2] sm:$0x7] %vm157_vm4, %v141_v25 }

// kernel: forward.19
= control target key start
LH: loop header
LB: loop body
LE: loop exit
PB: predicated region body
PF: predicated region fallthrough
CT: control target
= control target key end

     0   :  { %s825_s9 = smov 0   ;;  %s946_s0 = inlined_call_operand.vmem [shape: bf16[2,140,256], index: 0, kind: input, shape index: {}]   ;;  %s947_s1 = inlined_call_operand.vmem [shape: bf16[2,256,16], index: 1, kind: input, shape index: {}]   ;;  %s948_s2 = inlined_call_operand.vmem [shape: f32[2,140,16], index: 2, kind: output, shape index: {}]  }
   0x1 LB: > { %s595_s10 = sadd.s32 4294967295, %s808_s9   ;;  %p599_p0 = scmp.ge.s32.totalorder %s808_s9, 1  ;;  %s808_s9 = sphi %s825_s9, %s12_s9  }
   0x2   : > { %p122_p1 = scmp.lt.s32.totalorder %s808_s9, 3 }
   0x4   : > { %p123_p2 = pnand %p599_p0, %p122_p1 }
   0x5   : > { %p149_p3 = scmp.lt.s32.totalorder (!%p123_p2), %s595_s10, 1 }
   0x6   : > { %126 = sbr.rel (%p123_p2) target bundleno = 253 (0xfd), region = 28 }
   0xb   : > { %s950_s10 = smov (!%p149_p3, %s595_s10), 1  ;;  %vm508_vm0 = vcmask 130048   ;;  %vm526_vm1 = vcmask 125952  }
   0xc   : > { %s742_s11 = sshll.u32 %s950_s10, 7  ;;  %s793_s15 = smul.u32 144, %s950_s10 }
   0xd   : > { %s839_s14 = scalar_lea.vmem %s947_s1, %s742_s11 }
   0xe   : > { %v768_v0 = vld [vmem:[%s839_s14 + $0x38] sm:$0xff]  ;;  %v767_v2 = vld [vmem:[%s839_s14 + $0x30] sm:$0xff]  ;;  %v766_v4 = vld [vmem:[%s839_s14 + $0x28] sm:$0xff]  ;;  %s859_s18 = scalar_lea.vmem %s946_s0, %s793_s15  ;;  %s906_s21 = scalar_lea.vmem %s948_s2, %s793_s15 }
   0xf   : > { %v776_v1 = vld [vmem:[%s839_s14 + $0x78] sm:$0xff]  ;;  %400 = vmatpush.bf16.msra.mxu0 %v768_v0  ;;  %777 = vmatpush.bf16.msra.mxu2 %v768_v0  ;;  %v775_v3 = vld [vmem:[%s839_s14 + $0x70] sm:$0xff]  ;;  %v774_v5 = vld [vmem:[%s839_s14 + $0x68] sm:$0xff] }
  0x10   : > { %454 = vmatpush.bf16.msra.mxu1 %v776_v1  ;;  %785 = vmatpush.bf16.msra.mxu3 %v776_v1  ;;  %v765_v6 = vld [vmem:[%s839_s14 + $0x20] sm:$0xff]  ;;  %v764_v8 = vld [vmem:[%s839_s14 + $0x18] sm:$0xff]  ;;  %v763_v10 = vld [vmem:[%s839_s14 + $0x10] sm:$0xff] }
  0x11   : > { %v773_v7 = vld [vmem:[%s839_s14 + $0x60] sm:$0xff]  ;;  %v772_v9 = vld [vmem:[%s839_s14 + $0x58] sm:$0xff]  ;;  %v771_v11 = vld [vmem:[%s839_s14 + $0x50] sm:$0xff] }
  0x12   : > { %v762_v12 = vld [vmem:[%s839_s14 + $0x8] sm:$0xff]  ;;  %v761_v14 = vld [vmem:[%s839_s14] sm:$0xff]  ;;  %v753_v22 = vld [vmem:[%s859_s18 + $0x54] sm:$0xf] }
  0x13   : > { %401 = vmatpush.bf16.msra.mxu0 %v767_v2  ;;  %778 = vmatpush.bf16.msra.mxu2 %v767_v2  ;;  %v770_v13 = vld [vmem:[%s839_s14 + $0x48] sm:$0xff]  ;;  %v769_v15 = vld [vmem:[%s839_s14 + $0x40] sm:$0xff]  ;;  %v648_v23 = vld [vmem:[%s859_s18 + $0x58] sm:$0xf0] }
  0x14   : > { %455 = vmatpush.bf16.msra.mxu1 %v775_v3  ;;  %786 = vmatpush.bf16.msra.mxu3 %v775_v3  ;;  %v606_v16 = vld [vmem:[%s859_s18] sm:$0xf]  ;;  %v744_v17 = vld [vmem:[%s859_s18 + $0x4] sm:$0xf0]  ;;  %v743_v20 = vld [vmem:[%s859_s18 + $0x4] sm:$0xf]  ;;  %v651_v27 = vor.u32 %v753_v22, %v648_v23 }
  0x15   : > { %v638_v18 = vld [vmem:[%s859_s18 + $0x40] sm:$0xf]  ;;  %v752_v19 = vld [vmem:[%s859_s18 + $0x44] sm:$0xf0]  ;;  %v608_v21 = vld [vmem:[%s859_s18 + $0x8] sm:$0xf0]  ;;  %v607_v24 = vor.u32 %v744_v17, %v606_v16 }
  0x16   : > { %v639_v25 = vor.u32 %v752_v19, %v638_v18  ;;  %v611_v26 = vor.u32 %v743_v20, %v608_v21  ;;  %v614_v28 = vld [vmem:[%s859_s18 + $0x10] sm:$0xf]  ;;  %v746_v29 = vld [vmem:[%s859_s18 + $0x14] sm:$0xf0]  ;;  %v745_v32 = vld [vmem:[%s859_s18 + $0x14] sm:$0xf] }
  0x17   : > { %402 = vmatpush.bf16.msra.mxu0 %v766_v4  ;;  %779 = vmatpush.bf16.msra.mxu2 %v766_v4  ;;  %v646_v30 = vld [vmem:[%s859_s18 + $0x50] sm:$0xf]  ;;  %v754_v31 = vld [vmem:[%s859_s18 + $0x54] sm:$0xf0]  ;;  %v616_v33 = vld [vmem:[%s859_s18 + $0x18] sm:$0xf0]  ;;  %v615_v36 = vor.u32 %v746_v29, %v614_v28 }
  0x18   : > { %456 = vmatpush.bf16.msra.mxu1 %v774_v5  ;;  %787 = vmatpush.bf16.msra.mxu3 %v774_v5  ;;  %v755_v34 = vld [vmem:[%s859_s18 + $0x64] sm:$0xf]  ;;  %v656_v35 = vld [vmem:[%s859_s18 + $0x68] sm:$0xf0]  ;;  %v647_v37 = vor.u32 %v754_v31, %v646_v30  ;;  %v619_v38 = vor.u32 %v745_v32, %v616_v33  ;;  %v622_v40 = vld [vmem:[%s859_s18 + $0x20] sm:$0xf] }
  0x19   : > { %v659_v39 = vor.u32 %v755_v34, %v656_v35  ;;  %v748_v41 = vld [vmem:[%s859_s18 + $0x24] sm:$0xf0]  ;;  %v654_v42 = vld [vmem:[%s859_s18 + $0x60] sm:$0xf]  ;;  %v747_v44 = vld [vmem:[%s859_s18 + $0x24] sm:$0xf] }
  0x1a   : > { %v756_v43 = vld [vmem:[%s859_s18 + $0x64] sm:$0xf0]  ;;  %v624_v45 = vld [vmem:[%s859_s18 + $0x28] sm:$0xf0]  ;;  %v757_v46 = vld [vmem:[%s859_s18 + $0x74] sm:$0xf]  ;;  %v623_v48 = vor.u32 %v748_v41, %v622_v40 }
  0x1b   : > { %403 = vmatpush.bf16.msra.mxu0 %v765_v6  ;;  %780 = vmatpush.bf16.msra.mxu2 %v765_v6  ;;  %v664_v47 = vld [vmem:[%s859_s18 + $0x78] sm:$0xf0]  ;;  %v655_v49 = vor.u32 %v756_v43, %v654_v42  ;;  %v627_v50 = vor.u32 %v747_v44, %v624_v45  ;;  %v630_v52 = vld [vmem:[%s859_s18 + $0x30] sm:$0xf]  ;;  %v750_v53 = vld [vmem:[%s859_s18 + $0x34] sm:$0xf0] }
  0x1c   : > { %457 = vmatpush.bf16.msra.mxu1 %v773_v7  ;;  %788 = vmatpush.bf16.msra.mxu3 %v773_v7  ;;  %v667_v51 = vor.u32 %v757_v46, %v664_v47  ;;  %v662_v54 = vld [vmem:[%s859_s18 + $0x70] sm:$0xf]  ;;  %v758_v55 = vld [vmem:[%s859_s18 + $0x74] sm:$0xf0]  ;;  %v749_v56 = vld [vmem:[%s859_s18 + $0x34] sm:$0xf]  ;;  %v631_v60 = vor.u32 %v750_v53, %v630_v52 }
  0x1d   : > { %v632_v57 = vld [vmem:[%s859_s18 + $0x38] sm:$0xf0]  ;;  %v759_v58 = vld [vmem:[%s859_s18 + $0x84] sm:$0xf]  ;;  %v672_v59 = vld [vmem:[%s859_s18 + $0x88] sm:$0x30]  ;;  %v663_v61 = vor.u32 %v758_v55, %v662_v54 }
  0x1e   : > { %v635_v62 = vor.u32 %v749_v56, %v632_v57  ;;  %v675_v63 = vor.u32 %v759_v58, %v672_v59  ;;  %v670_v0 = vld [vmem:[%s859_s18 + $0x80] sm:$0xf]  ;;  %v760_v1 = vld [vmem:[%s859_s18 + $0x84] sm:$0x30]  ;;  %v751_v2 = vld [vmem:[%s859_s18 + $0x44] sm:$0xf] }
  0x1f   : > { %404 = vmatpush.bf16.msra.mxu0 %v764_v8  ;;  %781 = vmatpush.bf16.msra.mxu2 %v764_v8  ;;  %v640_v3 = vld [vmem:[%s859_s18 + $0x48] sm:$0xf0]  ;;  %v671_v4 = vor.u32 %v760_v1, %v670_v0 }
  0x20   : > { %458 = vmatpush.bf16.msra.mxu1 %v772_v9  ;;  %789 = vmatpush.bf16.msra.mxu3 %v772_v9  ;;  %v643_v5 = vor.u32 %v751_v2, %v640_v3 }
  0x23   : > { %405 = vmatpush.bf16.msra.mxu0 %v763_v10  ;;  %782 = vmatpush.bf16.msra.mxu2 %v763_v10 }
  0x24   : > { %459 = vmatpush.bf16.msra.mxu1 %v771_v11  ;;  %790 = vmatpush.bf16.msra.mxu3 %v771_v11 }
  0x27   : > { %406 = vmatpush.bf16.msra.mxu0 %v762_v12  ;;  %783 = vmatpush.bf16.msra.mxu2 %v762_v12 }
  0x28   : > { %460 = vmatpush.bf16.msra.mxu1 %v770_v13  ;;  %791 = vmatpush.bf16.msra.mxu3 %v770_v13 }
  0x2b   : > { %407 = vmatpush.bf16.msra.mxu0 %v761_v14  ;;  %784 = vmatpush.bf16.msra.mxu2 %v761_v14 }
  0x2c   : > { %461 = vmatpush.bf16.msra.mxu1 %v769_v15  ;;  %792 = vmatpush.bf16.msra.mxu3 %v769_v15 }
  0x2e   : > { %408 = vmatmul.bf16.vlgmr.msra.gmra.mxu0 %v607_v24  ;;  %428 = vmatmul.bf16.vlgmr.msra.gmra.mxu2 %v639_v25 }
  0x2f   : > { %462 = vmatmul.bf16.vlgmr.msra.gmra.mxu1 %v611_v26  ;;  %487 = vmatmul.bf16.vlgmr.msra.gmra.mxu3 %v651_v27 }
  0x3e   : > { %413 = vmatmul.bf16.gmra.mxu0 %v615_v36  ;;  %433 = vmatmul.bf16.gmra.mxu2 %v647_v37 }
  0x3f   : > { %467 = vmatmul.bf16.gmra.mxu1 %v619_v38  ;;  %492 = vmatmul.bf16.gmra.mxu3 %v659_v39 }
  0x4e   : > { %418 = vmatmul.bf16.gmra.mxu0 %v623_v48  ;;  %438 = vmatmul.bf16.gmra.mxu2 %v655_v49 }
  0x4f   : > { %472 = vmatmul.bf16.gmra.mxu1 %v627_v50  ;;  %497 = vmatmul.bf16.gmra.mxu3 %v667_v51 }
  0x5e   : > { %423 = vmatmul.bf16.gmra.mxu0 %v631_v60  ;;  %443 = vmatmul.bf16.gmra.mxu2 %v663_v61 }
  0x5f   : > { %477 = vmatmul.bf16.gmra.mxu1 %v635_v62  ;;  %502 = vmatmul.bf16.gmra.mxu3 %v675_v63 }
  0x6e   : > { %448 = vmatmul.bf16.gmra.mxu2 %v671_v4 }
  0x6f   : > { %482 = vmatmul.bf16.gmra.mxu1 %v643_v5 }
  0xab   : > { %v409_v6 = vpop.f32.mrf.mxu0 }
  0xac   : > { %v463_v7 = vpop.f32.mrf.mxu1 }
  0xad   : > { %v464_v8 = vadd.f32 %v463_v7, %v409_v6 }
  0xaf   : > { %509 = vst.msk [vmem:[%s906_s21] sm:$0xff] %vm508_vm0, %v464_v8 }
  0xb1   : > { %v429_v9 = vpop.f32.mrf.mxu2 }
  0xb2   : > { %v488_v11 = vpop.f32.mrf.mxu3 }
  0xb3   : > { %v411_v10 = vpop.f32.mrf.mxu0 }
  0xb4   : > { %v465_v12 = vpop.f32.mrf.mxu1 }
  0xb5   : > { %v466_v13 = vadd.f32 %v465_v12, %v411_v10 }
  0xb7   : > { %510 = vst.msk [vmem:[%s906_s21 + $0x8] sm:$0xff] %vm508_vm0, %v466_v13 }
  0xb9   : > { %v431_v14 = vpop.f32.mrf.mxu2 }
  0xba   : > { %v490_v18 = vpop.f32.mrf.mxu3 }
  0xbb   : > { %v414_v15 = vpop.f32.mrf.mxu0 }
  0xbc   : > { %v468_v16 = vpop.f32.mrf.mxu1 }
  0xbd   : > { %v469_v17 = vadd.f32 %v468_v16, %v414_v15 }
  0xbf   : > { %511 = vst.msk [vmem:[%s906_s21 + $0x10] sm:$0xff] %vm508_vm0, %v469_v17 }
  0xc1   : > { %v434_v19 = vpop.f32.mrf.mxu2 }
  0xc2   : > { %v489_v20 = vadd.f32 %v488_v11, %v434_v19  ;;  %v493_v24 = vpop.f32.mrf.mxu3 }
  0xc3   : > { %v416_v21 = vpop.f32.mrf.mxu0 }
  0xc4   : > { %519 = vst.msk [vmem:[%s906_s21 + $0x50] sm:$0xff] %vm508_vm0, %v489_v20  ;;  %v470_v22 = vpop.f32.mrf.mxu1 }
  0xc5   : > { %v471_v23 = vadd.f32 %v470_v22, %v416_v21 }
  0xc7   : > { %512 = vst.msk [vmem:[%s906_s21 + $0x18] sm:$0xff] %vm508_vm0, %v471_v23 }
  0xc9   : > { %v436_v25 = vpop.f32.mrf.mxu2 }
  0xca   : > { %v491_v26 = vadd.f32 %v490_v18, %v436_v25  ;;  %v495_v31 = vpop.f32.mrf.mxu3 }
  0xcb   : > { %v419_v27 = vpop.f32.mrf.mxu0 }
  0xcc   : > { %520 = vst.msk [vmem:[%s906_s21 + $0x58] sm:$0xff] %vm508_vm0, %v491_v26  ;;  %v473_v28 = vpop.f32.mrf.mxu1 }
  0xcd   : > { %v474_v29 = vadd.f32 %v473_v28, %v419_v27 }
  0xcf   : > { %513 = vst.msk [vmem:[%s906_s21 + $0x20] sm:$0xff] %vm508_vm0, %v474_v29 }
  0xd1   : > { %v439_v30 = vpop.f32.mrf.mxu2 }
  0xd2   : > { %v494_v32 = vadd.f32 %v493_v24, %v439_v30  ;;  %v498_v38 = vpop.f32.mrf.mxu3 }
  0xd3   : > { %v421_v33 = vpop.f32.mrf.mxu0 }
  0xd4   : > { %521 = vst.msk [vmem:[%s906_s21 + $0x60] sm:$0xff] %vm508_vm0, %v494_v32  ;;  %v475_v34 = vpop.f32.mrf.mxu1 }
  0xd5   : > { %v476_v35 = vadd.f32 %v475_v34, %v421_v33 }
  0xd7   : > { %514 = vst.msk [vmem:[%s906_s21 + $0x28] sm:$0xff] %vm508_vm0, %v476_v35 }
  0xd9   : > { %v441_v36 = vpop.f32.mrf.mxu2 }
  0xda   : > { %v496_v37 = vadd.f32 %v495_v31, %v441_v36  ;;  %v500_v46 = vpop.f32.mrf.mxu3 }
  0xdb   : > { %v424_v39 = vpop.f32.mrf.mxu0 }
  0xdc   : > { %522 = vst.msk [vmem:[%s906_s21 + $0x68] sm:$0xff] %vm508_vm0, %v496_v37  ;;  %v478_v40 = vpop.f32.mrf.mxu1 }
  0xdd   : > { %v479_v41 = vadd.f32 %v478_v40, %v424_v39 }
  0xdf   : > { %515 = vst.msk [vmem:[%s906_s21 + $0x30] sm:$0xff] %vm508_vm0, %v479_v41 }
  0xe1   : > { %v444_v42 = vpop.f32.mrf.mxu2 }
  0xe2   : > { %v499_v43 = vadd.f32 %v498_v38, %v444_v42  ;;  %v503_v52 = vpop.f32.mrf.mxu3 }
  0xe3   : > { %v426_v44 = vpop.f32.mrf.mxu0 }
  0xe4   : > { %523 = vst.msk [vmem:[%s906_s21 + $0x70] sm:$0xff] %vm508_vm0, %v499_v43  ;;  %v480_v45 = vpop.f32.mrf.mxu1 }
  0xe5   : > { %v481_v47 = vadd.f32 %v480_v45, %v426_v44 }
  0xe7   : > { %516 = vst.msk [vmem:[%s906_s21 + $0x38] sm:$0xff] %vm508_vm0, %v481_v47 }
  0xe9   : > { %v446_v48 = vpop.f32.mrf.mxu2 }
  0xea   : > { %v501_v49 = vadd.f32 %v500_v46, %v446_v48  ;;  %v505_v57 = vpop.f32.mrf.mxu3 }
  0xec   : > { %524 = vst.msk [vmem:[%s906_s21 + $0x78] sm:$0xff] %vm508_vm0, %v501_v49  ;;  %v483_v50 = vpop.f32.mrf.mxu1 }
  0xed   : > { %v484_v51 = vadd.f32 %v483_v50, %v429_v9 }
  0xef   : > { %517 = vst.msk [vmem:[%s906_s21 + $0x40] sm:$0xff] %vm508_vm0, %v484_v51 }
  0xf1   : > { %v449_v53 = vpop.f32.mrf.mxu2 }
  0xf2   : > { %v504_v54 = vadd.f32 %v503_v52, %v449_v53 }
  0xf4   : > { %525 = vst.msk [vmem:[%s906_s21 + $0x80] sm:$0xff] %vm508_vm0, %v504_v54  ;;  %v485_v55 = vpop.f32.mrf.mxu1 }
  0xf5   : > { %v486_v56 = vadd.f32 %v485_v55, %v431_v14 }
  0xf7   : > { %518 = vst.msk [vmem:[%s906_s21 + $0x48] sm:$0xff] %vm508_vm0, %v486_v56 }
  0xf9   : > { %v451_v58 = vpop.f32.mrf.mxu2 }
  0xfa   : > { %v506_v59 = vadd.f32 %v505_v57, %v451_v58 }
  0xfc   : > { %527 = vst.msk [vmem:[%s906_s21 + $0x88] sm:$0xf] %vm526_vm1, %v506_v59 }
  0xfd PF: > { %s12_s9 = sadd.s32 1, %s808_s9  }
  0xfe   : > { %p9_p4 = scmp.ge.s32.totalorder %s12_s9, 4  }
 0x100   :  { %11 = sbr.rel (!%p9_p4) target bundleno = 1 (0x1), region = 61 }

// kernel: forward.20
= control target key start
LH: loop header
LB: loop body
LE: loop exit
PB: predicated region body
PF: predicated region fallthrough
CT: control target
= control target key end

     0   :  { %vm83_vm0 = vcmask 523264   ;;  %vm141_vm1 = vcmask 261120   ;;  %vm150_vm2 = vcmask 259072   ;;  %s299_s1 = inlined_call_operand.vmem [shape: bf16[64,32], index: 1, kind: input, shape index: {}]   ;;  %s300_s2 = inlined_call_operand.vmem [shape: f32[1,32], index: 2, kind: input, shape index: {}]   ;;  %s301_s0 = inlined_call_operand.vmem [shape: bf16[70,64], index: 0, kind: input, shape index: {}]   ;;  %s302_s3 = inlined_call_operand.vmem [shape: f32[70,32], index: 3, kind: output, shape index: {}]  }
   0x1   :  { %v200_v0 = vld [vmem:[%s299_s1 + $0x18] sm:$0xff]  ;;  %v199_v1 = vld [vmem:[%s299_s1 + $0x10] sm:$0xff]  ;;  %v198_v2 = vld [vmem:[%s299_s1 + $0x8] sm:$0xff] }
   0x2   :  { %203 = vmatpush.bf16.msra.mxu3 %v200_v0  ;;  %202 = vmatpush.bf16.msra.mxu2 %v200_v0  ;;  %v197_v3 = vld [vmem:[%s299_s1] sm:$0xff]  ;;  %v196_v4 = vld [vmem:[%s301_s0 + $0x18] sm:$0xff]  ;;  %v195_v5 = vld [vmem:[%s301_s0 + $0x10] sm:$0xff] }
   0x3   :  { %103 = vmatpush.bf16.msra.mxu0 %v200_v0  ;;  %201 = vmatpush.bf16.msra.mxu1 %v200_v0  ;;  %v193_v6 = vld [vmem:[%s301_s0] sm:$0xff]  ;;  %v194_v7 = vld [vmem:[%s301_s0 + $0x8] sm:$0xff] }
   0x4   :  { %v23_v8 = vld [vmem:[%s301_s0 + $0x20] sm:$0x7] }
   0x5   :  { %v53_v9 = vunpack.c.l.b16 %v23_v8  ;;  %v213_v11 = vld [vmem:[%s300_s2] ss:$0 sm:$0xff] }
   0x6   :  { %206 = vmatpush.bf16.msra.mxu3 %v199_v1  ;;  %205 = vmatpush.bf16.msra.mxu2 %v199_v1 }
   0x7   :  { %104 = vmatpush.bf16.msra.mxu0 %v199_v1  ;;  %204 = vmatpush.bf16.msra.mxu1 %v199_v1  ;;  %v58_v10 = vpack.c.b16 %v53_v9, %v53_v9 }
   0xa   :  { %209 = vmatpush.bf16.msra.mxu3 %v198_v2  ;;  %208 = vmatpush.bf16.msra.mxu2 %v198_v2 }
   0xb   :  { %105 = vmatpush.bf16.msra.mxu0 %v198_v2  ;;  %207 = vmatpush.bf16.msra.mxu1 %v198_v2 }
   0xe   :  { %212 = vmatpush.bf16.msra.mxu3 %v197_v3  ;;  %211 = vmatpush.bf16.msra.mxu2 %v197_v3 }
   0xf   :  { %106 = vmatpush.bf16.msra.mxu0 %v197_v3  ;;  %210 = vmatpush.bf16.msra.mxu1 %v197_v3 }
  0x11   :  { %191 = vmatmul.msk.bf16.vlgmr.msra.gmra.mxu3 %vm83_vm0, %v196_v4  ;;  %190 = vmatmul.msk.bf16.vlgmr.msra.gmra.mxu2 %vm83_vm0, %v195_v5 }
  0x12   :  { %188 = vmatmul.msk.bf16.vlgmr.msra.gmra.mxu0 %vm83_vm0, %v193_v6  ;;  %189 = vmatmul.msk.bf16.vlgmr.msra.gmra.mxu1 %vm83_vm0, %v194_v7 }
  0x21   :  { %192 = vmatmul.msk.bf16.gmra.mxu3 %vm83_vm0, %v58_v10 }
  0x8f   :  { %v108_v12 = vpop.f32.mrf.mxu0  ;;  %v113_v13 = vpop.f32.mrf.mxu1 }
  0x90   :  { %v109_v14 = vadd.f32 %v213_v11, %v108_v12  ;;  %v114_v15 = vadd.f32 %v213_v11, %v113_v13 }
  0x92   :  { %v132_v16 = vmax.f32 %v109_v14, 0.0  ;;  %v134_v17 = vmax.f32 %v114_v15, 0.0 }
  0x94   :  { %v123_v18 = vpop.f32.mrf.mxu3  ;;  %142 = vst.msk [vmem:[%s302_s3] sm:$0xff] %vm141_vm1, %v132_v16  ;;  %v118_v19 = vpop.f32.mrf.mxu2 }
  0x95   :  { %v124_v20 = vadd.f32 %v213_v11, %v123_v18  ;;  %144 = vst.msk [vmem:[%s302_s3 + $0x10] sm:$0xff] %vm141_vm1, %v134_v17  ;;  %v119_v21 = vadd.f32 %v213_v11, %v118_v19 }
  0x97   :  { %v138_v22 = vmax.f32 %v124_v20, 0.0  ;;  %v136_v23 = vmax.f32 %v119_v21, 0.0  ;;  %v110_v24 = vpop.f32.mrf.mxu0  ;;  %v115_v25 = vpop.f32.mrf.mxu1 }
  0x98   :  { %v111_v26 = vadd.f32 %v213_v11, %v110_v24  ;;  %v116_v27 = vadd.f32 %v213_v11, %v115_v25 }
  0x99   :  { %148 = vst.msk [vmem:[%s302_s3 + $0x30] sm:$0xff] %vm141_vm1, %v138_v22 }
  0x9a   :  { %146 = vst.msk [vmem:[%s302_s3 + $0x20] sm:$0xff] %vm141_vm1, %v136_v23  ;;  %v133_v28 = vmax.f32 %v111_v26, 0.0  ;;  %v135_v29 = vmax.f32 %v116_v27, 0.0 }
  0x9c   :  { %v125_v30 = vpop.f32.mrf.mxu3  ;;  %143 = vst.msk [vmem:[%s302_s3 + $0x8] sm:$0xff] %vm141_vm1, %v133_v28  ;;  %v120_v31 = vpop.f32.mrf.mxu2 }
  0x9d   :  { %v126_v32 = vadd.f32 %v213_v11, %v125_v30  ;;  %145 = vst.msk [vmem:[%s302_s3 + $0x18] sm:$0xff] %vm141_vm1, %v135_v29  ;;  %v121_v33 = vadd.f32 %v213_v11, %v120_v31 }
  0x9f   :  { %v139_v34 = vmax.f32 %v126_v32, 0.0  ;;  %v137_v35 = vmax.f32 %v121_v33, 0.0 }
  0xa1   :  { %149 = vst.msk [vmem:[%s302_s3 + $0x38] sm:$0xff] %vm141_vm1, %v139_v34 }
  0xa2   :  { %147 = vst.msk [vmem:[%s302_s3 + $0x28] sm:$0xff] %vm141_vm1, %v137_v35 }
  0xa4   :  { %v128_v36 = vpop.f32.mrf.mxu3 }
  0xa5   :  { %v129_v37 = vadd.f32 %v213_v11, %v128_v36 }
  0xa7   :  { %v140_v38 = vmax.f32 %v129_v37, 0.0 }
  0xa9   :  { %151 = vst.msk [vmem:[%s302_s3 + $0x40] sm:$0x3f] %vm150_vm2, %v140_v38 }
  0xac   :  { %v130_v39 = vpop.f32.mrf.mxu3 }

// kernel: forward.21
= control target key start
LH: loop header
LB: loop body
LE: loop exit
PB: predicated region body
PF: predicated region fallthrough
CT: control target
= control target key end

     0   :  { %vm67_vm0 = vcmask 261120   ;;  %vm116_vm1 = vcmask 162816   ;;  %vm125_vm2 = vcmask 160768   ;;  %s252_s1 = inlined_call_operand.vmem [shape: bf16[32,20], index: 1, kind: input, shape index: {}]   ;;  %s253_s0 = inlined_call_operand.vmem [shape: bf16[70,32], index: 0, kind: input, shape index: {}]   ;;  %s254_s2 = inlined_call_operand.vmem [shape: f32[1,20], index: 2, kind: input, shape index: {}]   ;;  %s255_s3 = inlined_call_operand.vmem [shape: f32[70,20], index: 3, kind: output, shape index: {}]  }
   0x1   :  { %v165_v0 = vld [vmem:[%s252_s1 + $0x8] sm:$0xff]  ;;  %v23_v1 = vld [vmem:[%s253_s0 + $0x20] sm:$0x7]  ;;  %v162_v4 = vld [vmem:[%s253_s0 + $0x10] sm:$0xff] }
   0x2   :  { %167 = vmatpush.bf16.msra.mxu2 %v165_v0  ;;  %v164_v2 = vld [vmem:[%s252_s1] sm:$0xff]  ;;  %168 = vmatpush.bf16.msra.mxu3 %v165_v0  ;;  %v49_v3 = vunpack.c.l.b16 %v23_v1  ;;  %v161_v7 = vld [vmem:[%s253_s0 + $0x8] sm:$0xff]  ;;  %v163_v8 = vld [vmem:[%s253_s0 + $0x18] sm:$0xff] }
   0x3   :  { %89 = vmatpush.bf16.msra.mxu0 %v165_v0  ;;  %166 = vmatpush.bf16.msra.mxu1 %v165_v0  ;;  %v160_v6 = vld [vmem:[%s253_s0] sm:$0xff] }
   0x4   :  { %v54_v5 = vpack.c.b16 %v49_v3, %v49_v3  ;;  %v172_v9 = vld [vmem:[%s254_s2] ss:$0 sm:$0xff] }
   0x6   :  { %170 = vmatpush.bf16.msra.mxu2 %v164_v2  ;;  %171 = vmatpush.bf16.msra.mxu3 %v164_v2 }
   0x7   :  { %90 = vmatpush.bf16.msra.mxu0 %v164_v2  ;;  %169 = vmatpush.bf16.msra.mxu1 %v164_v2 }
   0x9   :  { %157 = vmatmul.msk.bf16.vlgmr.msra.gmra.mxu2 %vm67_vm0, %v162_v4  ;;  %159 = vmatmul.msk.bf16.vlgmr.msra.gmra.mxu3 %vm67_vm0, %v54_v5 }
   0xa   :  { %155 = vmatmul.msk.bf16.vlgmr.msra.gmra.mxu0 %vm67_vm0, %v160_v6  ;;  %156 = vmatmul.msk.bf16.vlgmr.msra.gmra.mxu1 %vm67_vm0, %v161_v7 }
  0x19   :  { %158 = vmatmul.msk.bf16.gmra.mxu2 %vm67_vm0, %v163_v8 }
  0x87   :  { %v92_v10 = vpop.f32.mrf.mxu0  ;;  %v97_v11 = vpop.f32.mrf.mxu1 }
  0x88   :  { %v93_v12 = vadd.f32 %v172_v9, %v92_v10  ;;  %v98_v13 = vadd.f32 %v172_v9, %v97_v11 }
  0x8a   :  { %117 = vst.msk [vmem:[%s255_s3] sm:$0xff] %vm116_vm1, %v93_v12 }
  0x8b   :  { %119 = vst.msk [vmem:[%s255_s3 + $0x10] sm:$0xff] %vm116_vm1, %v98_v13 }
  0x8c   :  { %v102_v14 = vpop.f32.mrf.mxu2  ;;  %v112_v15 = vpop.f32.mrf.mxu3 }
  0x8d   :  { %v103_v16 = vadd.f32 %v172_v9, %v102_v14  ;;  %v113_v17 = vadd.f32 %v172_v9, %v112_v15 }
  0x8f   :  { %121 = vst.msk [vmem:[%s255_s3 + $0x20] sm:$0xff] %vm116_vm1, %v103_v16  ;;  %v94_v18 = vpop.f32.mrf.mxu0  ;;  %v99_v19 = vpop.f32.mrf.mxu1 }
  0x90   :  { %126 = vst.msk [vmem:[%s255_s3 + $0x40] sm:$0x3f] %vm125_vm2, %v113_v17  ;;  %v95_v20 = vadd.f32 %v172_v9, %v94_v18  ;;  %v100_v21 = vadd.f32 %v172_v9, %v99_v19 }
  0x92   :  { %118 = vst.msk [vmem:[%s255_s3 + $0x8] sm:$0xff] %vm116_vm1, %v95_v20 }
  0x93   :  { %120 = vst.msk [vmem:[%s255_s3 + $0x18] sm:$0xff] %vm116_vm1, %v100_v21 }
  0x94   :  { %v104_v22 = vpop.f32.mrf.mxu2  ;;  %v114_v23 = vpop.f32.mrf.mxu3 }
  0x95   :  { %v105_v24 = vadd.f32 %v172_v9, %v104_v22 }
  0x97   :  { %122 = vst.msk [vmem:[%s255_s3 + $0x28] sm:$0xff] %vm116_vm1, %v105_v24 }
  0x9c   :  { %v107_v25 = vpop.f32.mrf.mxu2 }
  0x9d   :  { %v108_v26 = vadd.f32 %v172_v9, %v107_v25 }
  0x9f   :  { %123 = vst.msk [vmem:[%s255_s3 + $0x30] sm:$0xff] %vm116_vm1, %v108_v26 }
  0xa4   :  { %v109_v27 = vpop.f32.mrf.mxu2 }
  0xa5   :  { %v110_v28 = vadd.f32 %v172_v9, %v109_v27 }
  0xa7   :  { %124 = vst.msk [vmem:[%s255_s3 + $0x38] sm:$0xff] %vm116_vm1, %v110_v28 }

// kernel: forward.22
= control target key start
LH: loop header
LB: loop body
LE: loop exit
PB: predicated region body
PF: predicated region fallthrough
CT: control target
= control target key end

     0   :  { %vm31_vm1 = vcmask 1041408   ;;  %vm33_vm2 = vcmask 91136   ;;  %vm66_vm7 = vcmask 1024   ;;  %s107_s0 = inlined_call_operand.vmem [shape: f32[2,140], index: 0, kind: input, shape index: {}]   ;;  %s108_s1 = inlined_call_operand.vmem [shape: f32[2,140], index: 1, kind: input, shape index: {}]   ;;  %s109_s2 = inlined_call_operand.vmem [shape: f32[2,140], index: 2, kind: input, shape index: {}]   ;;  %s110_s3 = inlined_call_operand.vmem [shape: f32[2,1], index: 3, kind: output, shape index: {}]  }
   0x1   :  { %v14_v0 = vld [vmem:[%s108_s1] sm:$0xf] }
   0x2   :  { %v15_v1 = vld [vmem:[%s107_s0] sm:$0xf] }
   0x3   :  { %v16_v2 = vsub.f32 %v14_v0, %v15_v1  ;;  %v23_v7 = vld [vmem:[%s109_s2] sm:$0xf] }
   0x5   :  { %v17_v3 = vand.u32 2147483647, %v16_v2 }
   0x7   :  { %v19_v4 = vmul.f32 0.5, %v17_v3  ;;  %v72_v5 = vadd.f32 -0.5, %v17_v3  ;;  %vm18_vm0 = vcmp.lt.f32.partialorder %v17_v3, 1.0 }
   0x9   :  { %v20_v6 = vmul.f32 %v19_v4, %v17_v3 }
   0xb   :  { %v22_v8 = vsel %vm18_vm0, %v20_v6, %v72_v5 }
   0xc   :  { %v24_v9 = vmul.f32 %v23_v7, %v22_v8 }
   0xe   :  { %26 = vst [vmem:[#allocation1] ss:$4 sm:$0xff] %v24_v9 }
  0x15   :  { %v27_v10 = vld.sshfl [vmem:[#allocation1] sm:$0xff pattern:$0x73625140]  ;;  %v28_v11 = vld.sshfl [vmem:[#allocation1 + $0x8] sm:$0xff pattern:$0x73625140] }
  0x16   :  { %39 = vst [vmem:[#allocation1] ss:$4 sm:$0xff] %v23_v7  ;;  %v32_v17 = vsel %vm31_vm1, %v27_v10, 0.0  ;;  %v34_v18 = vsel %vm33_vm2, %v28_v11, 0.0 }
  0x17   :  { %v35_v19 = vadd.f32 %v34_v18, %v32_v17 }
  0x1d   :  { %v40_v12 = vld.sshfl [vmem:[#allocation1] sm:$0xff pattern:$0x73625140]  ;;  %v41_v13 = vld.sshfl [vmem:[#allocation1 + $0x8] sm:$0xff pattern:$0x73625140] }
  0x1e   :  { %v44_v14 = vsel %vm31_vm1, %v40_v12, 0.0  ;;  %v45_v15 = vsel %vm33_vm2, %v41_v13, 0.0 }
  0x1f   :  { %v46_v16 = vadd.f32 %v45_v15, %v44_v14 }
  0x21   :  { %47 = vadd.xlane.f32.xlu0 %v46_v16 }
  0x29   :  { %36 = vadd.xlane.f32.xlu0 %v35_v19 }
  0x94   :  { %v48_v20 = vpop.xlane.xlu0 %47 }
  0x95   :  { %v49_v21 = vmul.f32 0.25, %v48_v20 }
  0x97   :  { %v50_v22 = vmax.f32 %v49_v21, 1.0 }
  0x99   :  { %73 = vrcp.f32 %v50_v22  ;;  %v62_v26 = vand.u32 2147483648, %v50_v22  ;;  %v60_v28 = vand.u32 2147483647, %v50_v22  ;;  %vm56_vm4 = vweird.f32 %v50_v22 }
  0x9b   :  { %v63_v30 = vor.u32 1.1754944e-38, %v62_v26  ;;  %vm61_vm6 = vcmp.eq.f32.partialorder %v60_v28, 8.507059e+37 }
  0x9c   :  { %v37_v31 = vpop.xlane.xlu0 %36 }
  0x9f   :  { %v74_v23 = vpop.eup %73 }
  0xa0   :  { %v52_v24 = vmul.f32 %v74_v23, %v50_v22  ;;  %vm57_vm3 = vweird.f32 %v74_v23 }
  0xa1   :  { %vm58_vm5 = vmor %vm56_vm4, %vm57_vm3 }
  0xa2   :  { %v53_v25 = vsub.f32 1.0, %v52_v24 }
  0xa4   :  { %v54_v27 = vmul.f32 %v74_v23, %v53_v25 }
  0xa6   :  { %v55_v29 = vadd.f32 %v74_v23, %v54_v27 }
  0xa8   :  { %v59_v32 = vsel %vm58_vm5, %v74_v23, %v55_v29 }
  0xa9   :  { %v64_v33 = vsel %vm61_vm6, %v63_v30, %v59_v32 }
  0xaa   :  { %v65_v34 = vmul.f32 %v64_v33, %v37_v31 }
  0xac   :  { %67 = vst.msk [vmem:[%s110_s3] sm:$0x3] %vm66_vm7, %v65_v34 }

// kernel: forward.23
= control target key start
LH: loop header
LB: loop body
LE: loop exit
PB: predicated region body
PF: predicated region fallthrough
CT: control target
= control target key end

     0   :  { %vm13_vm0 = vcmask 281600   ;;  %vm90_vm1 = vcmask 278528   ;;  %v163_v5 = vmov 0.0   ;;  %v56_v40 = vlaneseq  ;;  %s217_s1 = inlined_call_operand.vmem [shape: s32[2,1,35], index: 1, kind: input, shape index: {}]   ;;  %s218_s0 = inlined_call_operand.vmem [shape: f32[2,4,35], index: 0, kind: input, shape index: {}]   ;;  %s219_s2 = inlined_call_operand.vmem [shape: f32[2,1,1], index: 2, kind: output, shape index: {}]  }
   0x1   :  { %v54_v0 = vld [vmem:[%s217_s1] sm:$0x1]  ;;  %v12_v2 = vld [vmem:[%s218_s0 + $0x4] sm:$0xf]  ;;  %v55_v16 = vld [vmem:[%s217_s1 + $0x1] sm:$0x1] }
   0x2   :  { %v11_v1 = vld [vmem:[%s218_s0] sm:$0xf]  ;;  %vm82_vm2 = vcmp.ge.s32.totalorder %v54_v0, 0  ;;  %v21_v4 = vsel %vm13_vm0, %v12_v2, -inf  ;;  %vm83_vm3 = vcmp.ge.s32.totalorder %v55_v16, 0  ;;  %v57_v44 = vshrl.u32 %v56_v40, 7 }
   0x3   :  { %v14_v3 = vsel %vm13_vm0, %v11_v1, -inf  ;;  %v190_v6 = vsel %vm82_vm2, 1.0, %v163_v5  ;;  %v22_v8 = vrot.slane %v21_v4, 4  ;;  %v147_v19 = vsel %vm83_vm3, 1.0, %v163_v5  ;;  %v149_v45 = vld [vmem:[%s217_s1] ss:$0 sm:$0xff] }
   0x4   :  { %v15_v7 = vrot.slane %v14_v3, 4  ;;  %v97_v9 = vsel %vm90_vm1, %v190_v6, 0.0  ;;  %v100_v21 = vsel %vm90_vm1, %v147_v19, 0.0  ;;  %v150_v46 = vld [vmem:[%s217_s1 + $0x1] ss:$0 sm:$0xff]  ;;  %vm60_vm4 = vcmp.eq.s32.totalorder %v57_v44, %v149_v45 }
   0x5   :  { %98 = vadd.xlane.f32.xlu0 %v97_v9  ;;  %v23_v11 = vmax.f32 %v21_v4, %v22_v8  ;;  %vm61_vm5 = vcmp.eq.s32.totalorder %v57_v44, %v150_v46  ;;  %v144_v50 = vsel %vm60_vm4, 1.0, %v163_v5  ;;  %vm137_vm12 = vcmask 0  }
   0x6   :  { %v16_v10 = vmax.f32 %v14_v3, %v15_v7  ;;  %v145_v53 = vsel %vm61_vm5, 1.0, %v163_v5 }
   0x7   :  { %v24_v13 = vrot.slane %v23_v11, 2 }
   0x8   :  { %v17_v12 = vrot.slane %v16_v10, 2 }
   0x9   :  { %v25_v15 = vmax.f32 %v23_v11, %v24_v13 }
   0xa   :  { %v18_v14 = vmax.f32 %v16_v10, %v17_v12 }
   0xb   :  { %v26_v18 = vrot.slane %v25_v15, 1 }
   0xc   :  { %v19_v17 = vrot.slane %v18_v14, 1 }
   0xd   :  { %v27_v22 = vmax.f32 %v25_v15, %v26_v18  ;;  %101 = vadd.xlane.f32.xlu0 %v100_v21 }
   0xe   :  { %v20_v20 = vmax.f32 %v18_v14, %v19_v17 }
   0xf   :  { %v29_v24 = vsub.f32 %v12_v2, %v27_v22 }
  0x10   :  { %v28_v23 = vsub.f32 %v11_v1, %v20_v20 }
  0x11   :  { %v32_v26 = vmul.f32 1.442695, %v29_v24 }
  0x12   :  { %v30_v25 = vmul.f32 1.442695, %v28_v23 }
  0x14   :  { %151 = vpow2.f32 %v30_v25 }
  0x15   :  { %153 = vpow2.f32 %v32_v26 }
  0x1a   :  { %v152_v27 = vpop.eup %151 }
  0x1b   :  { %v154_v28 = vpop.eup %153  ;;  %v34_v29 = vsel %vm13_vm0, %v152_v27, 0.0 }
  0x1c   :  { %v35_v30 = vrot.slane %v34_v29, 4  ;;  %v41_v31 = vsel %vm13_vm0, %v154_v28, 0.0 }
  0x1d   :  { %v42_v32 = vrot.slane %v41_v31, 4 }
  0x1e   :  { %v36_v33 = vadd.f32 %v35_v30, %v34_v29 }
  0x1f   :  { %v43_v34 = vadd.f32 %v42_v32, %v41_v31 }
  0x20   :  { %v37_v35 = vrot.slane %v36_v33, 2 }
  0x21   :  { %v44_v36 = vrot.slane %v43_v34, 2 }
  0x22   :  { %v38_v37 = vadd.f32 %v37_v35, %v36_v33 }
  0x23   :  { %v45_v38 = vadd.f32 %v44_v36, %v43_v34 }
  0x24   :  { %v39_v39 = vrot.slane %v38_v37, 1 }
  0x25   :  { %v46_v41 = vrot.slane %v45_v38, 1 }
  0x26   :  { %v40_v42 = vadd.f32 %v39_v39, %v38_v37 }
  0x27   :  { %v47_v43 = vadd.f32 %v46_v41, %v45_v38 }
  0x28   :  { %155 = vlog2.f32 %v40_v42 }
  0x29   :  { %157 = vlog2.f32 %v47_v43 }
  0x2e   :  { %v156_v47 = vpop.eup %155 }
  0x2f   :  { %v158_v48 = vpop.eup %157  ;;  %v49_v49 = vmul.f32 0.6931472, %v156_v47 }
  0x30   :  { %v51_v51 = vmul.f32 0.6931472, %v158_v48 }
  0x31   :  { %v52_v52 = vsub.f32 %v28_v23, %v49_v49 }
  0x32   :  { %v53_v54 = vsub.f32 %v29_v24, %v51_v51 }
  0x33   :  { %v66_v55 = vmul.f32 %v144_v50, %v52_v52 }
  0x34   :  { %v67_v56 = vmul.f32 %v145_v53, %v53_v54 }
  0x35   :  { %v68_v57 = vsel %vm13_vm0, %v66_v55, 0.0 }
  0x36   :  { %v69_v58 = vrot.slane %v68_v57, 4  ;;  %v75_v59 = vsel %vm13_vm0, %v67_v56, 0.0 }
  0x37   :  { %v76_v60 = vrot.slane %v75_v59, 4 }
  0x38   :  { %v70_v61 = vadd.f32 %v69_v58, %v68_v57 }
  0x39   :  { %v77_v62 = vadd.f32 %v76_v60, %v75_v59 }
  0x3a   :  { %v71_v63 = vrot.slane %v70_v61, 2 }
  0x3b   :  { %v78_v0 = vrot.slane %v77_v62, 2 }
  0x3c   :  { %v72_v1 = vadd.f32 %v71_v63, %v70_v61 }
  0x3d   :  { %v79_v2 = vadd.f32 %v78_v0, %v77_v62 }
  0x3e   :  { %v73_v3 = vrot.slane %v72_v1, 1 }
  0x3f   :  { %v80_v4 = vrot.slane %v79_v2, 1 }
  0x40   :  { %v74_v7 = vadd.f32 %v73_v3, %v72_v1 }
  0x41   :  { %v81_v8 = vadd.f32 %v80_v4, %v79_v2 }
  0x42   :  { %v88_v5 = vmul.f32 %v190_v6, %v74_v7 }
  0x43   :  { %v89_v10 = vmul.f32 %v147_v19, %v81_v8 }
  0x44   :  { %v91_v9 = vsel %vm90_vm1, %v88_v5, 0.0 }
  0x45   :  { %92 = vadd.xlane.f32.xlu1 %v91_v9  ;;  %v94_v11 = vsel %vm90_vm1, %v89_v10, 0.0 }
  0x4d   :  { %95 = vadd.xlane.f32.xlu1 %v94_v11 }
  0x78   :  { %v99_v12 = vpop.xlane.xlu0 %98 }
  0x79   :  { %v105_v13 = vmax.f32 %v99_v12, 1.0 }
  0x7b   :  { %159 = vrcp.f32 %v105_v13  ;;  %vm112_vm6 = vweird.f32 %v105_v13  ;;  %v118_v22 = vand.u32 2147483648, %v105_v13  ;;  %v116_v24 = vand.u32 2147483647, %v105_v13 }
  0x7d   :  { %v119_v25 = vor.u32 1.1754944e-38, %v118_v22  ;;  %vm117_vm9 = vcmp.eq.f32.partialorder %v116_v24, 8.507059e+37 }
  0x80   :  { %v102_v14 = vpop.xlane.xlu0 %101 }
  0x81   :  { %v106_v15 = vmax.f32 %v102_v14, 1.0  ;;  %v160_v16 = vpop.eup %159 }
  0x82   :  { %v108_v17 = vmul.f32 %v160_v16, %v105_v13  ;;  %vm113_vm7 = vweird.f32 %v160_v16 }
  0x83   :  { %161 = vrcp.f32 %v106_v15  ;;  %vm114_vm8 = vmor %vm112_vm6, %vm113_vm7  ;;  %vm127_vm10 = vweird.f32 %v106_v15  ;;  %v133_v31 = vand.u32 2147483648, %v106_v15  ;;  %v131_v34 = vand.u32 2147483647, %v106_v15 }
  0x84   :  { %v109_v18 = vsub.f32 1.0, %v108_v17 }
  0x85   :  { %v134_v35 = vor.u32 1.1754944e-38, %v133_v31  ;;  %vm132_vm14 = vcmp.eq.f32.partialorder %v131_v34, 8.507059e+37 }
  0x86   :  { %v110_v6 = vmul.f32 %v160_v16, %v109_v18 }
  0x88   :  { %v111_v19 = vadd.f32 %v160_v16, %v110_v6 }
  0x89   :  { %v162_v20 = vpop.eup %161 }
  0x8a   :  { %v123_v21 = vmul.f32 %v162_v20, %v106_v15  ;;  %v115_v26 = vsel %vm114_vm8, %v160_v16, %v111_v19  ;;  %vm128_vm11 = vweird.f32 %v162_v20 }
  0x8b   :  { %v120_v30 = vsel %vm117_vm9, %v119_v25, %v115_v26  ;;  %vm129_vm13 = vmor %vm127_vm10, %vm128_vm11 }
  0x8c   :  { %v124_v23 = vsub.f32 1.0, %v123_v21 }
  0x8e   :  { %v125_v27 = vmul.f32 %v162_v20, %v124_v23 }
  0x90   :  { %v126_v33 = vadd.f32 %v162_v20, %v125_v27 }
  0x92   :  { %v130_v36 = vsel %vm129_vm13, %v162_v20, %v126_v33 }
  0x93   :  { %v135_v39 = vsel %vm132_vm14, %v134_v35, %v130_v36 }
  0xb8   :  { %v93_v28 = vpop.xlane.xlu1 %92 }
  0xb9   :  { %v103_v29 = vsub.f32 0.0, %v93_v28 }
  0xbb   :  { %v121_v32 = vmul.f32 %v120_v30, %v103_v29 }
  0xbd   :  { %138 = vst.msk [vmem:[%s219_s2] sm:$0x1] %vm137_vm12, %v121_v32 }
  0xc0   :  { %v96_v37 = vpop.xlane.xlu1 %95 }
  0xc1   :  { %v104_v38 = vsub.f32 0.0, %v96_v37 }
  0xc3   :  { %v136_v40 = vmul.f32 %v135_v39, %v104_v38 }
  0xc5   :  { %139 = vst.msk [vmem:[%s219_s2 + $0x1] sm:$0x1] %vm137_vm12, %v136_v40 }

</bundles_post_ra>
